<compile_context>
chip_gen: v5e
topology: v5e:2x2
jax: 0.10.0
libtpu: 0.0.40
codegen_flags: <defaults>
</compile_context>

<pallas_src>
import functools

import jax
import jax.numpy as jnp
from jax import lax
from jax.experimental import pallas as pl
from jax.experimental.pallas import tpu as pltpu

S, H = 384, 768        # sequence length, hidden size (from the torch module)
TM = 128               # row tile: multiple of 8 (f32) and 32 (int8 mask); keep 128 on v6e/v7x
DROP_P = 0.1
EPS = 1e-5


def _dropout_add_ln_kernel(*refs, scale, eps):
    """Fused dropout -> residual add -> LayerNorm(last dim).

    refs = (x, y, [mask], gamma, beta, out); `scale` is None in eval mode (no mask ref).
    """
    if scale is None:
        x_ref, y_ref, g_ref, b_ref, o_ref = refs
        z = x_ref[...].astype(jnp.float32) + y_ref[...].astype(jnp.float32)
    else:
        x_ref, y_ref, m_ref, g_ref, b_ref, o_ref = refs
        keep = m_ref[...].astype(jnp.float32)            # 0.0 / 1.0
        z = (x_ref[...].astype(jnp.float32) * (keep * scale)
             + y_ref[...].astype(jnp.float32))

    h = z.shape[-1]
    inv_h = 1.0 / h
    # Single-pass statistics: one elementwise z*z sweep + two XLU lane reductions.
    s1 = jnp.sum(z, axis=-1, keepdims=True)
    s2 = jnp.sum(z * z, axis=-1, keepdims=True)
    mean = s1 * inv_h
    var = jnp.maximum(s2 * inv_h - mean * mean, 0.0)
    inv = lax.rsqrt(var + eps)

    g = g_ref[...].astype(jnp.float32)
    b = b_ref[...].astype(jnp.float32)
    o_ref[...] = ((z - mean) * inv * g + b).astype(o_ref.dtype)


@functools.partial(jax.jit, static_argnames=("p", "training", "tm"))
def dropout_add_layernorm(x103, x70, gamma, beta, key=None, *,
                          p=DROP_P, training=True, tm=TM):
    batch, s, h = x103.shape
    assert batch == 1 and s % tm == 0 and h % 128 == 0

    x = x103.reshape(s, h)
    y = x70.reshape(s, h)
    g = gamma.reshape(1, h)
    b = beta.reshape(1, h)

    apply_dropout = bool(training) and p > 0.0
    tile = pl.BlockSpec((tm, h), lambda i: (i, 0))
    vec = pl.BlockSpec((1, h), lambda i: (0, 0))

    if apply_dropout:
        # TODO(synk): on real TPU the mask could be generated in-kernel with
        # pltpu.prng_random_bits (removes this S*H byte stream), but that primitive
        # has no interpret/CPU lowering, so we keep the portable host-side mask.
        mask = jax.random.bernoulli(key, 1.0 - p, (s, h)).astype(jnp.int8)
        operands = (x, y, mask, g, b)
        in_specs = [tile, tile, tile, vec, vec]
        scale = 1.0 / (1.0 - p)
        mask_bytes = s * h
    else:
        operands = (x, y, g, b)
        in_specs = [tile, tile, vec, vec]
        scale = None
        mask_bytes = 0

    kernel = functools.partial(_dropout_add_ln_kernel, scale=scale, eps=EPS)
    out = pl.pallas_call(
        kernel,
        out_shape=jax.ShapeDtypeStruct((s, h), x103.dtype),
        grid=(s // tm,),
        in_specs=in_specs,
        out_specs=tile,
        compiler_params=pltpu.CompilerParams(
            # Row tiles are fully independent -> let v7x shard across both TCs.
            dimension_semantics=("parallel",),
        ),
        cost_estimate=pl.CostEstimate(
            flops=12 * s * h,
            transcendentals=s,
            bytes_accessed=3 * 4 * s * h + mask_bytes + 2 * 4 * h,
        ),
    )(*operands)
    return out.reshape(batch, s, h)


if __name__ == "__main__":
    root = jax.random.PRNGKey(0)
    k1, k2, kdrop = jax.random.split(root, 3)
    x103 = jax.random.normal(k1, (1, S, H), dtype=jnp.float32)
    x70 = jax.random.normal(k2, (1, S, H), dtype=jnp.float32)

    # LayerNorm default affine init: weight = ones, bias = zeros (deterministic).
    gamma = jnp.ones((H,), dtype=jnp.float32)
    beta = jnp.zeros((H,), dtype=jnp.float32)

    # Training-mode forward (matches the torch module's default .train() state).
    out = dropout_add_layernorm(x103, x70, gamma, beta, kdrop, training=True)
    jax.block_until_ready(out)
    assert out.shape == (1, S, H)
    assert bool(jnp.isfinite(out).all())

    # Deterministic sanity check of the fused add + LayerNorm math (eval mode:
    # dropout is identity) against a pure-JAX reference.
    out_eval = dropout_add_layernorm(x103, x70, gamma, beta, training=False)
    z = (x103 + x70).astype(jnp.float32)
    mean = z.mean(-1, keepdims=True)
    var = ((z - mean) ** 2).mean(-1, keepdims=True)
    ref = (z - mean) * lax.rsqrt(var + EPS) * gamma + beta
    assert bool(jnp.allclose(out_eval, ref, atol=5e-3, rtol=5e-3))

    print("KERNEL_OK")
</pallas_src>

<mosaic_0001>
module attributes {stable_mosaic.version = 11 : i64} {
  func.func @_dropout_add_ln_kernel(%arg0: i32, %arg1: memref<128x768xf32, #tpu.memory_space<vmem>>, %arg2: memref<128x768xf32, #tpu.memory_space<vmem>>, %arg3: memref<128x768xi8, #tpu.memory_space<vmem>>, %arg4: memref<1x768xf32, #tpu.memory_space<vmem>>, %arg5: memref<1x768xf32, #tpu.memory_space<vmem>>, %arg6: memref<128x768xf32, #tpu.memory_space<vmem>>) attributes {dimension_semantics = [#tpu.dimension_semantics<parallel>], iteration_bounds = array<i64: 3>, scalar_prefetch = 0 : i64, scratch_operands = 0 : i64, tpu.core_type = #tpu.core_type<tc>, window_params = [{transform_indices = @transform_0, window_bounds = array<i64: 128, 768>}, {transform_indices = @transform_1, window_bounds = array<i64: 128, 768>}, {transform_indices = @transform_2, window_bounds = array<i64: 128, 768>}, {pipeline_mode = #tpu.pipeline_mode<synchronous>, transform_indices = @transform_3, window_bounds = array<i64: 1, 768>}, {pipeline_mode = #tpu.pipeline_mode<synchronous>, transform_indices = @transform_4, window_bounds = array<i64: 1, 768>}, {transform_indices = @transform_5, window_bounds = array<i64: 128, 768>}]} {
    %c0 = arith.constant 0 : index
    %c0_0 = arith.constant 0 : index
    %0 = vector.load %arg3[%c0, %c0_0] : memref<128x768xi8, #tpu.memory_space<vmem>>, vector<128x768xi8>
    %1 = arith.sitofp %0 : vector<128x768xi8> to vector<128x768xf32>
    %c0_1 = arith.constant 0 : index
    %c0_2 = arith.constant 0 : index
    %2 = vector.load %arg1[%c0_1, %c0_2] : memref<128x768xf32, #tpu.memory_space<vmem>>, vector<128x768xf32>
    %cst = arith.constant 1.11111116 : f32
    %3 = vector.broadcast %cst : f32 to vector<128x768xf32>
    %4 = arith.mulf %1, %3 : vector<128x768xf32>
    %5 = arith.mulf %2, %4 : vector<128x768xf32>
    %c0_3 = arith.constant 0 : index
    %c0_4 = arith.constant 0 : index
    %6 = vector.load %arg2[%c0_3, %c0_4] : memref<128x768xf32, #tpu.memory_space<vmem>>, vector<128x768xf32>
    %7 = arith.addf %5, %6 : vector<128x768xf32>
    %cst_5 = arith.constant dense<0.000000e+00> : vector<128xf32>
    %8 = vector.multi_reduction <add>, %7, %cst_5 [1] : vector<128x768xf32> to vector<128xf32>
    %9 = vector.shape_cast %8 : vector<128xf32> to vector<128x1xf32>
    %10 = arith.mulf %7, %7 : vector<128x768xf32>
    %cst_6 = arith.constant dense<0.000000e+00> : vector<128xf32>
    %11 = vector.multi_reduction <add>, %10, %cst_6 [1] : vector<128x768xf32> to vector<128xf32>
    %12 = vector.shape_cast %11 : vector<128xf32> to vector<128x1xf32>
    %cst_7 = arith.constant 0.00130208337 : f32
    %13 = vector.broadcast %cst_7 : f32 to vector<128x1xf32>
    %14 = arith.mulf %9, %13 : vector<128x1xf32>
    %cst_8 = arith.constant 0.00130208337 : f32
    %15 = vector.broadcast %cst_8 : f32 to vector<128x1xf32>
    %16 = arith.mulf %12, %15 : vector<128x1xf32>
    %17 = arith.mulf %14, %14 : vector<128x1xf32>
    %18 = arith.subf %16, %17 : vector<128x1xf32>
    %cst_9 = arith.constant 0.000000e+00 : f32
    %19 = vector.broadcast %cst_9 : f32 to vector<128x1xf32>
    %20 = arith.maximumf %18, %19 : vector<128x1xf32>
    %cst_10 = arith.constant 9.99999974E-6 : f32
    %21 = vector.broadcast %cst_10 : f32 to vector<128x1xf32>
    %22 = arith.addf %20, %21 : vector<128x1xf32>
    %23 = math.rsqrt %22 : vector<128x1xf32>
    %c0_11 = arith.constant 0 : index
    %c0_12 = arith.constant 0 : index
    %24 = vector.load %arg4[%c0_11, %c0_12] : memref<1x768xf32, #tpu.memory_space<vmem>>, vector<1x768xf32>
    %c0_13 = arith.constant 0 : index
    %c0_14 = arith.constant 0 : index
    %25 = vector.load %arg5[%c0_13, %c0_14] : memref<1x768xf32, #tpu.memory_space<vmem>>, vector<1x768xf32>
    %26 = vector.broadcast %14 : vector<128x1xf32> to vector<128x768xf32>
    %27 = arith.subf %7, %26 : vector<128x768xf32>
    %28 = vector.broadcast %23 : vector<128x1xf32> to vector<128x768xf32>
    %29 = arith.mulf %27, %28 : vector<128x768xf32>
    %30 = vector.broadcast %24 : vector<1x768xf32> to vector<128x768xf32>
    %31 = arith.mulf %29, %30 : vector<128x768xf32>
    %32 = vector.broadcast %25 : vector<1x768xf32> to vector<128x768xf32>
    %33 = arith.addf %31, %32 : vector<128x768xf32>
    %c0_15 = arith.constant 0 : index
    %c0_16 = arith.constant 0 : index
    %34 = vector.load %arg6[%c0_15, %c0_16] : memref<128x768xf32, #tpu.memory_space<vmem>>, vector<128x768xf32>
    tpu.vector_store %arg6[%c0_15, %c0_16], %33 {strides = array<i32>} : memref<128x768xf32, #tpu.memory_space<vmem>>, vector<128x768xf32>,
    return
  }
  func.func @transform_0(%arg0: i32) -> (i32, i32) {
    %c0_i32 = arith.constant 0 : i32
    %c0_i32_0 = arith.constant 0 : i32
    return %arg0, %c0_i32 : i32, i32
  }
  func.func @transform_1(%arg0: i32) -> (i32, i32) {
    %c0_i32 = arith.constant 0 : i32
    %c0_i32_0 = arith.constant 0 : i32
    return %arg0, %c0_i32 : i32, i32
  }
  func.func @transform_2(%arg0: i32) -> (i32, i32) {
    %c0_i32 = arith.constant 0 : i32
    %c0_i32_0 = arith.constant 0 : i32
    return %arg0, %c0_i32 : i32, i32
  }
  func.func @transform_3(%arg0: i32) -> (i32, i32) {
    %c0_i32 = arith.constant 0 : i32
    %c0_i32_0 = arith.constant 0 : i32
    %c0_i32_1 = arith.constant 0 : i32
    return %c0_i32, %c0_i32_0 : i32, i32
  }
  func.func @transform_4(%arg0: i32) -> (i32, i32) {
    %c0_i32 = arith.constant 0 : i32
    %c0_i32_0 = arith.constant 0 : i32
    %c0_i32_1 = arith.constant 0 : i32
    return %c0_i32, %c0_i32_0 : i32, i32
  }
  func.func @transform_5(%arg0: i32) -> (i32, i32) {
    %c0_i32 = arith.constant 0 : i32
    %c0_i32_0 = arith.constant 0 : i32
    return %arg0, %c0_i32 : i32, i32
  }
}

</mosaic_0001>

<bundles_post_ra>
// kernel: dropout_add_layernorm.1
= control target key start
LH: loop header
LB: loop body
LE: loop exit
PB: predicated region body
PF: predicated region fallthrough
CT: control target
= control target key end

     0   :  { %s4565_s0 = inlined_call_operand.hbm [shape: f32[384,768], index: 0, kind: input, shape index: {}]   ;;  %s4566_s1 = inlined_call_operand.hbm [shape: f32[384,768], index: 1, kind: input, shape index: {}]   ;;  %s4567_s2 = inlined_call_operand.vmem [shape: s8[384,768], index: 2, kind: input, shape index: {}]   ;;  %s4568_s3 = inlined_call_operand.vmem [shape: f32[1,768], index: 3, kind: input, shape index: {}]   ;;  %s4569_s4 = inlined_call_operand.vmem [shape: f32[1,768], index: 4, kind: input, shape index: {}]   ;;  %s4570_s5 = inlined_call_operand.hbm [shape: f32[384,768], index: 5, kind: output, shape index: {}]  }
   0x1   :  { %4751 = sst [smem:[#allocation102_spill]] %s4565_s0 }
   0x2   :  { %10 = vsyncpa [#allocation3], 0 }
   0x3   :  { %12 = vsyncpa [#allocation3 + $0x1], 0 }
   0x4   :  { %13 = vsyncpa [#allocation6], 0 }
   0x5   :  { %15 = vsyncpa [#allocation6 + $0x1], 0 }
   0x6   :  { %16 = vsyncpa [#allocation4], 0 }
   0x7   :  { %18 = vsyncpa [#allocation4 + $0x1], 0  ;;  %s2499_s18 = smov 0   ;;  %s2501_s19 = smov 0  }
   0x8   :  { %s2503_s20 = smov 0   ;;  %s2505_s21 = smov 0  }
   0x9 LB: > { %4752 = sst [smem:[#allocation11_spill]] %s2459_s20  ;;  %s2520_s22 = sadd.s32 4294967295, %s2463_s21   ;;  %s2463_s21 = sphi %s2505_s21, %s5099_s21   ;;  %s2459_s20 = sphi %s2503_s20, %s5096_s20   ;;  %s2455_s19 = sphi %s2501_s19, %s5098_s19   ;;  %s2451_s18 = sphi %s2499_s18, %s5097_s18  }
   0xa   : > { %s2222_s23 = sadd.s32 4294967294, %s2463_s21   ;;  %s2524_s24 = sadd.s32 1, %s2463_s21  }
   0xb   : > { %s31_s25 = sadd.s32 1, %s2459_s20  ;;  %s28_s26 = ssub.s32 %s2463_s21, %s2524_s24 }
   0xc   : > { %p38_p0 = scmp.ne.s32.totalorder %s2459_s20, %s2455_s19  ;;  %p29_p1 = scmp.eq.s32.totalorder %s28_s26, 0 }
   0xd   : > { %p39_p2 = scmp.eq.s32.totalorder %s2463_s21, 0  ;;  %p44_p3 = scmp.ne.s32.totalorder %s2455_s19, %s2451_s18 }
   0xe   : > { %p45_p4 = scmp.eq.s32.totalorder %s2520_s22, 0  ;;  %p162_p7 = scmp.eq.s32.totalorder %s2520_s22, 2 }
   0xf   : > { %s2536_s27 = scalar_select %p29_p1, %s2459_s20, %s31_s25  }
  0x10   : > { %p40_p5 = por %p39_p2, %p38_p0  ;;  %p2538_p6 = por %p45_p4, %p44_p3 }
  0x11   : > { %4753 = sst [smem:[#allocation12_spill]] %s2536_s27  ;;  %p168_p8 = scmp.eq.s32.totalorder %s2222_s23, 2 }
  0x12   : > { %p2263_p9 = scmp.lt.s32.totalorder %s2463_s21, 3  ;;  %p2544_p10 = por %p162_p7, %p38_p0 }
  0x13   : > { %p2548_p11 = por %p168_p8, %p44_p3  ;;  %s2553_s6 = sand.u32 1, %s2459_s20  }
  0x14   : > { %s2240_s7 = smul.u32 768, %s2463_s21  ;;  %s4757_s0 = sld [smem:[#allocation102_spill]] }
  0x15   : > { %s4571_s8 = smul.u32 768, %s2553_s6  ;;  %p2562_p12 = pnand %p2263_p9, %p40_p5 }
  0x16   : > { %s195_s16 = scalar_lea.sflag [#allocation3], %s2553_s6 }
  0x17   : > { %s198_s14 = scalar_lea.vmem [#allocation2], %s4571_s8  ;;  %p2337_p0 = pneg %p2562_p12 }
  0x18   : > { %s207_s15 = sshll.u32 %s198_s14, 4  ;;  %s208_s15 = int_to_ptr.vmem [resolvable:$true] %s207_s15 }
  0x1a   : > { %s204_s11 = scalar_lea.hbm %s4757_s0, %s2240_s7  ;;  %s2340_s9 = scalar_lea.hbm %s4757_s0, 2304 }
  0x1b   : > { %s205_s13 = sshll.u32 %s204_s11, 4  ;;  %s206_s13 = int_to_ptr.hbm [resolvable:$true] %s205_s13 }
  0x1c   : > { %s2333_s17 = sshra.s32 %s206_s13, 4  ;;  %s2334_s17 = int_to_ptr.hbm [resolvable:$true] %s2333_s17 }
  0x1d   : > { %s2335_s23 = scalar_lea.hbm %s2334_s17, 768  ;;  %p2341_p3 = scmp.lt.s32.totalorder %s2334_s17, %s4757_s0 }
  0x1e   : > { %p2336_p13 = scmp.ne.s32.totalorder %s2334_s17, %s2335_s23  ;;  %p2342_p4 = scmp.lt.s32.totalorder %s2340_s9, %s2335_s23 }
  0x20   : > { %p2338_p1 = pnand %p2337_p0, %p2336_p13  ;;  %p2343_p5 = por %p2342_p4, %p2341_p3 }
  0x22   : > { %p2339_p2 = pneg %p2338_p1 }
  0x24   : > { %p2344_p7 = pnand %p2343_p5, %p2339_p2 }
  0x26   : > { %2347 = shalt.err (!%p2344_p7)
}
  0x27   : > { %s2465_s14 = smov 768   ;;  %s2466_s8 = smov 48  }
  0x28   : > { %2255 = dma.hbm_to_vmem [thread:$0]  (!%p2562_p12), %s206_s13, 12288, %s208_s15, %s195_s16, %s2465_s14, %s2465_s14, %s2466_s8  }
  0x29   : > { %p2231_p8 = scmp.ge.s32.totalorder %s2463_s21, 1  ;;  %p248_p9 = scmp.lt.s32.totalorder %s2463_s21, 4 }
  0x2a   : > { %s227_s26 = scalar_lea.hbm %s4566_s1, %s2240_s7  ;;  %s4760_s10 = smul.u32 768, %s2553_s6 }
  0x2b   : > { %p2584_p13 = pnand %p2231_p8, %p248_p9  ;;  %s228_s9 = sshll.u32 %s227_s26, 4  ;;  %s229_s9 = int_to_ptr.hbm [resolvable:$true] %s228_s9 }
  0x2c   : > { %s221_s11 = scalar_lea.vmem [#allocation5], %s4760_s10  ;;  %s218_s27 = scalar_lea.sflag [#allocation6], %s2553_s6 }
  0x2d   : > { %s230_s0 = sshll.u32 %s221_s11, 4  ;;  %s2363_s20 = sshra.s32 %s229_s9, 4  ;;  %s231_s0 = int_to_ptr.vmem [resolvable:$true] %s230_s0  ;;  %s2364_s20 = int_to_ptr.hbm [resolvable:$true] %s2363_s20 }
  0x2e   : > { %s2365_s13 = scalar_lea.hbm %s2364_s20, 768  ;;  %s2370_s17 = scalar_lea.hbm %s4566_s1, 2304 }
  0x2f   : > { %p2366_p1 = scmp.ne.s32.totalorder %s2364_s20, %s2365_s13  ;;  %p2371_p4 = scmp.lt.s32.totalorder %s2364_s20, %s4566_s1 }
  0x30   : > { %p2372_p5 = scmp.lt.s32.totalorder %s2370_s17, %s2365_s13 }
  0x31   : > { %p2368_p2 = pnand %p2366_p1, %p2337_p0 }
  0x32   : > { %p2373_p7 = por %p2372_p5, %p2371_p4 }
  0x33   : > { %p2369_p3 = pneg %p2368_p2 }
  0x35   : > { %p2374_p8 = pnand %p2373_p7, %p2369_p3 }
  0x37   : > { %2377 = shalt.err (!%p2374_p8)
}
  0x38   : > { %2258 = dma.hbm_to_vmem [thread:$0]  (!%p2562_p12), %s229_s9, 12288, %s231_s0, %s218_s27, %s2465_s14, %s2465_s14, %s2466_s8  }
  0x39   : > { %252 = sbr.rel (%p2584_p13) target bundleno = 517 (0x205), region = 40 }
  0x3e   : > { %s2610_s6 = sand.u32 1, %s2455_s19  }
  0x3f   : > { %s2613_s26 = smul.u32 768, %s2610_s6  ;;  %s255_s20 = scalar_lea.sflag [#allocation3], %s2610_s6 }
  0x41   : > { %s2617_s10 = scalar_lea.vmem [#allocation2], %s2613_s26 }
  0x42   : > { %2438 = dma.done.wait (%p2538_p6), %s255_s20, 12288  }
  0x43   : > { %2440 = vsyncadd (%p2538_p6), %s255_s20, 4294955008  ;;  %s265_s0 = scalar_lea.sflag [#allocation6], %s2610_s6  ;;  %s2625_s27 = scalar_lea.vmem [#allocation5], %s2613_s26 }
  0x44   : > { %2442 = dma.done.wait (%p2538_p6), %s265_s0, 12288  }
  0x45   : > { %2444 = vsyncadd (%p2538_p6), %s265_s0, 4294955008  ;;  %s2232_s8 = sshll.u32 %s2520_s22, 2  ;;  %v557_v13 = vld [vmem:[%s2617_s10 + $0xc0] sm:$0xff]  ;;  %v558_v14 = vld [vmem:[%s2617_s10 + $0xc8] sm:$0xff]  ;;  %s3761_s16 = scalar_lea.vmem [#allocation7], %s2613_s26 }
  0x46   : > { %p310_p12 = scmp.lt.s32.totalorder %s2232_s8, 11  ;;  %v559_v15 = vld [vmem:[%s2617_s10 + $0xd0] sm:$0xff]  ;;  %v560_v20 = vld [vmem:[%s2617_s10 + $0xd8] sm:$0xff]  ;;  %v561_v21 = vld [vmem:[%s2617_s10 + $0xe0] sm:$0xff]  ;;  %s2245_s17 = smul.u32 768, %s2520_s22 }
  0x47   : > { %v562_v22 = vld [vmem:[%s2617_s10 + $0xe8] sm:$0xff]  ;;  %v845_v27 = vld [vmem:[%s2625_s27 + $0xc0] sm:$0xff]  ;;  %v847_v29 = vld [vmem:[%s2625_s27 + $0xd0] sm:$0xff]  ;;  %s2111_s26 = sshll.u32 %s3761_s16, 4  ;;  %s2413_s14 = scalar_lea.hbm %s4570_s5, 2304  ;;  %s2112_s26 = int_to_ptr.vmem [resolvable:$true] %s2111_s26 }
  0x48   : > { %s5101_s8 = smov (!%p310_p12, %s2232_s8), 11  ;;  %v846_v28 = vld [vmem:[%s2625_s27 + $0xc8] sm:$0xff]  ;;  %v848_v34 = vld [vmem:[%s2625_s27 + $0xd8] sm:$0xff]  ;;  %v849_v35 = vld [vmem:[%s2625_s27 + $0xe0] sm:$0xff]  ;;  %s2110_s23 = scalar_lea.hbm %s4570_s5, %s2245_s17 }
  0x49   : > { %s2244_s12 = smul.u32 48, %s5101_s8  ;;  %v850_v36 = vld [vmem:[%s2625_s27 + $0xe8] sm:$0xff]  ;;  %s2113_s20 = sshll.u32 %s2110_s23, 4  ;;  %s2114_s20 = int_to_ptr.hbm [resolvable:$true] %s2113_s20 }
  0x4a   : > { %s2407_s0 = sshra.s32 %s2114_s20, 4  ;;  %s2408_s0 = int_to_ptr.hbm [resolvable:$true] %s2407_s0 }
  0x4b   : > { %s2635_s9 = scalar_lea.vmem %s4567_s2, %s2244_s12  ;;  %p2414_p13 = scmp.lt.s32.totalorder %s2408_s0, %s4570_s5 }
  0x4c   : > { %v2638_v0 = vld [vmem:[%s2635_s9 + $0x30] sm:$0xff]  ;;  %v2641_v1 = vld [vmem:[%s2635_s9 + $0x38] sm:$0xff]  ;;  %v2644_v2 = vld [vmem:[%s2635_s9 + $0x40] sm:$0xff] }
  0x4d   : > { %v2647_v3 = vld [vmem:[%s2635_s9 + $0x48] sm:$0xff]  ;;  %v2650_v4 = vld [vmem:[%s2635_s9 + $0x50] sm:$0xff]  ;;  %v2653_v5 = vld [vmem:[%s2635_s9 + $0x58] sm:$0xff]  ;;  %v365_v6 = vunpack.c.0.s8 %v2638_v0  ;;  %v366_v7 = vunpack.c.0.s8 %v2641_v1  ;;  %v367_v8 = vunpack.c.0.s8 %v2644_v2  ;;  %v371_v9 = vunpack.c.1.s8 %v2638_v0 }
  0x4e   : > { %v368_v10 = vunpack.c.0.s8 %v2647_v3  ;;  %v369_v11 = vunpack.c.0.s8 %v2650_v4  ;;  %v370_v12 = vunpack.c.0.s8 %v2653_v5  ;;  %v372_v16 = vunpack.c.1.s8 %v2641_v1  ;;  %v2680_v45 = vld [vmem:[%s2635_s9] sm:$0xff]  ;;  %v2683_v46 = vld [vmem:[%s2635_s9 + $0x8] sm:$0xff]  ;;  %v2686_v47 = vld [vmem:[%s2635_s9 + $0x10] sm:$0xff] }
  0x4f   : > { %v461_v17 = vcvt.s32.f32 %v365_v6  ;;  %v462_v18 = vcvt.s32.f32 %v366_v7  ;;  %v463_v19 = vcvt.s32.f32 %v367_v8  ;;  %v373_v23 = vunpack.c.1.s8 %v2644_v2  ;;  %v2691_v52 = vld [vmem:[%s2635_s9 + $0x18] sm:$0xff]  ;;  %v2694_v53 = vld [vmem:[%s2635_s9 + $0x20] sm:$0xff]  ;;  %v2697_v54 = vld [vmem:[%s2635_s9 + $0x28] sm:$0xff] }
  0x50   : > { %v464_v24 = vcvt.s32.f32 %v368_v10  ;;  %v465_v25 = vcvt.s32.f32 %v369_v11  ;;  %v466_v26 = vcvt.s32.f32 %v370_v12  ;;  %v374_v30 = vunpack.c.1.s8 %v2647_v3  ;;  %v545_v10 = vld [vmem:[%s2617_s10 + $0x60] sm:$0xff]  ;;  %v546_v11 = vld [vmem:[%s2617_s10 + $0x68] sm:$0xff]  ;;  %v547_v12 = vld [vmem:[%s2617_s10 + $0x70] sm:$0xff] }
  0x51   : > { %v653_v31 = vmul.f32 1.1111112, %v461_v17  ;;  %v654_v32 = vmul.f32 1.1111112, %v462_v18  ;;  %v655_v33 = vmul.f32 1.1111112, %v463_v19  ;;  %v375_v37 = vunpack.c.1.s8 %v2650_v4 }
  0x52   : > { %v656_v38 = vmul.f32 1.1111112, %v464_v24  ;;  %v657_v39 = vmul.f32 1.1111112, %v465_v25  ;;  %v658_v40 = vmul.f32 1.1111112, %v466_v26  ;;  %v376_v41 = vunpack.c.1.s8 %v2653_v5 }
  0x53   : > { %v749_v42 = vmul.f32 %v653_v31, %v557_v13  ;;  %v750_v43 = vmul.f32 %v654_v32, %v558_v14  ;;  %v751_v44 = vmul.f32 %v655_v33, %v559_v15  ;;  %v2688_v48 = vcvt.s32.f32 %v371_v9  ;;  %v548_v17 = vld [vmem:[%s2617_s10 + $0x78] sm:$0xff]  ;;  %v549_v18 = vld [vmem:[%s2617_s10 + $0x80] sm:$0xff]  ;;  %v550_v19 = vld [vmem:[%s2617_s10 + $0x88] sm:$0xff] }
  0x54   : > { %v752_v49 = vmul.f32 %v656_v38, %v560_v20  ;;  %v753_v50 = vmul.f32 %v657_v39, %v561_v21  ;;  %v754_v51 = vmul.f32 %v658_v40, %v562_v22  ;;  %v353_v55 = vunpack.c.2.s8 %v2680_v45  ;;  %v833_v26 = vld [vmem:[%s2625_s27 + $0x60] sm:$0xff] }
  0x55   : > { %v2700_v56 = vadd.f32 %v845_v27, %v749_v42  ;;  %v2702_v57 = vadd.f32 %v846_v28, %v750_v43  ;;  %v2704_v58 = vadd.f32 %v847_v29, %v751_v44  ;;  %v354_v59 = vunpack.c.2.s8 %v2683_v46  ;;  %v834_v27 = vld [vmem:[%s2625_s27 + $0x68] sm:$0xff]  ;;  %v835_v28 = vld [vmem:[%s2625_s27 + $0x70] sm:$0xff]  ;;  %v836_v43 = vld [vmem:[%s2625_s27 + $0x78] sm:$0xff] }
  0x56   : > { %v2707_v60 = vadd.f32 %v848_v34, %v752_v49  ;;  %v2709_v61 = vadd.f32 %v849_v35, %v753_v50  ;;  %v2711_v62 = vadd.f32 %v850_v36, %v754_v51  ;;  %v355_v63 = vunpack.c.2.s8 %v2686_v47  ;;  %v837_v44 = vld [vmem:[%s2625_s27 + $0x80] sm:$0xff]  ;;  %v838_v49 = vld [vmem:[%s2625_s27 + $0x88] sm:$0xff] }
  0x57   : > { %v1041_v6 = vadd.f32 %v2702_v57, %v2700_v56  ;;  %v356_v7 = vunpack.c.2.s8 %v2691_v52  ;;  %v357_v8 = vunpack.c.2.s8 %v2694_v53  ;;  %v358_v9 = vunpack.c.2.s8 %v2697_v54 }
  0x58   : > { %4761 = vst [vmem:[#allocation13_spill] sm:$0xff] %v2709_v61  ;;  %v449_v13 = vcvt.s32.f32 %v353_v55  ;;  %v450_v14 = vcvt.s32.f32 %v354_v59  ;;  %v451_v15 = vcvt.s32.f32 %v355_v63  ;;  %v341_v20 = vunpack.c.0.s8 %v2680_v45 }
  0x59   : > { %4762 = vst [vmem:[#allocation14_spill] sm:$0xff] %v2711_v62  ;;  %v1042_v21 = vadd.f32 %v1041_v6, %v2704_v58  ;;  %v452_v22 = vcvt.s32.f32 %v356_v7  ;;  %v453_v24 = vcvt.s32.f32 %v357_v8  ;;  %v454_v25 = vcvt.s32.f32 %v358_v9 }
  0x5a   : > { %v641_v29 = vmul.f32 1.1111112, %v449_v13  ;;  %v642_v31 = vmul.f32 1.1111112, %v450_v14  ;;  %v643_v32 = vmul.f32 1.1111112, %v451_v15  ;;  %v342_v33 = vunpack.c.0.s8 %v2683_v46 }
  0x5b   : > { %v1043_v34 = vadd.f32 %v1042_v21, %v2707_v60  ;;  %v644_v35 = vmul.f32 1.1111112, %v452_v22  ;;  %v645_v36 = vmul.f32 1.1111112, %v453_v24  ;;  %v646_v38 = vmul.f32 1.1111112, %v454_v25 }
  0x5c   : > { %v737_v39 = vmul.f32 %v641_v29, %v545_v10  ;;  %v738_v40 = vmul.f32 %v642_v31, %v546_v11  ;;  %v739_v42 = vmul.f32 %v643_v32, %v547_v12  ;;  %v343_v50 = vunpack.c.0.s8 %v2686_v47  ;;  %v534_v21 = vld [vmem:[%s2617_s10 + $0x8] sm:$0xff] }
  0x5d   : > { %v1044_v51 = vadd.f32 %v1043_v34, %v2709_v61  ;;  %v740_v55 = vmul.f32 %v644_v35, %v548_v17  ;;  %v741_v59 = vmul.f32 %v645_v36, %v549_v18  ;;  %v742_v63 = vmul.f32 %v646_v38, %v550_v19  ;;  %v533_v19 = vld [vmem:[%s2617_s10] sm:$0xff]  ;;  %v538_v34 = vld [vmem:[%s2617_s10 + $0x28] sm:$0xff] }
  0x5e   : > { %v2737_v6 = vadd.f32 %v833_v26, %v737_v39  ;;  %v2739_v7 = vadd.f32 %v834_v27, %v738_v40  ;;  %v2741_v8 = vadd.f32 %v835_v28, %v739_v42  ;;  %v344_v9 = vunpack.c.0.s8 %v2691_v52  ;;  %v535_v26 = vld [vmem:[%s2617_s10 + $0x10] sm:$0xff]  ;;  %v536_v27 = vld [vmem:[%s2617_s10 + $0x18] sm:$0xff]  ;;  %v537_v28 = vld [vmem:[%s2617_s10 + $0x20] sm:$0xff] }
  0x5f   : > { %v1045_v10 = vadd.f32 %v1044_v51, %v2711_v62  ;;  %v2745_v11 = vadd.f32 %v836_v43, %v740_v55  ;;  %v2747_v12 = vadd.f32 %v837_v44, %v741_v59  ;;  %v2749_v13 = vadd.f32 %v838_v49, %v742_v63  ;;  %v821_v36 = vld [vmem:[%s2625_s27] sm:$0xff]  ;;  %v824_v51 = vld [vmem:[%s2625_s27 + $0x18] sm:$0xff] }
  0x60   : > { %4763 = vst [vmem:[#allocation15_spill] sm:$0xff] %v2737_v6  ;;  %v1027_v14 = vadd.f32 %v2739_v7, %v2737_v6  ;;  %v345_v15 = vunpack.c.0.s8 %v2694_v53  ;;  %v346_v17 = vunpack.c.0.s8 %v2697_v54  ;;  %v437_v18 = vcvt.s32.f32 %v341_v20  ;;  %v873_v6 = vld [vmem:[%s2625_s27 + $0x1a0] sm:$0xff] }
  0x61   : > { %4764 = vst [vmem:[#allocation16_spill] sm:$0xff] %v2739_v7  ;;  %1046 = vadd.xlane.f32.xlu2 %v1045_v10  ;;  %v438_v22 = vcvt.s32.f32 %v342_v33  ;;  %v439_v24 = vcvt.s32.f32 %v343_v50  ;;  %v440_v25 = vcvt.s32.f32 %v344_v9  ;;  %v468_v29 = vcvt.s32.f32 %v372_v16  ;;  %v822_v33 = vld [vmem:[%s2625_s27 + $0x8] sm:$0xff]  ;;  %v823_v50 = vld [vmem:[%s2625_s27 + $0x10] sm:$0xff]  ;;  %v825_v9 = vld [vmem:[%s2625_s27 + $0x20] sm:$0xff] }
  0x62   : > { %4765 = vst [vmem:[#allocation17_spill] sm:$0xff] %v2741_v8  ;;  %v1028_v31 = vadd.f32 %v1027_v14, %v2741_v8  ;;  %v441_v32 = vcvt.s32.f32 %v345_v15  ;;  %v442_v20 = vcvt.s32.f32 %v346_v17  ;;  %v629_v35 = vmul.f32 1.1111112, %v437_v18  ;;  %v826_v10 = vld [vmem:[%s2625_s27 + $0x28] sm:$0xff] }
  0x63   : > { %4766 = vst [vmem:[#allocation18_spill] sm:$0xff] %v2745_v11  ;;  %v630_v38 = vmul.f32 1.1111112, %v438_v22  ;;  %v631_v39 = vmul.f32 1.1111112, %v439_v24  ;;  %v469_v42 = vcvt.s32.f32 %v373_v23  ;;  %v470_v23 = vcvt.s32.f32 %v374_v30  ;;  %v565_v22 = vld [vmem:[%s2617_s10 + $0x100] sm:$0xff] }
  0x64   : > { %4767 = vst [vmem:[#allocation19_spill] sm:$0xff] %v2747_v12  ;;  %v632_v40 = vmul.f32 1.1111112, %v440_v25  ;;  %v1029_v16 = vadd.f32 %v1028_v31, %v2745_v11  ;;  %v633_v43 = vmul.f32 1.1111112, %v441_v32  ;;  %v725_v49 = vmul.f32 %v629_v35, %v533_v19  ;;  %v563_v19 = vld [vmem:[%s2617_s10 + $0xf0] sm:$0xff] }
  0x65   : > { %4768 = vst [vmem:[#allocation20_spill] sm:$0xff] %v2749_v13  ;;  %v634_v44 = vmul.f32 1.1111112, %v442_v20  ;;  %v726_v55 = vmul.f32 %v630_v38, %v534_v21  ;;  %v727_v59 = vmul.f32 %v631_v39, %v535_v26  ;;  %v564_v21 = vld [vmem:[%s2617_s10 + $0xf8] sm:$0xff]  ;;  %v471_v30 = vcvt.s32.f32 %v375_v37  ;;  %v853_v38 = vld [vmem:[%s2625_s27 + $0x100] sm:$0xff] }
  0x66   : > { %v728_v63 = vmul.f32 %v632_v40, %v536_v27  ;;  %v1030_v14 = vadd.f32 %v1029_v16, %v2747_v12  ;;  %v729_v15 = vmul.f32 %v633_v43, %v537_v28  ;;  %v2776_v18 = vadd.f32 %v821_v36, %v725_v49  ;;  %v566_v27 = vld [vmem:[%s2617_s10 + $0x108] sm:$0xff]  ;;  %v567_v28 = vld [vmem:[%s2617_s10 + $0x110] sm:$0xff]  ;;  %v568_v31 = vld [vmem:[%s2617_s10 + $0x118] sm:$0xff] }
  0x67   : > { %v730_v17 = vmul.f32 %v634_v44, %v538_v34  ;;  %v2781_v24 = vadd.f32 %v822_v33, %v726_v55  ;;  %v2783_v25 = vadd.f32 %v823_v50, %v727_v59  ;;  %v472_v35 = vcvt.s32.f32 %v376_v41  ;;  %v851_v36 = vld [vmem:[%s2625_s27 + $0xf0] sm:$0xff]  ;;  %v852_v33 = vld [vmem:[%s2625_s27 + $0xf8] sm:$0xff] }
  0x68   : > { %v2785_v26 = vadd.f32 %v824_v51, %v728_v63  ;;  %v1031_v32 = vadd.f32 %v1030_v14, %v2749_v13  ;;  %v2793_v20 = vadd.f32 %v825_v9, %v729_v15  ;;  %v659_v39 = vmul.f32 1.1111112, %v2688_v48  ;;  %v854_v63 = vld [vmem:[%s2625_s27 + $0x108] sm:$0xff]  ;;  %v855_v9 = vld [vmem:[%s2625_s27 + $0x110] sm:$0xff] }
  0x69   : > { %v2795_v34 = vadd.f32 %v826_v10, %v730_v17  ;;  %v1013_v37 = vadd.f32 %v2781_v24, %v2776_v18  ;;  %v660_v40 = vmul.f32 1.1111112, %v468_v29  ;;  %v661_v16 = vmul.f32 1.1111112, %v469_v42  ;;  %v856_v10 = vld [vmem:[%s2625_s27 + $0x118] sm:$0xff]  ;;  %v870_v13 = vld [vmem:[%s2625_s27 + $0x188] sm:$0xff] }
  0x6a   : > { %1032 = vadd.xlane.f32.xlu1 %v1031_v32  ;;  %v662_v43 = vmul.f32 1.1111112, %v470_v23  ;;  %v663_v44 = vmul.f32 1.1111112, %v471_v30  ;;  %v664_v49 = vmul.f32 1.1111112, %v472_v35  ;;  %v359_v50 = vunpack.c.3.s8 %v2680_v45 }
  0x6b   : > { %v1014_v41 = vadd.f32 %v1013_v37, %v2783_v25  ;;  %v755_v51 = vmul.f32 %v659_v39, %v563_v19  ;;  %v756_v55 = vmul.f32 %v660_v40, %v564_v21  ;;  %v757_v59 = vmul.f32 %v661_v16, %v565_v22  ;;  %v552_v40 = vld [vmem:[%s2617_s10 + $0x98] sm:$0xff]  ;;  %v553_v16 = vld [vmem:[%s2617_s10 + $0xa0] sm:$0xff]  ;;  %v871_v12 = vld [vmem:[%s2625_s27 + $0x190] sm:$0xff] }
  0x6c   : > { %v758_v14 = vmul.f32 %v662_v43, %v566_v27  ;;  %v759_v15 = vmul.f32 %v663_v44, %v567_v28  ;;  %v760_v48 = vmul.f32 %v664_v49, %v568_v31  ;;  %v360_v29 = vunpack.c.3.s8 %v2683_v46  ;;  %v554_v43 = vld [vmem:[%s2617_s10 + $0xa8] sm:$0xff] }
  0x6d   : > { %v1015_v42 = vadd.f32 %v1014_v41, %v2785_v26  ;;  %v2812_v23 = vadd.f32 %v851_v36, %v755_v51  ;;  %v2814_v17 = vadd.f32 %v852_v33, %v756_v55  ;;  %v2816_v19 = vadd.f32 %v853_v38, %v757_v59  ;;  %v551_v36 = vld [vmem:[%s2617_s10 + $0x90] sm:$0xff]  ;;  %v556_v59 = vld [vmem:[%s2617_s10 + $0xb8] sm:$0xff] }
  0x6e   : > { %v2818_v21 = vadd.f32 %v854_v63, %v758_v14  ;;  %v2820_v22 = vadd.f32 %v855_v9, %v759_v15  ;;  %v2822_v30 = vadd.f32 %v856_v10, %v760_v48  ;;  %v361_v27 = vunpack.c.3.s8 %v2686_v47  ;;  %v555_v55 = vld [vmem:[%s2617_s10 + $0xb0] sm:$0xff] }
  0x6f   : > { %4769 = vst [vmem:[#allocation21_spill] sm:$0xff] %v2812_v23  ;;  %v1016_v28 = vadd.f32 %v1015_v42, %v2793_v20  ;;  %v1048_v31 = vadd.f32 %v2814_v17, %v2812_v23  ;;  %v362_v32 = vunpack.c.3.s8 %v2691_v52  ;;  %v363_v35 = vunpack.c.3.s8 %v2694_v53  ;;  %v839_v63 = vld [vmem:[%s2625_s27 + $0x90] sm:$0xff]  ;;  %v840_v42 = vld [vmem:[%s2625_s27 + $0x98] sm:$0xff]  ;;  %v2901_v23 = vld [vmem:[%s2635_s9 + $0x88] sm:$0xff] }
  0x70   : > { %4770 = vst [vmem:[#allocation22_spill] sm:$0xff] %v2814_v17  ;;  %v364_v33 = vunpack.c.3.s8 %v2697_v54  ;;  %v455_v38 = vcvt.s32.f32 %v359_v50  ;;  %v456_v37 = vcvt.s32.f32 %v360_v29  ;;  %v457_v39 = vcvt.s32.f32 %v361_v27  ;;  %v841_v27 = vld [vmem:[%s2625_s27 + $0xa0] sm:$0xff]  ;;  %v843_v17 = vld [vmem:[%s2625_s27 + $0xb0] sm:$0xff] }
  0x71   : > { %4771 = vst [vmem:[#allocation23_spill] sm:$0xff] %v2816_v19  ;;  %v1017_v44 = vadd.f32 %v1016_v28, %v2795_v34  ;;  %v1049_v49 = vadd.f32 %v1048_v31, %v2816_v19  ;;  %v458_v41 = vcvt.s32.f32 %v362_v32  ;;  %v459_v51 = vcvt.s32.f32 %v363_v35 }
  0x72   : > { %4772 = vst [vmem:[#allocation24_spill] sm:$0xff] %v2818_v21  ;;  %v460_v9 = vcvt.s32.f32 %v364_v33  ;;  %v647_v50 = vmul.f32 1.1111112, %v455_v38  ;;  %v648_v10 = vmul.f32 1.1111112, %v456_v37  ;;  %v347_v28 = vunpack.c.1.s8 %v2680_v45  ;;  %v842_v33 = vld [vmem:[%s2625_s27 + $0xa8] sm:$0xff] }
  0x73   : > { %4773 = vst [vmem:[#allocation25_spill] sm:$0xff] %v2820_v22  ;;  %v649_v14 = vmul.f32 1.1111112, %v457_v39  ;;  %1018 = vadd.xlane.f32.xlu0 %v1017_v44  ;;  %v1050_v15 = vadd.f32 %v1049_v49, %v2818_v21  ;;  %v650_v48 = vmul.f32 1.1111112, %v458_v41  ;;  %v844_v44 = vld [vmem:[%s2625_s27 + $0xb8] sm:$0xff]  ;;  %v348_v49 = vunpack.c.1.s8 %v2683_v46 }
  0x74   : > { %4774 = vst [vmem:[#allocation26_spill] sm:$0xff] %v2822_v30  ;;  %v651_v29 = vmul.f32 1.1111112, %v459_v51  ;;  %v652_v31 = vmul.f32 1.1111112, %v460_v9  ;;  %v743_v32 = vmul.f32 %v647_v50, %v551_v36  ;;  %v744_v35 = vmul.f32 %v648_v10, %v552_v40  ;;  %v2862_v46 = vld [vmem:[%s2635_s9 + $0x60] sm:$0xff] }
  0x75   : > { %v745_v19 = vmul.f32 %v649_v14, %v553_v16  ;;  %v1051_v38 = vadd.f32 %v1050_v15, %v2820_v22  ;;  %v746_v37 = vmul.f32 %v650_v48, %v554_v43  ;;  %v351_v9 = vunpack.c.1.s8 %v2694_v53  ;;  %v539_v50 = vld [vmem:[%s2617_s10 + $0x30] sm:$0xff]  ;;  %v541_v10 = vld [vmem:[%s2617_s10 + $0x40] sm:$0xff] }
  0x76   : > { %v747_v39 = vmul.f32 %v651_v29, %v555_v55  ;;  %v748_v41 = vmul.f32 %v652_v31, %v556_v59  ;;  %v2849_v51 = vadd.f32 %v839_v63, %v743_v32  ;;  %v2851_v45 = vadd.f32 %v840_v42, %v744_v35  ;;  %v542_v29 = vld [vmem:[%s2617_s10 + $0x48] sm:$0xff]  ;;  %v543_v42 = vld [vmem:[%s2617_s10 + $0x50] sm:$0xff]  ;;  %v544_v32 = vld [vmem:[%s2617_s10 + $0x58] sm:$0xff] }
  0x77   : > { %v2853_v36 = vadd.f32 %v841_v27, %v745_v19  ;;  %v1052_v40 = vadd.f32 %v1051_v38, %v2822_v30  ;;  %v2856_v16 = vadd.f32 %v842_v33, %v746_v37  ;;  %v349_v55 = vunpack.c.1.s8 %v2686_v47  ;;  %v2877_v27 = vld [vmem:[%s2635_s9 + $0x68] sm:$0xff]  ;;  %v827_v35 = vld [vmem:[%s2625_s27 + $0x30] sm:$0xff] }
  0x78   : > { %4775 = vst [vmem:[#allocation27_spill] sm:$0xff] %v2849_v51  ;;  %v2858_v43 = vadd.f32 %v843_v17, %v747_v39  ;;  %v2864_v59 = vadd.f32 %v844_v44, %v748_v41  ;;  %v1034_v63 = vadd.f32 %v2851_v45, %v2849_v51  ;;  %v350_v19 = vunpack.c.1.s8 %v2691_v52  ;;  %v540_v17 = vld [vmem:[%s2617_s10 + $0x38] sm:$0xff]  ;;  %v2883_v33 = vld [vmem:[%s2635_s9 + $0x70] sm:$0xff] }
  0x79   : > { %4776 = vst [vmem:[#allocation28_spill] sm:$0xff] %v2851_v45  ;;  %1053 = vadd.xlane.f32.xlu2 %v1052_v40  ;;  %v352_v47 = vunpack.c.1.s8 %v2697_v54  ;;  %v443_v14 = vcvt.s32.f32 %v347_v28  ;;  %v444_v15 = vcvt.s32.f32 %v348_v49  ;;  %v445_v48 = vcvt.s32.f32 %v349_v55  ;;  %v828_v40 = vld [vmem:[%s2625_s27 + $0x38] sm:$0xff]  ;;  %v829_v55 = vld [vmem:[%s2625_s27 + $0x40] sm:$0xff]  ;;  %v831_v21 = vld [vmem:[%s2625_s27 + $0x50] sm:$0xff] }
  0x7a   : > { %4777 = vst [vmem:[#allocation29_spill] sm:$0xff] %v2853_v36  ;;  %v1035_v52 = vadd.f32 %v1034_v63, %v2853_v36  ;;  %v446_v53 = vcvt.s32.f32 %v350_v19  ;;  %v447_v31 = vcvt.s32.f32 %v351_v9  ;;  %v389_v54 = vunpack.c.0.s8 %v2862_v46 }
  0x7b   : > { %4778 = vst [vmem:[#allocation30_spill] sm:$0xff] %v2856_v16  ;;  %v448_v28 = vcvt.s32.f32 %v352_v47  ;;  %v635_v38 = vmul.f32 1.1111112, %v443_v14  ;;  %v636_v37 = vmul.f32 1.1111112, %v444_v15  ;;  %v390_v63 = vunpack.c.0.s8 %v2877_v27  ;;  %v830_v47 = vld [vmem:[%s2625_s27 + $0x48] sm:$0xff] }
  0x7c   : > { %4779 = vst [vmem:[#allocation31_spill] sm:$0xff] %v2858_v43  ;;  %v637_v39 = vmul.f32 1.1111112, %v445_v48  ;;  %v1036_v44 = vadd.f32 %v1035_v52, %v2856_v16  ;;  %v638_v49 = vmul.f32 1.1111112, %v446_v53  ;;  %v2893_v14 = vld [vmem:[%s2635_s9 + $0x78] sm:$0xff]  ;;  %v383_v11 = vunpack.c.3.s8 %v2638_v0 }
  0x7d   : > { %4780 = vst [vmem:[#allocation32_spill] sm:$0xff] %v2864_v59  ;;  %v639_v41 = vmul.f32 1.1111112, %v447_v31  ;;  %v640_v19 = vmul.f32 1.1111112, %v448_v28  ;;  %v731_v9 = vmul.f32 %v635_v38, %v539_v50  ;;  %v732_v30 = vmul.f32 %v636_v37, %v540_v17  ;;  %v832_v53 = vld [vmem:[%s2625_s27 + $0x58] sm:$0xff] }
  0x7e   : > { %v733_v22 = vmul.f32 %v637_v39, %v541_v10  ;;  %v1037_v15 = vadd.f32 %v1036_v44, %v2858_v43  ;;  %v734_v48 = vmul.f32 %v638_v49, %v542_v29  ;;  %v2898_v31 = vld [vmem:[%s2635_s9 + $0x80] sm:$0xff]  ;;  %v391_v50 = vunpack.c.0.s8 %v2883_v33  ;;  %v582_v49 = vld [vmem:[%s2617_s10 + $0x188] sm:$0xff]  ;;  %v872_v43 = vld [vmem:[%s2625_s27 + $0x198] sm:$0xff] }
  0x7f   : > { %v735_v52 = vmul.f32 %v639_v41, %v543_v42  ;;  %v736_v17 = vmul.f32 %v640_v19, %v544_v32  ;;  %v2904_v10 = vadd.f32 %v827_v35, %v731_v9  ;;  %v2906_v28 = vadd.f32 %v828_v40, %v732_v30  ;;  %v581_v35 = vld [vmem:[%s2617_s10 + $0x180] sm:$0xff]  ;;  %v583_v41 = vld [vmem:[%s2617_s10 + $0x190] sm:$0xff]  ;;  %v584_v9 = vld [vmem:[%s2617_s10 + $0x198] sm:$0xff] }
  0x80   : > { %v2908_v38 = vadd.f32 %v829_v55, %v733_v22  ;;  %v1038_v29 = vadd.f32 %v1037_v15, %v2864_v59  ;;  %v2911_v42 = vadd.f32 %v830_v47, %v734_v48  ;;  %v392_v39 = vunpack.c.0.s8 %v2893_v14  ;;  %v585_v47 = vld [vmem:[%s2617_s10 + $0x1a0] sm:$0xff]  ;;  %v586_v15 = vld [vmem:[%s2617_s10 + $0x1a8] sm:$0xff] }
  0x81   : > { %4781 = vst [vmem:[#allocation33_spill] sm:$0xff] %v2904_v10  ;;  %v2913_v37 = vadd.f32 %v831_v21, %v735_v52  ;;  %v2916_v44 = vadd.f32 %v832_v53, %v736_v17  ;;  %v1020_v32 = vadd.f32 %v2906_v28, %v2904_v10  ;;  %v393_v30 = vunpack.c.0.s8 %v2898_v31  ;;  %v869_v17 = vld [vmem:[%s2625_s27 + $0x180] sm:$0xff]  ;;  %v874_v16 = vld [vmem:[%s2625_s27 + $0x1a8] sm:$0xff] }
  0x82   : > { %4782 = vst [vmem:[#allocation34_spill] sm:$0xff] %v2906_v28  ;;  %v394_v22 = vunpack.c.0.s8 %v2901_v23  ;;  %1039 = vadd.xlane.f32.xlu1 %v1038_v29  ;;  %v485_v21 = vcvt.s32.f32 %v389_v54  ;;  %v486_v40 = vcvt.s32.f32 %v390_v63  ;;  %v487_v55 = vcvt.s32.f32 %v391_v50 }
  0x83   : > { %4783 = vst [vmem:[#allocation35_spill] sm:$0xff] %v2913_v37  ;;  %v488_v19 = vcvt.s32.f32 %v392_v39  ;;  %v1021_v48 = vadd.f32 %v1020_v32, %v2908_v38  ;;  %v489_v52 = vcvt.s32.f32 %v393_v30  ;;  %v384_v50 = vunpack.c.3.s8 %v2641_v1 }
  0x84   : > { %4784 = vst [vmem:[#allocation36_spill] sm:$0xff] %v2916_v44  ;;  %v490_v53 = vcvt.s32.f32 %v394_v22  ;;  %v677_v29 = vmul.f32 1.1111112, %v485_v21  ;;  %v678_v54 = vmul.f32 1.1111112, %v486_v40  ;;  %v385_v36 = vunpack.c.3.s8 %v2644_v2 }
  0x85   : > { %v679_v63 = vmul.f32 1.1111112, %v487_v55  ;;  %v1022_v39 = vadd.f32 %v1021_v48, %v2911_v42  ;;  %v680_v59 = vmul.f32 1.1111112, %v488_v19  ;;  %v681_v8 = vmul.f32 1.1111112, %v489_v52 }
  0x86   : > { %v682_v32 = vmul.f32 1.1111112, %v490_v53  ;;  %v773_v30 = vmul.f32 %v677_v29, %v581_v35  ;;  %v774_v22 = vmul.f32 %v678_v54, %v582_v49  ;;  %v386_v35 = vunpack.c.3.s8 %v2647_v3  ;;  %v579_v53 = vld [vmem:[%s2617_s10 + $0x170] sm:$0xff] }
  0x87   : > { %v775_v7 = vmul.f32 %v679_v63, %v583_v41  ;;  %v1023_v62 = vadd.f32 %v1022_v39, %v2913_v37  ;;  %v776_v21 = vmul.f32 %v680_v59, %v584_v9  ;;  %v777_v40 = vmul.f32 %v681_v8, %v585_v47  ;;  %v575_v9 = vld [vmem:[%s2617_s10 + $0x150] sm:$0xff] }
  0x88   : > { %v778_v55 = vmul.f32 %v682_v32, %v586_v15  ;;  %v2940_v61 = vadd.f32 %v869_v17, %v773_v30  ;;  %v2942_v19 = vadd.f32 %v870_v13, %v774_v22  ;;  %v387_v13 = vunpack.c.3.s8 %v2650_v4  ;;  %v577_v15 = vld [vmem:[%s2617_s10 + $0x160] sm:$0xff]  ;;  %v863_v32 = vld [vmem:[%s2625_s27 + $0x150] sm:$0xff]  ;;  %v864_v30 = vld [vmem:[%s2625_s27 + $0x158] sm:$0xff] }
  0x89   : > { %v2944_v48 = vadd.f32 %v871_v12, %v775_v7  ;;  %v1024_v49 = vadd.f32 %v1023_v62, %v2916_v44  ;;  %v2948_v41 = vadd.f32 %v872_v43, %v776_v21  ;;  %v2950_v52 = vadd.f32 %v873_v6, %v777_v40  ;;  %v576_v62 = vld [vmem:[%s2617_s10 + $0x158] sm:$0xff] }
  0x8a   : > { %4785 = vst [vmem:[#allocation37_spill] sm:$0xff] %v2940_v61  ;;  %v2952_v59 = vadd.f32 %v874_v16, %v778_v55  ;;  %v1069_v8 = vadd.f32 %v2942_v19, %v2940_v61  ;;  %v388_v7 = vunpack.c.3.s8 %v2653_v5  ;;  %v479_v12 = vcvt.s32.f32 %v383_v11  ;;  %v578_v16 = vld [vmem:[%s2617_s10 + $0x168] sm:$0xff]  ;;  %v580_v11 = vld [vmem:[%s2617_s10 + $0x178] sm:$0xff] }
  0x8b   : > { %4786 = vst [vmem:[#allocation38_spill] sm:$0xff] %v2942_v19  ;;  %1025 = vadd.xlane.f32.xlu0 %v1024_v49  ;;  %v480_v43 = vcvt.s32.f32 %v384_v50  ;;  %v481_v47 = vcvt.s32.f32 %v385_v36  ;;  %v482_v6 = vcvt.s32.f32 %v386_v35  ;;  %v377_v17 = vunpack.c.2.s8 %v2638_v0  ;;  %v865_v49 = vld [vmem:[%s2625_s27 + $0x160] sm:$0xff]  ;;  %v868_v19 = vld [vmem:[%s2625_s27 + $0x178] sm:$0xff] }
  0x8c   : > { %4787 = vst [vmem:[#allocation39_spill] sm:$0xff] %v2944_v48  ;;  %v1070_v29 = vadd.f32 %v1069_v8, %v2944_v48  ;;  %v483_v54 = vcvt.s32.f32 %v387_v13  ;;  %v484_v63 = vcvt.s32.f32 %v388_v7  ;;  %v671_v39 = vmul.f32 1.1111112, %v479_v12  ;;  %v866_v8 = vld [vmem:[%s2625_s27 + $0x168] sm:$0xff]  ;;  %v867_v12 = vld [vmem:[%s2625_s27 + $0x170] sm:$0xff] }
  0x8d   : > { %4788 = vst [vmem:[#allocation40_spill] sm:$0xff] %v2948_v41  ;;  %v672_v50 = vmul.f32 1.1111112, %v480_v43  ;;  %v673_v36 = vmul.f32 1.1111112, %v481_v47  ;;  %v378_v21 = vunpack.c.2.s8 %v2641_v1  ;;  %v379_v61 = vunpack.c.2.s8 %v2644_v2 }
  0x8e   : > { %4789 = vst [vmem:[#allocation41_spill] sm:$0xff] %v2950_v52  ;;  %v674_v22 = vmul.f32 1.1111112, %v482_v6  ;;  %v1071_v40 = vadd.f32 %v1070_v29, %v2948_v41  ;;  %v675_v0 = vmul.f32 1.1111112, %v483_v54  ;;  %v767_v35 = vmul.f32 %v671_v39, %v575_v9 }
  0x8f   : > { %4790 = vst [vmem:[#allocation42_spill] sm:$0xff] %v2952_v59  ;;  %v676_v55 = vmul.f32 1.1111112, %v484_v63  ;;  %v768_v13 = vmul.f32 %v672_v50, %v576_v62  ;;  %v769_v7 = vmul.f32 %v673_v36, %v577_v15  ;;  %v380_v15 = vunpack.c.2.s8 %v2647_v3  ;;  %v569_v3 = vld [vmem:[%s2617_s10 + $0x120] sm:$0xff] }
  0x90   : > { %v770_v48 = vmul.f32 %v674_v22, %v578_v16  ;;  %v1072_v43 = vadd.f32 %v1071_v40, %v2950_v52  ;;  %v771_v47 = vmul.f32 %v675_v0, %v579_v53  ;;  %v2976_v6 = vadd.f32 %v863_v32, %v767_v35  ;;  %v570_v32 = vld [vmem:[%s2617_s10 + $0x128] sm:$0xff]  ;;  %v573_v40 = vld [vmem:[%s2617_s10 + $0x140] sm:$0xff] }
  0x91   : > { %v772_v1 = vmul.f32 %v676_v55, %v580_v11  ;;  %v2978_v29 = vadd.f32 %v864_v30, %v768_v13  ;;  %v2980_v9 = vadd.f32 %v865_v49, %v769_v7  ;;  %v381_v54 = vunpack.c.2.s8 %v2650_v4  ;;  %v571_v30 = vld [vmem:[%s2617_s10 + $0x130] sm:$0xff]  ;;  %v857_v0 = vld [vmem:[%s2625_s27 + $0x120] sm:$0xff]  ;;  %v858_v49 = vld [vmem:[%s2625_s27 + $0x128] sm:$0xff] }
  0x92   : > { %4791 = vst [vmem:[#allocation43_spill] sm:$0xff] %v2976_v6  ;;  %v2982_v62 = vadd.f32 %v866_v8, %v770_v48  ;;  %v1073_v2 = vadd.f32 %v1072_v43, %v2952_v59  ;;  %v2986_v16 = vadd.f32 %v867_v12, %v771_v47  ;;  %v382_v11 = vunpack.c.2.s8 %v2653_v5 }
  0x93   : > { %4792 = vst [vmem:[#allocation44_spill] sm:$0xff] %v2978_v29  ;;  %v2988_v53 = vadd.f32 %v868_v19, %v772_v1  ;;  %v1062_v63 = vadd.f32 %v2978_v29, %v2976_v6  ;;  %v473_v48 = vcvt.s32.f32 %v377_v17  ;;  %v474_v39 = vcvt.s32.f32 %v378_v21  ;;  %v572_v19 = vld [vmem:[%s2617_s10 + $0x138] sm:$0xff]  ;;  %v574_v21 = vld [vmem:[%s2617_s10 + $0x148] sm:$0xff] }
  0x94   : > { %4793 = vst [vmem:[#allocation45_spill] sm:$0xff] %v2980_v9  ;;  %1074 = vadd.xlane.f32.xlu2 %v1073_v2  ;;  %v475_v50 = vcvt.s32.f32 %v379_v61  ;;  %v476_v36 = vcvt.s32.f32 %v380_v15  ;;  %v477_v22 = vcvt.s32.f32 %v381_v54  ;;  %v407_v4 = vunpack.c.3.s8 %v2862_v46  ;;  %v859_v15 = vld [vmem:[%s2625_s27 + $0x130] sm:$0xff]  ;;  %v860_v2 = vld [vmem:[%s2625_s27 + $0x138] sm:$0xff]  ;;  %v861_v54 = vld [vmem:[%s2625_s27 + $0x140] sm:$0xff] }
  0x95   : > { %4794 = vst [vmem:[#allocation46_spill] sm:$0xff] %v2982_v62  ;;  %v1063_v5 = vadd.f32 %v1062_v63, %v2980_v9  ;;  %v478_v17 = vcvt.s32.f32 %v382_v11  ;;  %v665_v55 = vmul.f32 1.1111112, %v473_v48  ;;  %v666_v35 = vmul.f32 1.1111112, %v474_v39  ;;  %v862_v48 = vld [vmem:[%s2625_s27 + $0x148] sm:$0xff] }
  0x96   : > { %4795 = vst [vmem:[#allocation47_spill] sm:$0xff] %v2986_v16  ;;  %v667_v8 = vmul.f32 1.1111112, %v475_v50  ;;  %v668_v61 = vmul.f32 1.1111112, %v476_v36  ;;  %v408_v7 = vunpack.c.3.s8 %v2877_v27  ;;  %v409_v39 = vunpack.c.3.s8 %v2883_v33 }
  0x97   : > { %4796 = vst [vmem:[#allocation48_spill] sm:$0xff] %v2988_v53  ;;  %v669_v13 = vmul.f32 1.1111112, %v477_v22  ;;  %v1064_v12 = vadd.f32 %v1063_v5, %v2982_v62  ;;  %v670_v43 = vmul.f32 1.1111112, %v478_v17  ;;  %v761_v47 = vmul.f32 %v665_v55, %v569_v3 }
  0x98   : > { %v762_v1 = vmul.f32 %v666_v35, %v570_v32  ;;  %v763_v63 = vmul.f32 %v667_v8, %v571_v30  ;;  %v764_v11 = vmul.f32 %v668_v61, %v572_v19  ;;  %v410_v19 = vunpack.c.3.s8 %v2893_v14  ;;  %v599_v8 = vld [vmem:[%s2617_s10 + $0x210] sm:$0xff]  ;;  %v600_v61 = vld [vmem:[%s2617_s10 + $0x218] sm:$0xff] }
  0x99   : > { %v765_v59 = vmul.f32 %v669_v13, %v573_v40  ;;  %v1065_v50 = vadd.f32 %v1064_v12, %v2986_v16  ;;  %v766_v36 = vmul.f32 %v670_v43, %v574_v21  ;;  %v3012_v22 = vadd.f32 %v857_v0, %v761_v47  ;;  %v601_v13 = vld [vmem:[%s2617_s10 + $0x220] sm:$0xff] }
  0x9a   : > { %v3014_v5 = vadd.f32 %v858_v49, %v762_v1  ;;  %v3016_v3 = vadd.f32 %v859_v15, %v763_v63  ;;  %v3018_v32 = vadd.f32 %v860_v2, %v764_v11  ;;  %v411_v21 = vunpack.c.3.s8 %v2898_v31  ;;  %v602_v1 = vld [vmem:[%s2617_s10 + $0x228] sm:$0xff]  ;;  %v603_v15 = vld [vmem:[%s2617_s10 + $0x230] sm:$0xff] }
  0x9b   : > { %4797 = vst [vmem:[#allocation49_spill] sm:$0xff] %v3012_v22  ;;  %v3020_v30 = vadd.f32 %v861_v54, %v765_v59  ;;  %v1066_v40 = vadd.f32 %v1065_v50, %v2988_v53  ;;  %v3024_v17 = vadd.f32 %v862_v48, %v766_v36  ;;  %v412_v55 = vunpack.c.3.s8 %v2901_v23  ;;  %v887_v2 = vld [vmem:[%s2625_s27 + $0x210] sm:$0xff]  ;;  %v888_v54 = vld [vmem:[%s2625_s27 + $0x218] sm:$0xff] }
  0x9c   : > { %4798 = vst [vmem:[#allocation50_spill] sm:$0xff] %v3014_v5  ;;  %v1055_v0 = vadd.f32 %v3014_v5, %v3012_v22  ;;  %v503_v35 = vcvt.s32.f32 %v407_v4  ;;  %v504_v59 = vcvt.s32.f32 %v408_v7  ;;  %v505_v49 = vcvt.s32.f32 %v409_v39  ;;  %v604_v50 = vld [vmem:[%s2617_s10 + $0x238] sm:$0xff]  ;;  %v891_v5 = vld [vmem:[%s2625_s27 + $0x230] sm:$0xff]  ;;  %v910_v22 = vld [vmem:[%s2625_s27 + $0x2c8] sm:$0xff] }
  0x9d   : > { %4799 = vst [vmem:[#allocation51_spill] sm:$0xff] %v3016_v3  ;;  %1067 = vadd.xlane.f32.xlu1 %v1066_v40  ;;  %v506_v43 = vcvt.s32.f32 %v410_v19  ;;  %v507_v47 = vcvt.s32.f32 %v411_v21  ;;  %v401_v63 = vunpack.c.2.s8 %v2862_v46  ;;  %v508_v4 = vcvt.s32.f32 %v412_v55  ;;  %v889_v19 = vld [vmem:[%s2625_s27 + $0x220] sm:$0xff] }
  0x9e   : > { %4800 = vst [vmem:[#allocation52_spill] sm:$0xff] %v3018_v32  ;;  %v1056_v12 = vadd.f32 %v1055_v0, %v3016_v3  ;;  %v695_v7 = vmul.f32 1.1111112, %v503_v35  ;;  %v696_v11 = vmul.f32 1.1111112, %v504_v59  ;;  %v402_v0 = vunpack.c.2.s8 %v2877_v27  ;;  %v890_v3 = vld [vmem:[%s2625_s27 + $0x228] sm:$0xff] }
  0x9f   : > { %4801 = vst [vmem:[#allocation53_spill] sm:$0xff] %v3020_v30  ;;  %v697_v48 = vmul.f32 1.1111112, %v505_v49  ;;  %v698_v36 = vmul.f32 1.1111112, %v506_v43  ;;  %v892_v49 = vld [vmem:[%s2625_s27 + $0x238] sm:$0xff]  ;;  %v397_v16 = vunpack.c.1.s8 %v2883_v33 }
  0xa0   : > { %4802 = vst [vmem:[#allocation54_spill] sm:$0xff] %v3024_v17  ;;  %v1057_v39 = vadd.f32 %v1056_v12, %v3018_v32  ;;  %v699_v40 = vmul.f32 1.1111112, %v507_v47  ;;  %v700_v21 = vmul.f32 1.1111112, %v508_v4  ;;  %v791_v52 = vmul.f32 %v695_v7, %v599_v8 }
  0xa1   : > { %v792_v41 = vmul.f32 %v696_v11, %v600_v61  ;;  %v793_v53 = vmul.f32 %v697_v48, %v601_v13  ;;  %v794_v35 = vmul.f32 %v698_v36, %v602_v1  ;;  %v403_v12 = vunpack.c.2.s8 %v2883_v33  ;;  %v595_v11 = vld [vmem:[%s2617_s10 + $0x1f0] sm:$0xff]  ;;  %v596_v48 = vld [vmem:[%s2617_s10 + $0x1f8] sm:$0xff] }
  0xa2   : > { %v1058_v55 = vadd.f32 %v1057_v39, %v3020_v30  ;;  %v795_v59 = vmul.f32 %v699_v40, %v603_v15  ;;  %v796_v32 = vmul.f32 %v700_v21, %v604_v50  ;;  %v3048_v43 = vadd.f32 %v887_v2, %v791_v52  ;;  %v593_v2 = vld [vmem:[%s2617_s10 + $0x1e0] sm:$0xff]  ;;  %v886_v30 = vld [vmem:[%s2625_s27 + $0x208] sm:$0xff] }
  0xa3   : > { %v3050_v47 = vadd.f32 %v888_v54, %v792_v41  ;;  %v3052_v4 = vadd.f32 %v889_v19, %v793_v53  ;;  %v3055_v61 = vadd.f32 %v890_v3, %v794_v35  ;;  %v404_v1 = vunpack.c.2.s8 %v2893_v14  ;;  %v597_v40 = vld [vmem:[%s2617_s10 + $0x200] sm:$0xff]  ;;  %v598_v19 = vld [vmem:[%s2617_s10 + $0x208] sm:$0xff]  ;;  %v883_v35 = vld [vmem:[%s2625_s27 + $0x1f0] sm:$0xff] }
  0xa4   : > { %4803 = vst [vmem:[#allocation55_spill] sm:$0xff] %v3048_v43  ;;  %v1059_v8 = vadd.f32 %v1058_v55, %v3024_v17  ;;  %v3057_v13 = vadd.f32 %v891_v5, %v795_v59  ;;  %v3060_v15 = vadd.f32 %v892_v49, %v796_v32  ;;  %v405_v52 = vunpack.c.2.s8 %v2898_v31  ;;  %v594_v32 = vld [vmem:[%s2617_s10 + $0x1e8] sm:$0xff]  ;;  %v881_v21 = vld [vmem:[%s2625_s27 + $0x1e0] sm:$0xff] }
  0xa5   : > { %4804 = vst [vmem:[#allocation56_spill] sm:$0xff] %v3050_v47  ;;  %v1090_v41 = vadd.f32 %v3050_v47, %v3048_v43  ;;  %v406_v53 = vunpack.c.2.s8 %v2901_v23  ;;  %v497_v5 = vcvt.s32.f32 %v401_v63  ;;  %v498_v3 = vcvt.s32.f32 %v402_v0  ;;  %v882_v55 = vld [vmem:[%s2625_s27 + $0x1e8] sm:$0xff]  ;;  %v884_v43 = vld [vmem:[%s2625_s27 + $0x1f8] sm:$0xff]  ;;  %v885_v17 = vld [vmem:[%s2625_s27 + $0x200] sm:$0xff] }
  0xa6   : > { %4805 = vst [vmem:[#allocation57_spill] sm:$0xff] %v3052_v4  ;;  %1060 = vadd.xlane.f32.xlu0 %v1059_v8  ;;  %v499_v54 = vcvt.s32.f32 %v403_v12  ;;  %v500_v7 = vcvt.s32.f32 %v404_v1  ;;  %v501_v50 = vcvt.s32.f32 %v405_v52  ;;  %v395_v63 = vunpack.c.1.s8 %v2862_v46 }
  0xa7   : > { %4806 = vst [vmem:[#allocation58_spill] sm:$0xff] %v3055_v61  ;;  %v1091_v39 = vadd.f32 %v1090_v41, %v3052_v4  ;;  %v502_v36 = vcvt.s32.f32 %v406_v53  ;;  %v689_v0 = vmul.f32 1.1111112, %v497_v5  ;;  %v690_v59 = vmul.f32 1.1111112, %v498_v3 }
  0xa8   : > { %4807 = vst [vmem:[#allocation59_spill] sm:$0xff] %v3057_v13  ;;  %v691_v49 = vmul.f32 1.1111112, %v499_v54  ;;  %v396_v12 = vunpack.c.1.s8 %v2877_v27  ;;  %v692_v1 = vmul.f32 1.1111112, %v500_v7 }
  0xa9   : > { %4808 = vst [vmem:[#allocation60_spill] sm:$0xff] %v3060_v15  ;;  %v1092_v8 = vadd.f32 %v1091_v39, %v3055_v61  ;;  %v693_v41 = vmul.f32 1.1111112, %v501_v50  ;;  %v694_v52 = vmul.f32 1.1111112, %v502_v36  ;;  %v785_v53 = vmul.f32 %v689_v0, %v593_v2  ;;  %v875_v0 = vld [vmem:[%s2625_s27 + $0x1b0] sm:$0xff] }
  0xaa   : > { %v786_v4 = vmul.f32 %v690_v59, %v594_v32  ;;  %v787_v47 = vmul.f32 %v691_v49, %v595_v11  ;;  %v788_v5 = vmul.f32 %v692_v1, %v596_v48  ;;  %v398_v32 = vunpack.c.1.s8 %v2893_v14  ;;  %v3092_v11 = vld [vmem:[%s2635_s9 + $0x90] sm:$0xff]  ;;  %v880_v61 = vld [vmem:[%s2625_s27 + $0x1d8] sm:$0xff] }
  0xab   : > { %v1093_v46 = vadd.f32 %v1092_v8, %v3057_v13  ;;  %v789_v3 = vmul.f32 %v693_v41, %v597_v40  ;;  %v790_v27 = vmul.f32 %v694_v52, %v598_v19  ;;  %v3084_v54 = vadd.f32 %v881_v21, %v785_v53  ;;  %v587_v40 = vld [vmem:[%s2617_s10 + $0x1b0] sm:$0xff]  ;;  %v588_v19 = vld [vmem:[%s2617_s10 + $0x1b8] sm:$0xff]  ;;  %v877_v52 = vld [vmem:[%s2625_s27 + $0x1c0] sm:$0xff] }
  0xac   : > { %v3086_v7 = vadd.f32 %v882_v55, %v786_v4  ;;  %v3088_v2 = vadd.f32 %v883_v35, %v787_v47  ;;  %v3095_v48 = vadd.f32 %v884_v43, %v788_v5  ;;  %v399_v47 = vunpack.c.1.s8 %v2898_v31  ;;  %v3108_v43 = vld [vmem:[%s2635_s9 + $0x98] sm:$0xff]  ;;  %v589_v55 = vld [vmem:[%s2617_s10 + $0x1c0] sm:$0xff]  ;;  %v590_v35 = vld [vmem:[%s2617_s10 + $0x1c8] sm:$0xff] }
  0xad   : > { %4809 = vst [vmem:[#allocation61_spill] sm:$0xff] %v3084_v54  ;;  %v1094_v33 = vadd.f32 %v1093_v46, %v3060_v15  ;;  %v3097_v39 = vadd.f32 %v885_v17, %v789_v3  ;;  %v3099_v50 = vadd.f32 %v886_v30, %v790_v27  ;;  %v400_v14 = vunpack.c.1.s8 %v2901_v23  ;;  %v591_v49 = vld [vmem:[%s2617_s10 + $0x1d0] sm:$0xff]  ;;  %v592_v8 = vld [vmem:[%s2617_s10 + $0x1d8] sm:$0xff] }
  0xae   : > { %4810 = vst [vmem:[#allocation62_spill] sm:$0xff] %v3086_v7  ;;  %v1083_v4 = vadd.f32 %v3086_v7, %v3084_v54  ;;  %v491_v36 = vcvt.s32.f32 %v395_v63  ;;  %v492_v30 = vcvt.s32.f32 %v396_v12  ;;  %v493_v17 = vcvt.s32.f32 %v397_v16  ;;  %v876_v41 = vld [vmem:[%s2625_s27 + $0x1b8] sm:$0xff]  ;;  %v3120_v16 = vld [vmem:[%s2635_s9 + $0xa0] sm:$0xff]  ;;  %v879_v13 = vld [vmem:[%s2625_s27 + $0x1d0] sm:$0xff] }
  0xaf   : > { %4811 = vst [vmem:[#allocation63_spill] sm:$0xff] %v3088_v2  ;;  %1095 = vadd.xlane.f32.xlu2 %v1094_v33  ;;  %v494_v21 = vcvt.s32.f32 %v398_v32  ;;  %v425_v31 = vunpack.c.2.s8 %v3092_v11  ;;  %v495_v63 = vcvt.s32.f32 %v399_v47  ;;  %v496_v59 = vcvt.s32.f32 %v400_v14  ;;  %v3126_v47 = vld [vmem:[%s2635_s9 + $0xa8] sm:$0xff]  ;;  %v908_v7 = vld [vmem:[%s2625_s27 + $0x2b8] sm:$0xff] }
  0xb0   : > { %4812 = vst [vmem:[#allocation64_spill] sm:$0xff] %v3095_v48  ;;  %v1084_v23 = vadd.f32 %v1083_v4, %v3088_v2  ;;  %v683_v1 = vmul.f32 1.1111112, %v491_v36  ;;  %v684_v12 = vmul.f32 1.1111112, %v492_v30  ;;  %v426_v5 = vunpack.c.2.s8 %v3108_v43  ;;  %v878_v4 = vld [vmem:[%s2625_s27 + $0x1c8] sm:$0xff] }
  0xb1   : > { %4813 = vst [vmem:[#allocation65_spill] sm:$0xff] %v3097_v39  ;;  %v685_v53 = vmul.f32 1.1111112, %v493_v17  ;;  %v686_v46 = vmul.f32 1.1111112, %v494_v21  ;;  %v3131_v2 = vld [vmem:[%s2635_s9 + $0xb0] sm:$0xff]  ;;  %v427_v30 = vunpack.c.2.s8 %v3120_v16 }
  0xb2   : > { %4814 = vst [vmem:[#allocation66_spill] sm:$0xff] %v3099_v50  ;;  %v1085_v3 = vadd.f32 %v1084_v23, %v3095_v48  ;;  %v687_v27 = vmul.f32 1.1111112, %v495_v63  ;;  %v688_v32 = vmul.f32 1.1111112, %v496_v59  ;;  %v779_v33 = vmul.f32 %v683_v1, %v587_v40  ;;  %v3138_v40 = vld [vmem:[%s2635_s9 + $0xb8] sm:$0xff] }
  0xb3   : > { %v780_v14 = vmul.f32 %v684_v12, %v588_v19  ;;  %v781_v36 = vmul.f32 %v685_v53, %v589_v55  ;;  %v782_v15 = vmul.f32 %v686_v46, %v590_v35  ;;  %v428_v59 = vunpack.c.2.s8 %v3126_v47  ;;  %v617_v53 = vld [vmem:[%s2617_s10 + $0x2a0] sm:$0xff]  ;;  %v618_v46 = vld [vmem:[%s2617_s10 + $0x2a8] sm:$0xff]  ;;  %v907_v48 = vld [vmem:[%s2625_s27 + $0x2b0] sm:$0xff] }
  0xb4   : > { %v1086_v17 = vadd.f32 %v1085_v3, %v3097_v39  ;;  %v783_v21 = vmul.f32 %v687_v27, %v591_v49  ;;  %v784_v23 = vmul.f32 %v688_v32, %v592_v8  ;;  %v3135_v63 = vadd.f32 %v875_v0, %v779_v33  ;;  %v619_v3 = vld [vmem:[%s2617_s10 + $0x2b0] sm:$0xff]  ;;  %v905_v33 = vld [vmem:[%s2625_s27 + $0x2a0] sm:$0xff] }
  0xb5   : > { %v3140_v19 = vadd.f32 %v876_v41, %v780_v14  ;;  %v3142_v55 = vadd.f32 %v877_v52, %v781_v36  ;;  %v3144_v35 = vadd.f32 %v878_v4, %v782_v15  ;;  %v429_v8 = vunpack.c.2.s8 %v3131_v2  ;;  %v906_v4 = vld [vmem:[%s2625_s27 + $0x2a8] sm:$0xff] }
  0xb6   : > { %4815 = vst [vmem:[#allocation67_spill] sm:$0xff] %v3135_v63  ;;  %v1087_v1 = vadd.f32 %v1086_v17, %v3099_v50  ;;  %v3148_v49 = vadd.f32 %v879_v13, %v783_v21  ;;  %v3150_v0 = vadd.f32 %v880_v61, %v784_v23  ;;  %v430_v52 = vunpack.c.2.s8 %v3138_v40  ;;  %v620_v61 = vld [vmem:[%s2617_s10 + $0x2b8] sm:$0xff]  ;;  %v621_v17 = vld [vmem:[%s2617_s10 + $0x2c0] sm:$0xff] }
  0xb7   : > { %4816 = vst [vmem:[#allocation68_spill] sm:$0xff] %v3140_v19  ;;  %v1076_v41 = vadd.f32 %v3140_v19, %v3135_v63  ;;  %v521_v15 = vcvt.s32.f32 %v425_v31  ;;  %v522_v12 = vcvt.s32.f32 %v426_v5  ;;  %v523_v13 = vcvt.s32.f32 %v427_v30  ;;  %v622_v5 = vld [vmem:[%s2617_s10 + $0x2c8] sm:$0xff] }
  0xb8   : > { %4817 = vst [vmem:[#allocation69_spill] sm:$0xff] %v3142_v55  ;;  %1088 = vadd.xlane.f32.xlu1 %v1087_v1  ;;  %v524_v27 = vcvt.s32.f32 %v428_v59  ;;  %v525_v32 = vcvt.s32.f32 %v429_v8  ;;  %v419_v14 = vunpack.c.1.s8 %v3092_v11  ;;  %v526_v31 = vcvt.s32.f32 %v430_v52 }
  0xb9   : > { %4818 = vst [vmem:[#allocation70_spill] sm:$0xff] %v3144_v35  ;;  %v1077_v36 = vadd.f32 %v1076_v41, %v3142_v55  ;;  %v713_v21 = vmul.f32 1.1111112, %v521_v15  ;;  %v714_v23 = vmul.f32 1.1111112, %v522_v12  ;;  %v420_v8 = vunpack.c.1.s8 %v3108_v43  ;;  %v909_v41 = vld [vmem:[%s2625_s27 + $0x2c0] sm:$0xff] }
  0xba   : > { %4819 = vst [vmem:[#allocation71_spill] sm:$0xff] %v3148_v49  ;;  %v715_v1 = vmul.f32 1.1111112, %v523_v13  ;;  %v716_v30 = vmul.f32 1.1111112, %v524_v27  ;;  %v421_v15 = vunpack.c.1.s8 %v3120_v16 }
  0xbb   : > { %4820 = vst [vmem:[#allocation72_spill] sm:$0xff] %v3150_v0  ;;  %v717_v59 = vmul.f32 1.1111112, %v525_v32  ;;  %v1078_v50 = vadd.f32 %v1077_v36, %v3144_v35  ;;  %v718_v39 = vmul.f32 1.1111112, %v526_v31  ;;  %v809_v19 = vmul.f32 %v713_v21, %v617_v53  ;;  %v615_v21 = vld [vmem:[%s2617_s10 + $0x290] sm:$0xff] }
  0xbc   : > { %v810_v63 = vmul.f32 %v714_v23, %v618_v46  ;;  %v811_v55 = vmul.f32 %v715_v1, %v619_v3  ;;  %v812_v52 = vmul.f32 %v716_v30, %v620_v61  ;;  %v422_v61 = vunpack.c.1.s8 %v3126_v47  ;;  %v899_v23 = vld [vmem:[%s2625_s27 + $0x270] sm:$0xff]  ;;  %v900_v1 = vld [vmem:[%s2625_s27 + $0x278] sm:$0xff] }
  0xbd   : > { %v813_v54 = vmul.f32 %v717_v59, %v621_v17  ;;  %v1079_v12 = vadd.f32 %v1078_v50, %v3148_v49  ;;  %v814_v13 = vmul.f32 %v718_v39, %v622_v5  ;;  %v3174_v27 = vadd.f32 %v905_v33, %v809_v19  ;;  %v612_v33 = vld [vmem:[%s2617_s10 + $0x278] sm:$0xff]  ;;  %v614_v5 = vld [vmem:[%s2617_s10 + $0x288] sm:$0xff] }
  0xbe   : > { %v3176_v32 = vadd.f32 %v906_v4, %v810_v63  ;;  %v3178_v53 = vadd.f32 %v907_v48, %v811_v55  ;;  %v3180_v46 = vadd.f32 %v908_v7, %v812_v52  ;;  %v423_v48 = vunpack.c.1.s8 %v3131_v2  ;;  %v611_v55 = vld [vmem:[%s2617_s10 + $0x270] sm:$0xff]  ;;  %v613_v4 = vld [vmem:[%s2617_s10 + $0x280] sm:$0xff] }
  0xbf   : > { %4821 = vst [vmem:[#allocation73_spill] sm:$0xff] %v3174_v27  ;;  %v3182_v3 = vadd.f32 %v909_v41, %v813_v54  ;;  %v1080_v36 = vadd.f32 %v1079_v12, %v3150_v0  ;;  %v3186_v50 = vadd.f32 %v910_v22, %v814_v13  ;;  %v424_v7 = vunpack.c.1.s8 %v3138_v40  ;;  %v903_v0 = vld [vmem:[%s2625_s27 + $0x290] sm:$0xff] }
  0xc0   : > { %4822 = vst [vmem:[#allocation74_spill] sm:$0xff] %v3176_v32  ;;  %v1111_v39 = vadd.f32 %v3176_v32, %v3174_v27  ;;  %v515_v63 = vcvt.s32.f32 %v419_v14  ;;  %v516_v54 = vcvt.s32.f32 %v420_v8  ;;  %v517_v19 = vcvt.s32.f32 %v421_v15  ;;  %v616_v15 = vld [vmem:[%s2617_s10 + $0x298] sm:$0xff]  ;;  %v902_v27 = vld [vmem:[%s2625_s27 + $0x288] sm:$0xff] }
  0xc1   : > { %4823 = vst [vmem:[#allocation75_spill] sm:$0xff] %v3178_v53  ;;  %1081 = vadd.xlane.f32.xlu0 %v1080_v36  ;;  %v518_v31 = vcvt.s32.f32 %v422_v61  ;;  %v519_v17 = vcvt.s32.f32 %v423_v48  ;;  %v413_v30 = vunpack.c.0.s8 %v3092_v11  ;;  %v520_v14 = vcvt.s32.f32 %v424_v7  ;;  %v901_v61 = vld [vmem:[%s2625_s27 + $0x280] sm:$0xff] }
  0xc2   : > { %4824 = vst [vmem:[#allocation76_spill] sm:$0xff] %v3180_v46  ;;  %v1112_v22 = vadd.f32 %v1111_v39, %v3178_v53  ;;  %v707_v59 = vmul.f32 1.1111112, %v515_v63  ;;  %v708_v8 = vmul.f32 1.1111112, %v516_v54  ;;  %v414_v36 = vunpack.c.0.s8 %v3108_v43 }
  0xc3   : > { %4825 = vst [vmem:[#allocation77_spill] sm:$0xff] %v3182_v3  ;;  %v709_v41 = vmul.f32 1.1111112, %v517_v19  ;;  %v710_v12 = vmul.f32 1.1111112, %v518_v31  ;;  %v904_v19 = vld [vmem:[%s2625_s27 + $0x298] sm:$0xff] }
  0xc4   : > { %4826 = vst [vmem:[#allocation78_spill] sm:$0xff] %v3186_v50  ;;  %v1113_v52 = vadd.f32 %v1112_v22, %v3180_v46  ;;  %v711_v13 = vmul.f32 1.1111112, %v519_v17  ;;  %v712_v39 = vmul.f32 1.1111112, %v520_v14  ;;  %v803_v48 = vmul.f32 %v707_v59, %v611_v55 }
  0xc5   : > { %v804_v53 = vmul.f32 %v708_v8, %v612_v33  ;;  %v805_v32 = vmul.f32 %v709_v41, %v613_v4  ;;  %v806_v63 = vmul.f32 %v710_v12, %v614_v5  ;;  %v415_v22 = vunpack.c.0.s8 %v3120_v16  ;;  %v607_v41 = vld [vmem:[%s2617_s10 + $0x250] sm:$0xff] }
  0xc6   : > { %v1114_v7 = vadd.f32 %v1113_v52, %v3182_v3  ;;  %v807_v54 = vmul.f32 %v711_v13, %v615_v21  ;;  %v808_v46 = vmul.f32 %v712_v39, %v616_v15  ;;  %v3210_v31 = vadd.f32 %v899_v23, %v803_v48  ;;  %v608_v52 = vld [vmem:[%s2617_s10 + $0x258] sm:$0xff]  ;;  %v610_v39 = vld [vmem:[%s2617_s10 + $0x268] sm:$0xff]  ;;  %v893_v48 = vld [vmem:[%s2625_s27 + $0x240] sm:$0xff] }
  0xc7   : > { %v3212_v17 = vadd.f32 %v900_v1, %v804_v53  ;;  %v3214_v14 = vadd.f32 %v901_v61, %v805_v32  ;;  %v3217_v33 = vadd.f32 %v902_v27, %v806_v63  ;;  %v416_v5 = vunpack.c.0.s8 %v3126_v47  ;;  %v605_v1 = vld [vmem:[%s2617_s10 + $0x240] sm:$0xff]  ;;  %v895_v63 = vld [vmem:[%s2625_s27 + $0x250] sm:$0xff] }
  0xc8   : > { %4827 = vst [vmem:[#allocation79_spill] sm:$0xff] %v3210_v31  ;;  %v1115_v55 = vadd.f32 %v1114_v7, %v3186_v50  ;;  %v3219_v4 = vadd.f32 %v903_v0, %v807_v54  ;;  %v3222_v21 = vadd.f32 %v904_v19, %v808_v46  ;;  %v417_v32 = vunpack.c.0.s8 %v3131_v2  ;;  %v606_v46 = vld [vmem:[%s2617_s10 + $0x248] sm:$0xff]  ;;  %v609_v61 = vld [vmem:[%s2617_s10 + $0x260] sm:$0xff] }
  0xc9   : > { %4828 = vst [vmem:[#allocation80_spill] sm:$0xff] %v3212_v17  ;;  %v1104_v53 = vadd.f32 %v3212_v17, %v3210_v31  ;;  %v418_v23 = vunpack.c.0.s8 %v3138_v40  ;;  %v509_v0 = vcvt.s32.f32 %v413_v30  ;;  %v510_v27 = vcvt.s32.f32 %v414_v36  ;;  %v894_v7 = vld [vmem:[%s2625_s27 + $0x248] sm:$0xff]  ;;  %v897_v17 = vld [vmem:[%s2625_s27 + $0x260] sm:$0xff] }
  0xca   : > { %4829 = vst [vmem:[#allocation81_spill] sm:$0xff] %v3214_v14  ;;  %1116 = vadd.xlane.f32.xlu2 %v1115_v55  ;;  %v511_v59 = vcvt.s32.f32 %v415_v22  ;;  %v512_v8 = vcvt.s32.f32 %v416_v5  ;;  %v513_v12 = vcvt.s32.f32 %v417_v32  ;;  %v1131_v30 = vmul.f32 %v2904_v10, %v2904_v10  ;;  %v898_v31 = vld [vmem:[%s2625_s27 + $0x268] sm:$0xff] }
  0xcb   : > { %4830 = vst [vmem:[#allocation82_spill] sm:$0xff] %v3217_v33  ;;  %v1105_v15 = vadd.f32 %v1104_v53, %v3214_v14  ;;  %v514_v13 = vcvt.s32.f32 %v418_v23  ;;  %v701_v36 = vmul.f32 1.1111112, %v509_v0  ;;  %v702_v54 = vmul.f32 1.1111112, %v510_v27  ;;  %v896_v14 = vld [vmem:[%s2625_s27 + $0x258] sm:$0xff] }
  0xcc   : > { %4831 = vst [vmem:[#allocation83_spill] sm:$0xff] %v3219_v4  ;;  %v703_v19 = vmul.f32 1.1111112, %v511_v59  ;;  %v1132_v22 = vmul.f32 %v2906_v28, %v2906_v28  ;;  %v704_v5 = vmul.f32 1.1111112, %v512_v8  ;;  %v1133_v10 = vmul.f32 %v2908_v38, %v2908_v38 }
  0xcd   : > { %4832 = vst [vmem:[#allocation84_spill] sm:$0xff] %v3222_v21  ;;  %v1106_v55 = vadd.f32 %v1105_v15, %v3217_v33  ;;  %v705_v53 = vmul.f32 1.1111112, %v513_v12  ;;  %v706_v32 = vmul.f32 1.1111112, %v514_v13  ;;  %v797_v23 = vmul.f32 %v701_v36, %v605_v1 }
  0xce   : > { %v798_v50 = vmul.f32 %v702_v54, %v606_v46  ;;  %v799_v3 = vmul.f32 %v703_v19, %v607_v41  ;;  %v800_v27 = vmul.f32 %v704_v5, %v608_v52  ;;  %v1134_v1 = vmul.f32 %v2911_v42, %v2911_v42 }
  0xcf   : > { %v1107_v0 = vadd.f32 %v1106_v55, %v3219_v4  ;;  %v801_v59 = vmul.f32 %v705_v53, %v609_v61  ;;  %v802_v49 = vmul.f32 %v706_v32, %v610_v39  ;;  %v3249_v28 = vadd.f32 %v893_v48, %v797_v23 }
  0xd0   : > { %v3251_v15 = vadd.f32 %v894_v7, %v798_v50  ;;  %v3253_v8 = vadd.f32 %v895_v63, %v799_v3  ;;  %v3258_v41 = vadd.f32 %v896_v14, %v800_v27  ;;  %v1135_v50 = vmul.f32 %v2913_v37, %v2913_v37 }
  0xd1   : > { %4833 = vst [vmem:[#allocation85_spill] sm:$0xff] %v3249_v28  ;;  %v1108_v46 = vadd.f32 %v1107_v0, %v3222_v21  ;;  %v3260_v12 = vadd.f32 %v897_v17, %v801_v59  ;;  %v3262_v13 = vadd.f32 %v898_v31, %v802_v49  ;;  %v1136_v3 = vmul.f32 %v2916_v44, %v2916_v44  ;;  %v623_v59 = vld [vmem:[%s2617_s10 + $0x2d0] sm:$0xff] }
  0xd2   : > { %4834 = vst [vmem:[#allocation86_spill] sm:$0xff] %v3251_v15  ;;  %v1097_v52 = vadd.f32 %v3251_v15, %v3249_v28  ;;  %v1228_v61 = vadd.f32 %v1132_v22, %v1131_v30  ;;  %v1125_v39 = vmul.f32 %v2776_v18, %v2776_v18  ;;  %v1126_v17 = vmul.f32 %v2781_v24, %v2781_v24 }
  0xd3   : > { %4835 = vst [vmem:[#allocation87_spill] sm:$0xff] %v3253_v8  ;;  %1109 = vadd.xlane.f32.xlu1 %v1108_v46  ;;  %v1127_v49 = vmul.f32 %v2783_v25, %v2783_v25  ;;  %v1128_v31 = vmul.f32 %v2785_v26, %v2785_v26  ;;  %v1129_v7 = vmul.f32 %v2793_v20, %v2793_v20  ;;  %v431_v36 = vunpack.c.3.s8 %v3092_v11 }
  0xd4   : > { %4836 = vst [vmem:[#allocation88_spill] sm:$0xff] %v3258_v41  ;;  %v1098_v14 = vadd.f32 %v1097_v52, %v3253_v8  ;;  %v1229_v48 = vadd.f32 %v1228_v61, %v1133_v10  ;;  %v1130_v63 = vmul.f32 %v2795_v34, %v2795_v34  ;;  %v1221_v30 = vadd.f32 %v1126_v17, %v1125_v39  ;;  %v626_v61 = vld [vmem:[%s2617_s10 + $0x2e8] sm:$0xff]  ;;  %v627_v39 = vld [vmem:[%s2617_s10 + $0x2f0] sm:$0xff] }
  0xd5   : > { %4837 = vst [vmem:[#allocation89_spill] sm:$0xff] %v3260_v12  ;;  %v432_v54 = vunpack.c.3.s8 %v3108_v43  ;;  %v433_v19 = vunpack.c.3.s8 %v3120_v16  ;;  %v434_v10 = vunpack.c.3.s8 %v3126_v47  ;;  %v435_v5 = vunpack.c.3.s8 %v3131_v2  ;;  %v624_v47 = vld [vmem:[%s2617_s10 + $0x2d8] sm:$0xff]  ;;  %v911_v17 = vld [vmem:[%s2625_s27 + $0x2d0] sm:$0xff] }
  0xd6   : > { %4838 = vst [vmem:[#allocation90_spill] sm:$0xff] %v3262_v13  ;;  %v1099_v22 = vadd.f32 %v1098_v14, %v3258_v41  ;;  %v1230_v55 = vadd.f32 %v1229_v48, %v1134_v1  ;;  %v1222_v53 = vadd.f32 %v1221_v30, %v1127_v49  ;;  %v436_v32 = vunpack.c.3.s8 %v3138_v40  ;;  %v625_v1 = vld [vmem:[%s2617_s10 + $0x2e0] sm:$0xff]  ;;  %v912_v49 = vld [vmem:[%s2625_s27 + $0x2d8] sm:$0xff] }
  0xd7   : > { %v527_v11 = vcvt.s32.f32 %v431_v36  ;;  %v528_v23 = vcvt.s32.f32 %v432_v54  ;;  %v529_v16 = vcvt.s32.f32 %v433_v19  ;;  %v530_v27 = vcvt.s32.f32 %v434_v10  ;;  %v913_v54 = vld [vmem:[%s2625_s27 + $0x2e0] sm:$0xff] }
  0xd8   : > { %v1100_v43 = vadd.f32 %v1099_v22, %v3260_v12  ;;  %v1231_v0 = vadd.f32 %v1230_v55, %v1135_v50  ;;  %v1223_v46 = vadd.f32 %v1222_v53, %v1128_v31  ;;  %v531_v2 = vcvt.s32.f32 %v435_v5  ;;  %v628_v50 = vld [vmem:[%s2617_s10 + $0x2f8] sm:$0xff]  ;;  %s2098_s10 = scalar_lea.sflag [#allocation4], %s2610_s6 }
  0xd9   : > { %v532_v52 = vcvt.s32.f32 %v436_v32  ;;  %v719_v40 = vmul.f32 1.1111112, %v527_v11  ;;  %v720_v30 = vmul.f32 1.1111112, %v528_v23  ;;  %v721_v36 = vmul.f32 1.1111112, %v529_v16 }
  0xda   : > { %v1101_v14 = vadd.f32 %v1100_v43, %v3262_v13  ;;  %v1232_v48 = vadd.f32 %v1231_v0, %v1136_v3  ;;  %v1224_v19 = vadd.f32 %v1223_v46, %v1129_v7  ;;  %v722_v22 = vmul.f32 1.1111112, %v530_v27  ;;  %v914_v32 = vld [vmem:[%s2625_s27 + $0x2e8] sm:$0xff]  ;;  %v915_v0 = vld [vmem:[%s2625_s27 + $0x2f0] sm:$0xff]  ;;  %v916_v23 = vld [vmem:[%s2625_s27 + $0x2f8] sm:$0xff]  ;;  %s2409_s27 = scalar_lea.hbm %s2408_s0, 768 }
  0xdb   : > { %v723_v31 = vmul.f32 1.1111112, %v531_v2  ;;  %v724_v55 = vmul.f32 1.1111112, %v532_v52  ;;  %v815_v10 = vmul.f32 %v719_v40, %v623_v59  ;;  %v816_v5 = vmul.f32 %v720_v30, %v624_v47  ;;  %p2410_p6 = scmp.ne.s32.totalorder %s2408_s0, %s2409_s27  ;;  %p2415_p1 = scmp.lt.s32.totalorder %s2413_s14, %s2409_s27 }
  0xdc   : > { %1102 = vadd.xlane.f32.xlu0 %v1101_v14  ;;  %1233 = vadd.xlane.f32.xlu2 %v1232_v48  ;;  %v817_v53 = vmul.f32 %v721_v36, %v625_v1  ;;  %v1225_v11 = vadd.f32 %v1224_v19, %v1130_v63  ;;  %v818_v44 = vmul.f32 %v722_v22, %v626_v61  ;;  %v4846_v14 = vld [vmem:[#allocation14_spill] sm:$0xff] }
  0xdd   : > { %v819_v43 = vmul.f32 %v723_v31, %v627_v39  ;;  %v820_v3 = vmul.f32 %v724_v55, %v628_v50  ;;  %v3304_v16 = vadd.f32 %v911_v17, %v815_v10  ;;  %v3306_v37 = vadd.f32 %v912_v49, %v816_v5  ;;  %v4845_v17 = vld [vmem:[#allocation13_spill] sm:$0xff]  ;;  %v4849_v31 = vld [vmem:[#allocation15_spill] sm:$0xff]  ;;  %p2411_p0 = pnand %p2410_p6, %p2544_p10  ;;  %p2416_p2 = por %p2415_p1, %p2414_p13 }
  0xde   : > { %v3308_v7 = vadd.f32 %v913_v54, %v817_v53  ;;  %v1149_v27 = vmul.f32 %v2700_v56, %v2700_v56  ;;  %1226 = vadd.xlane.f32.xlu1 %v1225_v11  ;;  %v3312_v59 = vadd.f32 %v914_v32, %v818_v44  ;;  %v1150_v63 = vmul.f32 %v2702_v57, %v2702_v57  ;;  %v4847_v50 = vld [vmem:[#allocation29_spill] sm:$0xff]  ;;  %v4848_v54 = vld [vmem:[#allocation30_spill] sm:$0xff]  ;;  %v4850_v5 = vld [vmem:[#allocation31_spill] sm:$0xff] }
  0xdf   : > { %4839 = vst [vmem:[#allocation91_spill] sm:$0xff] %v3304_v16  ;;  %v3316_v47 = vadd.f32 %v915_v0, %v819_v43  ;;  %v3318_v1 = vadd.f32 %v916_v23, %v820_v3  ;;  %v1118_v46 = vadd.f32 %v3306_v37, %v3304_v16  ;;  %v1151_v2 = vmul.f32 %v2704_v58, %v2704_v58  ;;  %v4851_v32 = vld [vmem:[#allocation16_spill] sm:$0xff]  ;;  %v4852_v43 = vld [vmem:[#allocation17_spill] sm:$0xff]  ;;  %p2412_p9 = pneg %p2411_p0 }
  0xe0   : > { %4840 = vst [vmem:[#allocation92_spill] sm:$0xff] %v3306_v37  ;;  %v1152_v52 = vmul.f32 %v2707_v60, %v2707_v60  ;;  %v1249_v61 = vadd.f32 %v1150_v63, %v1149_v27  ;;  %v1143_v44 = vmul.f32 %v2849_v51, %v2849_v51  ;;  %v1144_v39 = vmul.f32 %v2851_v45, %v2851_v45  ;;  %v4853_v23 = vld [vmem:[#allocation32_spill] sm:$0xff] }
  0xe1   : > { %4841 = vst [vmem:[#allocation93_spill] sm:$0xff] %v3308_v7  ;;  %v1119_v40 = vadd.f32 %v1118_v46, %v3308_v7  ;;  %v1153_v49 = vmul.f32 %v4845_v17, %v4845_v17  ;;  %v1154_v48 = vmul.f32 %v4846_v14, %v4846_v14  ;;  %v1145_v30 = vmul.f32 %v4847_v50, %v4847_v50  ;;  %v4854_v46 = vld [vmem:[#allocation18_spill] sm:$0xff]  ;;  %v4855_v50 = vld [vmem:[#allocation19_spill] sm:$0xff]  ;;  %p2417_p3 = pnand %p2416_p2, %p2412_p9 }
  0xe2   : > { %4842 = vst [vmem:[#allocation94_spill] sm:$0xff] %v3312_v59  ;;  %v1250_v36 = vadd.f32 %v1249_v61, %v1151_v2  ;;  %v1146_v19 = vmul.f32 %v4848_v54, %v4848_v54  ;;  %v1242_v22 = vadd.f32 %v1144_v39, %v1143_v44  ;;  %v1137_v55 = vmul.f32 %v4849_v31, %v4849_v31 }
  0xe3   : > { %4843 = vst [vmem:[#allocation95_spill] sm:$0xff] %v3316_v47  ;;  %v1120_v10 = vadd.f32 %v1119_v40, %v3312_v59  ;;  %v1147_v53 = vmul.f32 %v4850_v5, %v4850_v5  ;;  %v1138_v11 = vmul.f32 %v4851_v32, %v4851_v32  ;;  %v1139_v3 = vmul.f32 %v4852_v43, %v4852_v43 }
  0xe4   : > { %4844 = vst [vmem:[#allocation96_spill] sm:$0xff] %v3318_v1  ;;  %v1251_v0 = vadd.f32 %v1250_v36, %v1152_v52  ;;  %v1148_v27 = vmul.f32 %v4853_v23, %v4853_v23  ;;  %v1243_v63 = vadd.f32 %v1242_v22, %v1145_v30  ;;  %v1140_v2 = vmul.f32 %v4854_v46, %v4854_v46  ;;  %v4856_v22 = vld [vmem:[#allocation20_spill] sm:$0xff]  ;;  %v4860_v23 = vld [vmem:[#allocation51_spill] sm:$0xff] }
  0xe5   : > { %v1121_v61 = vadd.f32 %v1120_v10, %v3316_v47  ;;  %v1235_v44 = vadd.f32 %v1138_v11, %v1137_v55  ;;  %v1167_v39 = vmul.f32 %v2976_v6, %v2976_v6  ;;  %v1168_v40 = vmul.f32 %v2978_v29, %v2978_v29 }
  0xe6   : > { %v1252_v5 = vadd.f32 %v1251_v0, %v1153_v49  ;;  %v1244_v54 = vadd.f32 %v1243_v63, %v1146_v19  ;;  %v1141_v52 = vmul.f32 %v4855_v50, %v4855_v50  ;;  %v1169_v30 = vmul.f32 %v2980_v9, %v2980_v9  ;;  %v4857_v49 = vld [vmem:[#allocation49_spill] sm:$0xff]  ;;  %v4858_v63 = vld [vmem:[#allocation47_spill] sm:$0xff]  ;;  %v4859_v50 = vld [vmem:[#allocation50_spill] sm:$0xff] }
  0xe7   : > { %v1122_v36 = vadd.f32 %v1121_v61, %v3318_v1  ;;  %v1142_v10 = vmul.f32 %v4856_v22, %v4856_v22  ;;  %v1236_v55 = vadd.f32 %v1235_v44, %v1139_v3  ;;  %v1170_v11 = vmul.f32 %v2982_v62, %v2982_v62  ;;  %v4861_v62 = vld [vmem:[#allocation48_spill] sm:$0xff] }
  0xe8   : > { %v1253_v6 = vadd.f32 %v1252_v5, %v1154_v48  ;;  %v1245_v46 = vadd.f32 %v1244_v54, %v1147_v53  ;;  %v1270_v29 = vadd.f32 %v1168_v40, %v1167_v39  ;;  %v1161_v19 = vmul.f32 %v4857_v49, %v4857_v49  ;;  %v4862_v5 = vld [vmem:[#allocation52_spill] sm:$0xff]  ;;  %v4863_v40 = vld [vmem:[#allocation21_spill] sm:$0xff] }
  0xe9   : > { %1123 = vadd.xlane.f32.xlu0 %v1122_v36  ;;  %v1237_v0 = vadd.f32 %v1236_v55, %v1140_v2  ;;  %v1171_v9 = vmul.f32 %v4858_v63, %v4858_v63  ;;  %v1162_v61 = vmul.f32 %v4859_v50, %v4859_v50  ;;  %v1163_v3 = vmul.f32 %v4860_v23, %v4860_v23  ;;  %v4864_v55 = vld [vmem:[#allocation22_spill] sm:$0xff]  ;;  %v4865_v23 = vld [vmem:[#allocation53_spill] sm:$0xff] }
  0xea   : > { %1254 = vadd.xlane.f32.xlu2 %v1253_v6  ;;  %v1246_v44 = vadd.f32 %v1245_v46, %v1148_v27  ;;  %v1172_v48 = vmul.f32 %v4861_v62, %v4861_v62  ;;  %v1271_v54 = vadd.f32 %v1270_v29, %v1169_v30  ;;  %v1164_v53 = vmul.f32 %v4862_v5, %v4862_v5  ;;  %v4866_v27 = vld [vmem:[#allocation54_spill] sm:$0xff]  ;;  %v4867_v29 = vld [vmem:[#allocation23_spill] sm:$0xff]  ;;  %v4869_v62 = vld [vmem:[#allocation61_spill] sm:$0xff] }
  0xeb   : > { %v1238_v39 = vadd.f32 %v1237_v0, %v1141_v52  ;;  %v1263_v2 = vadd.f32 %v1162_v61, %v1161_v19  ;;  %v1155_v36 = vmul.f32 %v4863_v40, %v4863_v40  ;;  %v1156_v50 = vmul.f32 %v4864_v55, %v4864_v55  ;;  %v4868_v19 = vld [vmem:[#allocation24_spill] sm:$0xff]  ;;  %v4871_v55 = vld [vmem:[#allocation63_spill] sm:$0xff]  ;;  %v4872_v63 = vld [vmem:[#allocation25_spill] sm:$0xff] }
  0xec   : > { %1247 = vadd.xlane.f32.xlu1 %v1246_v44  ;;  %v1272_v49 = vadd.f32 %v1271_v54, %v1170_v11  ;;  %v1165_v6 = vmul.f32 %v4865_v23, %v4865_v23  ;;  %v1166_v46 = vmul.f32 %v4866_v27, %v4866_v27  ;;  %v1157_v30 = vmul.f32 %v4867_v29, %v4867_v29  ;;  %v4870_v11 = vld [vmem:[#allocation62_spill] sm:$0xff] }
  0xed   : > { %v1239_v5 = vadd.f32 %v1238_v39, %v1142_v10  ;;  %v1264_v52 = vadd.f32 %v1263_v2, %v1163_v3  ;;  %v1158_v0 = vmul.f32 %v4868_v19, %v4868_v19  ;;  %v1256_v61 = vadd.f32 %v1156_v50, %v1155_v36  ;;  %v4873_v10 = vld [vmem:[#allocation26_spill] sm:$0xff]  ;;  %v4874_v50 = vld [vmem:[#allocation64_spill] sm:$0xff]  ;;  %v4875_v36 = vld [vmem:[#allocation67_spill] sm:$0xff] }
  0xee   : > { %v1273_v40 = vadd.f32 %v1272_v49, %v1171_v9  ;;  %v1185_v44 = vmul.f32 %v4869_v62, %v4869_v62  ;;  %v1186_v54 = vmul.f32 %v4870_v11, %v4870_v11  ;;  %v1187_v23 = vmul.f32 %v4871_v55, %v4871_v55  ;;  %v4876_v55 = vld [vmem:[#allocation68_spill] sm:$0xff] }
  0xef   : > { %v1265_v27 = vadd.f32 %v1264_v52, %v1164_v53  ;;  %v1159_v29 = vmul.f32 %v4872_v63, %v4872_v63  ;;  %v1160_v3 = vmul.f32 %v4873_v10, %v4873_v10  ;;  %v1257_v39 = vadd.f32 %v1256_v61, %v1157_v30  ;;  %v4877_v52 = vld [vmem:[#allocation69_spill] sm:$0xff] }
  0xf0   : > { %v1274_v2 = vadd.f32 %v1273_v40, %v1172_v48  ;;  %v1188_v9 = vmul.f32 %v4874_v50, %v4874_v50  ;;  %v1291_v49 = vadd.f32 %v1186_v54, %v1185_v44  ;;  %v1179_v62 = vmul.f32 %v4875_v36, %v4875_v36  ;;  %v4878_v10 = vld [vmem:[#allocation65_spill] sm:$0xff]  ;;  %v4879_v40 = vld [vmem:[#allocation66_spill] sm:$0xff] }
  0xf1   : > { %1240 = vadd.xlane.f32.xlu0 %v1239_v5  ;;  %v1266_v11 = vadd.f32 %v1265_v27, %v1165_v6  ;;  %v1258_v19 = vadd.f32 %v1257_v39, %v1158_v0  ;;  %v1180_v53 = vmul.f32 %v4876_v55, %v4876_v55  ;;  %v1181_v63 = vmul.f32 %v4877_v52, %v4877_v52  ;;  %v4880_v0 = vld [vmem:[#allocation37_spill] sm:$0xff]  ;;  %v4881_v55 = vld [vmem:[#allocation71_spill] sm:$0xff]  ;;  %v4882_v52 = vld [vmem:[#allocation38_spill] sm:$0xff] }
  0xf2   : > { %1275 = vadd.xlane.f32.xlu2 %v1274_v2  ;;  %v1189_v48 = vmul.f32 %v4878_v10, %v4878_v10  ;;  %v1190_v30 = vmul.f32 %v4879_v40, %v4879_v40  ;;  %v1292_v61 = vadd.f32 %v1291_v49, %v1187_v23  ;;  %v1182_v44 = vmul.f32 %v3144_v35, %v3144_v35  ;;  %v4883_v10 = vld [vmem:[#allocation39_spill] sm:$0xff]  ;;  %v4884_v49 = vld [vmem:[#allocation72_spill] sm:$0xff]  ;;  %v4888_v35 = vld [vmem:[#allocation41_spill] sm:$0xff] }
  0xf3   : > { %v1267_v5 = vadd.f32 %v1266_v11, %v1166_v46  ;;  %v1259_v6 = vadd.f32 %v1258_v19, %v1159_v29  ;;  %v1284_v27 = vadd.f32 %v1180_v53, %v1179_v62  ;;  %v1173_v54 = vmul.f32 %v4880_v0, %v4880_v0  ;;  %v4885_v62 = vld [vmem:[#allocation40_spill] sm:$0xff]  ;;  %v4886_v53 = vld [vmem:[#allocation79_spill] sm:$0xff] }
  0xf4   : > { %v1293_v39 = vadd.f32 %v1292_v61, %v1188_v9  ;;  %v1183_v2 = vmul.f32 %v4881_v55, %v4881_v55  ;;  %v1174_v36 = vmul.f32 %v4882_v52, %v4882_v52  ;;  %v1175_v40 = vmul.f32 %v4883_v10, %v4883_v10  ;;  %v4887_v0 = vld [vmem:[#allocation80_spill] sm:$0xff]  ;;  %v4890_v10 = vld [vmem:[#allocation81_spill] sm:$0xff] }
  0xf5   : > { %1268 = vadd.xlane.f32.xlu1 %v1267_v5  ;;  %v1260_v23 = vadd.f32 %v1259_v6, %v1160_v3  ;;  %v1184_v46 = vmul.f32 %v4884_v49, %v4884_v49  ;;  %v1285_v29 = vadd.f32 %v1284_v27, %v1181_v63  ;;  %v1176_v19 = vmul.f32 %v4885_v62, %v4885_v62  ;;  %v4889_v3 = vld [vmem:[#allocation42_spill] sm:$0xff] }
  0xf6   : > { %v1294_v11 = vadd.f32 %v1293_v39, %v1189_v48  ;;  %v1277_v9 = vadd.f32 %v1174_v36, %v1173_v54  ;;  %v1203_v61 = vmul.f32 %v4886_v53, %v4886_v53  ;;  %v1204_v52 = vmul.f32 %v4887_v0, %v4887_v0 }
  0xf7   : > { %v1286_v55 = vadd.f32 %v1285_v29, %v1182_v44  ;;  %v1177_v5 = vmul.f32 %v4888_v35, %v4888_v35  ;;  %v1178_v6 = vmul.f32 %v4889_v3, %v4889_v3  ;;  %v1205_v63 = vmul.f32 %v4890_v10, %v4890_v10 }
  0xf8   : > { %v1295_v27 = vadd.f32 %v1294_v11, %v1190_v30  ;;  %v1278_v62 = vadd.f32 %v1277_v9, %v1175_v40  ;;  %v1206_v36 = vmul.f32 %v3217_v33, %v3217_v33  ;;  %v1312_v48 = vadd.f32 %v1204_v52, %v1203_v61  ;;  %v4891_v11 = vld [vmem:[#allocation55_spill] sm:$0xff] }
  0xf9   : > { %1261 = vadd.xlane.f32.xlu0 %v1260_v23  ;;  %v1287_v54 = vadd.f32 %v1286_v55, %v1183_v2  ;;  %v1197_v44 = vmul.f32 %v3249_v28, %v3249_v28  ;;  %v1198_v39 = vmul.f32 %v3251_v15, %v3251_v15  ;;  %v1199_v29 = vmul.f32 %v3253_v8, %v3253_v8  ;;  %v4892_v8 = vld [vmem:[#allocation56_spill] sm:$0xff] }
  0xfa   : > { %1296 = vadd.xlane.f32.xlu2 %v1295_v27  ;;  %v1279_v0 = vadd.f32 %v1278_v62, %v1176_v19  ;;  %v1207_v40 = vmul.f32 %v3219_v4, %v3219_v4  ;;  %v1208_v30 = vmul.f32 %v3222_v21, %v3222_v21  ;;  %v1313_v52 = vadd.f32 %v1312_v48, %v1205_v63  ;;  %v4893_v19 = vld [vmem:[#allocation57_spill] sm:$0xff]  ;;  %v4894_v48 = vld [vmem:[#allocation58_spill] sm:$0xff] }
  0xfb   : > { %v1288_v23 = vadd.f32 %v1287_v54, %v1184_v46  ;;  %v1200_v55 = vmul.f32 %v3258_v41, %v3258_v41  ;;  %v1305_v2 = vadd.f32 %v1198_v39, %v1197_v44  ;;  %v1191_v9 = vmul.f32 %v4891_v11, %v4891_v11  ;;  %v4934_v21 = vld [vmem:[#allocation22_spill] sm:$0xff] }
  0xfc   : > { %v1280_v61 = vadd.f32 %v1279_v0, %v1177_v5  ;;  %v1314_v15 = vadd.f32 %v1313_v52, %v1206_v36  ;;  %v1192_v62 = vmul.f32 %v4892_v8, %v4892_v8  ;;  %v1193_v27 = vmul.f32 %v4893_v19, %v4893_v19 }
  0xfd   : > { %1289 = vadd.xlane.f32.xlu1 %v1288_v23  ;;  %v1201_v63 = vmul.f32 %v3260_v12, %v3260_v12  ;;  %v1306_v46 = vadd.f32 %v1305_v2, %v1199_v29  ;;  %v1194_v54 = vmul.f32 %v4894_v48, %v4894_v48  ;;  %v1215_v0 = vmul.f32 %v3304_v16, %v3304_v16  ;;  %v4895_v2 = vld [vmem:[#allocation59_spill] sm:$0xff] }
  0xfe   : > { %v1281_v44 = vadd.f32 %v1280_v61, %v1178_v6  ;;  %v1315_v39 = vadd.f32 %v1314_v15, %v1207_v40  ;;  %v1298_v41 = vadd.f32 %v1192_v62, %v1191_v9  ;;  %v1202_v5 = vmul.f32 %v3262_v13, %v3262_v13  ;;  %v4896_v61 = vld [vmem:[#allocation73_spill] sm:$0xff]  ;;  %v4897_v62 = vld [vmem:[#allocation74_spill] sm:$0xff] }
  0xff   : > { %v1307_v36 = vadd.f32 %v1306_v46, %v1200_v55  ;;  %v1216_v52 = vmul.f32 %v3306_v37, %v3306_v37  ;;  %v1217_v23 = vmul.f32 %v3308_v7, %v3308_v7  ;;  %v1195_v48 = vmul.f32 %v4895_v2, %v4895_v2  ;;  %v4898_v37 = vld [vmem:[#allocation60_spill] sm:$0xff]  ;;  %v4901_v7 = vld [vmem:[#allocation77_spill] sm:$0xff] }
 0x100   : > { %v1316_v29 = vadd.f32 %v1315_v39, %v1208_v30  ;;  %v1299_v6 = vadd.f32 %v1298_v41, %v1193_v27  ;;  %v1218_v15 = vmul.f32 %v3312_v59, %v3312_v59  ;;  %v1209_v55 = vmul.f32 %v4896_v61, %v4896_v61  ;;  %v4899_v27 = vld [vmem:[#allocation75_spill] sm:$0xff]  ;;  %v4912_v2 = vld [vmem:[#allocation36_spill] sm:$0xff] }
 0x101   : > { %1282 = vadd.xlane.f32.xlu0 %v1281_v44  ;;  %v1308_v40 = vadd.f32 %v1307_v36, %v1201_v63  ;;  %v1326_v9 = vadd.f32 %v1216_v52, %v1215_v0  ;;  %v1210_v46 = vmul.f32 %v4897_v62, %v4897_v62  ;;  %v1196_v30 = vmul.f32 %v4898_v37, %v4898_v37  ;;  %v4900_v0 = vld [vmem:[#allocation76_spill] sm:$0xff] }
 0x102   : > { %1317 = vadd.xlane.f32.xlu2 %v1316_v29  ;;  %v1300_v39 = vadd.f32 %v1299_v6, %v1194_v54  ;;  %v1219_v41 = vmul.f32 %v3316_v47, %v3316_v47  ;;  %v1211_v59 = vmul.f32 %v4899_v27, %v4899_v27  ;;  %v1212_v36 = vmul.f32 %v4900_v0, %v4900_v0 }
 0x103   : > { %v1309_v44 = vadd.f32 %v1308_v40, %v1202_v5  ;;  %v1327_v63 = vadd.f32 %v1326_v9, %v1217_v23  ;;  %v1319_v52 = vadd.f32 %v1210_v46, %v1209_v55  ;;  %v1220_v29 = vmul.f32 %v3318_v1, %v3318_v1  ;;  %v4902_v23 = vld [vmem:[#allocation78_spill] sm:$0xff]  ;;  %v1047_v55 = vpop.xlane.xlu2 %1046  ;;  %v1033_v46 = vpop.xlane.xlu1 %1032 }
 0x104   : > { %v1301_v61 = vadd.f32 %v1300_v39, %v1195_v48  ;;  %v1213_v54 = vmul.f32 %v4901_v7, %v4901_v7  ;;  %v1214_v40 = vmul.f32 %v4902_v23, %v4902_v23  ;;  %v4910_v23 = vld [vmem:[#allocation34_spill] sm:$0xff] }
 0x105   : > { %1310 = vadd.xlane.f32.xlu1 %v1309_v44  ;;  %v1328_v62 = vadd.f32 %v1327_v63, %v1218_v15  ;;  %v1320_v6 = vadd.f32 %v1319_v52, %v1211_v59  ;;  %v1019_v44 = vpop.xlane.xlu0 %1018  ;;  %v3500_v52 = vmul.f32 0.0013020834, %v1033_v46 }
 0x106   : > { %v1302_v47 = vadd.f32 %v1301_v61, %v1196_v30 }
 0x107   : > { %v1329_v16 = vadd.f32 %v1328_v62, %v1219_v41  ;;  %v1321_v37 = vadd.f32 %v1320_v6, %v1212_v36  ;;  %v3494_v41 = vmul.f32 0.0013020834, %v1019_v44  ;;  %v3498_v36 = vmul.f32 0.0013020834, %v1047_v55  ;;  %4904 = vst [vmem:[#allocation97_spill] sm:$0xff] %v3500_v52 }
 0x109   : > { %1303 = vadd.xlane.f32.xlu0 %v1302_v47  ;;  %v1330_v5 = vadd.f32 %v1329_v16, %v1220_v29  ;;  %v1322_v9 = vadd.f32 %v1321_v37, %v1213_v54 }
 0x10b   : > { %v1323_v48 = vadd.f32 %v1322_v9, %v1214_v40  ;;  %v1054_v39 = vpop.xlane.xlu2 %1053  ;;  %v1040_v15 = vpop.xlane.xlu1 %1039  ;;  %v1365_v9 = vmul.f32 %v3494_v41, %v3494_v41 }
 0x10c   : > { %v3502_v29 = vmul.f32 0.0013020834, %v1054_v39  ;;  %v3504_v54 = vmul.f32 0.0013020834, %v1040_v15 }
 0x10d   : > { %1331 = vadd.xlane.f32.xlu1 %v1330_v5  ;;  %v1026_v59 = vpop.xlane.xlu0 %1025 }
 0x10e   : > { %4905 = vst [vmem:[#allocation98_spill] sm:$0xff] %v3504_v54  ;;  %v3506_v6 = vmul.f32 0.0013020834, %v1026_v59  ;;  %v3530_v59 = vmul.f32 %v3500_v52, %v3500_v52  ;;  %v3572_v0 = vmul.f32 %v3504_v54, %v3504_v54 }
 0x110   : > { %v1366_v15 = vmul.f32 %v3506_v6, %v3506_v6 }
 0x111   : > { %1324 = vadd.xlane.f32.xlu0 %v1323_v48  ;;  %v4909_v48 = vld [vmem:[#allocation33_spill] sm:$0xff] }
 0x113   : > { %v1075_v63 = vpop.xlane.xlu2 %1074  ;;  %v1068_v7 = vpop.xlane.xlu1 %1067 }
 0x114   : > { %v3508_v5 = vmul.f32 0.0013020834, %v1075_v63  ;;  %v3510_v40 = vmul.f32 0.0013020834, %v1068_v7 }
 0x116   : > { %4906 = vst [vmem:[#allocation99_spill] sm:$0xff] %v3508_v5 }
 0x117   : > { %4907 = vst [vmem:[#allocation100_spill] sm:$0xff] %v3510_v40 }
 0x119   : > { %v1061_v30 = vpop.xlane.xlu0 %1060 }
 0x11a   : > { %v3526_v44 = vmul.f32 0.0013020834, %v1061_v30  ;;  %v3554_v30 = vmul.f32 %v3498_v36, %v3498_v36 }
 0x11c   : > { %4908 = vst [vmem:[#allocation101_spill] sm:$0xff] %v3526_v44 }
 0x122   : > { %v1096_v61 = vpop.xlane.xlu2 %1095 }
 0x12b   : > { %v1089_v62 = vpop.xlane.xlu1 %1088 }
 0x12c   : > { %v3600_v4 = vmul.f32 0.0013020834, %v1089_v62 }
 0x134   : > { %v3496_v37 = vpop.xlane.xlu0 %1081 }
 0x135   : > { %v3631_v22 = vmul.f32 0.0013020834, %v3496_v37 }
 0x13d   : > { %v3490_v47 = vpop.xlane.xlu2 %1116 }
 0x13e   : > { %4903 = vst [vmem:[#allocation64_spill] sm:$0xff] %v3490_v47 }
 0x146   : > { %v3492_v16 = vpop.xlane.xlu1 %1109 }
 0x14f   : > { %v1234_v63 = vpop.xlane.xlu2 %1233  ;;  %v3558_v8 = vpop.xlane.xlu0 %1102 }
 0x150   : > { %v1350_v39 = vmul.f32 0.0013020834, %v1234_v63  ;;  %v4911_v63 = vld [vmem:[#allocation35_spill] sm:$0xff]  ;;  %v3693_v32 = vmul.f32 0.0013020834, %v3558_v8 }
 0x151   : > { %v1227_v7 = vpop.xlane.xlu1 %1226  ;;  %v4947_v11 = vsub.f32 %v4911_v63, %v3506_v6 }
 0x152   : > { %v1382_v1 = vsub.f32 %v1350_v39, %v1366_v15  ;;  %v1349_v27 = vmul.f32 0.0013020834, %v1227_v7  ;;  %v3574_v7 = vmul.f32 0.0013020834, %v1096_v61  ;;  %v1589_v39 = vld [vmem:[%s4568_s3] sm:$0x3f] }
 0x153   : > { %v3602_v61 = vperm.slane %v1589_v39, 0  ;;  %v3607_v33 = vperm.slane %v1589_v39, 1  ;;  %v3611_v28 = vperm.slane %v1589_v39, 3  ;;  %v3615_v46 = vperm.slane %v1589_v39, 4  ;;  %4939 = vst [vmem:[#allocation35_spill] sm:$0xff] %v3693_v32 }
 0x154   : > { %v1398_v19 = vmax.f32 %v1382_v1, 0.0  ;;  %4913 = vst [vmem:[#allocation33_spill] sm:$0xff] %v3574_v7  ;;  %v1381_v55 = vsub.f32 %v1349_v27, %v1365_v9  ;;  %v1590_v27 = vld [vmem:[%s4569_s4] sm:$0x3f]  ;;  %v3617_v47 = vperm.slane %v1589_v39, 5 }
 0x155   : > { %v3619_v62 = vperm.slane %v1590_v27, 0  ;;  %v3621_v53 = vperm.slane %v1590_v27, 1  ;;  %v3623_v3 = vperm.slane %v1590_v27, 2  ;;  %v3625_v35 = vperm.slane %v1590_v27, 3 }
 0x156   : > { %v3583_v15 = vadd.f32 1e-05, %v1398_v19  ;;  %v1397_v9 = vmax.f32 %v1381_v55, 0.0  ;;  %v3609_v55 = vperm.slane %v1589_v39, 2  ;;  %v3627_v7 = vperm.slane %v1590_v27, 4 }
 0x157   : > { %v3637_v39 = vmul.f32 %v3510_v40, %v3510_v40  ;;  %v3655_v19 = vmul.f32 %v3526_v44, %v3526_v44  ;;  %v3697_v44 = vmul.f32 %v3600_v4, %v3600_v4 }
 0x158   : > { %2301 = vrsqrt.f32 %v3583_v15  ;;  %v3613_v10 = vadd.f32 1e-05, %v1397_v9  ;;  %v3633_v9 = vperm.slane %v1590_v27, 5  ;;  %vm1445_vm1 = vweird.f32 %v3583_v15 }
 0x15a   : > { %2303 = vrsqrt.f32 %v3613_v10  ;;  %vm1435_vm3 = vweird.f32 %v3613_v10 }
 0x15c   : > { %v3641_v43 = vpop.xlane.xlu0 %1123 }
 0x15d   : > { %4921 = vst [vmem:[#allocation34_spill] sm:$0xff] %v3641_v43  ;;  %v1255_v13 = vpop.xlane.xlu2 %1254  ;;  %v3672_v43 = vmul.f32 %v3502_v29, %v3502_v29 }
 0x15e   : > { %v2302_v12 = vpop.eup %2301  ;;  %v1353_v37 = vmul.f32 0.0013020834, %v1255_v13 }
 0x15f   : > { %v1440_v49 = vmul.f32 %v2302_v12, %v3583_v15  ;;  %v1248_v45 = vpop.xlane.xlu1 %1247  ;;  %vm1446_vm0 = vweird.f32 %v2302_v12 }
 0x160   : > { %v2304_v5 = vpop.eup %2303  ;;  %v1385_v27 = vsub.f32 %v1353_v37, %v3554_v30  ;;  %v1352_v1 = vmul.f32 0.0013020834, %v1248_v45  ;;  %v3690_v37 = vmul.f32 0.0013020834, %v3492_v16  ;;  %v4940_v30 = vld [vmem:[#allocation61_spill] sm:$0xff]  ;;  %v4941_v45 = vld [vmem:[#allocation62_spill] sm:$0xff]  ;;  %vm1447_vm2 = vmor %vm1445_vm1, %vm1446_vm0 }
 0x161   : > { %v1441_v52 = vmul.f32 %v2302_v12, %v1440_v49  ;;  %v1430_v40 = vmul.f32 %v2304_v5, %v3613_v10  ;;  %vm1436_vm4 = vweird.f32 %v2304_v5 }
 0x162   : > { %v1401_v31 = vmax.f32 %v1385_v27, 0.0  ;;  %v1384_v49 = vsub.f32 %v1352_v1, %v3572_v0  ;;  %vm1437_vm5 = vmor %vm1435_vm3, %vm1436_vm4 }
 0x163   : > { %v1442_v13 = vmul.f32 0.5, %v1441_v52  ;;  %v1431_v51 = vmul.f32 %v2304_v5, %v1430_v40 }
 0x164   : > { %v3699_v52 = vadd.f32 1e-05, %v1401_v31  ;;  %v1400_v27 = vmax.f32 %v1384_v49, 0.0  ;;  %v1241_v0 = vpop.xlane.xlu0 %1240 }
 0x165   : > { %v1443_v54 = vsub.f32 1.5, %v1442_v13  ;;  %v1432_v1 = vmul.f32 0.5, %v1431_v51  ;;  %v1351_v17 = vmul.f32 0.0013020834, %v1241_v0  ;;  %v4942_v13 = vld [vmem:[#allocation63_spill] sm:$0xff]  ;;  %v1276_v49 = vpop.xlane.xlu2 %1275 }
 0x166   : > { %v3706_v40 = vadd.f32 1e-05, %v1400_v27  ;;  %2305 = vrsqrt.f32 %v3699_v52  ;;  %v4944_v27 = vsub.f32 %v4910_v23, %v3506_v6  ;;  %v1356_v63 = vmul.f32 0.0013020834, %v1276_v49 }
 0x167   : > { %v1444_v14 = vmul.f32 %v2302_v12, %v1443_v54  ;;  %v1433_v31 = vsub.f32 1.5, %v1432_v1  ;;  %v1383_v51 = vsub.f32 %v1351_v17, %v3530_v59  ;;  %v4943_v54 = vsub.f32 %v4909_v48, %v3506_v6 }
 0x168   : > { %2307 = vrsqrt.f32 %v3706_v40  ;;  %v4945_v17 = vsub.f32 %v2908_v38, %v3506_v6  ;;  %v4948_v48 = vsub.f32 %v4912_v2, %v3506_v6  ;;  %v4950_v49 = vsub.f32 %v2781_v24, %v3494_v41 }
 0x169   : > { %v1448_v0 = vsel %vm1447_vm2, %v2302_v12, %v1444_v14  ;;  %v4946_v12 = vsub.f32 %v2911_v42, %v3506_v6  ;;  %v1434_v16 = vmul.f32 %v2304_v5, %v1433_v31  ;;  %v1399_v23 = vmax.f32 %v1383_v51, 0.0  ;;  %v1269_v31 = vpop.xlane.xlu1 %1268 }
 0x16a   : > { %v1693_v15 = vmul.f32 %v4943_v54, %v1448_v0  ;;  %v1694_v1 = vmul.f32 %v4944_v27, %v1448_v0  ;;  %v1695_v59 = vmul.f32 %v4945_v17, %v1448_v0  ;;  %v1697_v8 = vmul.f32 %v4947_v11, %v1448_v0 }
 0x16b   : > { %v1696_v14 = vmul.f32 %v4946_v12, %v1448_v0  ;;  %v1698_v54 = vmul.f32 %v4948_v48, %v1448_v0  ;;  %v1438_v6 = vsel %vm1437_vm5, %v2304_v5, %v1434_v16  ;;  %v4949_v5 = vsub.f32 %v2776_v18, %v3494_v41 }
 0x16c   : > { %v1802_v27 = vmul.f32 %v3602_v61, %v1693_v15  ;;  %v1803_v38 = vmul.f32 %v3607_v33, %v1694_v1  ;;  %v1804_v17 = vmul.f32 %v3609_v55, %v1695_v59  ;;  %v1806_v11 = vmul.f32 %v3615_v46, %v1697_v8  ;;  %v3743_v51 = vpop.eup %2305 }
 0x16d   : > { %v1805_v42 = vmul.f32 %v3611_v28, %v1696_v14  ;;  %v1807_v2 = vmul.f32 %v3617_v47, %v1698_v54  ;;  %v3748_v59 = vadd.f32 1e-05, %v1399_v23  ;;  %v1687_v16 = vmul.f32 %v4949_v5, %v1438_v6  ;;  %v1262_v5 = vpop.xlane.xlu0 %1261 }
 0x16e   : > { %v1911_v0 = vadd.f32 %v3619_v62, %v1802_v27  ;;  %v1912_v15 = vadd.f32 %v3621_v53, %v1803_v38  ;;  %v1913_v1 = vadd.f32 %v3623_v3, %v1804_v17  ;;  %v3750_v10 = vpop.eup %2307  ;;  %v1915_v8 = vadd.f32 %v3627_v7, %v1806_v11 }
 0x16f   : > { %v1914_v12 = vadd.f32 %v3625_v35, %v1805_v42  ;;  %v1688_v14 = vmul.f32 %v4950_v49, %v1438_v6  ;;  %v4951_v48 = vsub.f32 %v2783_v25, %v3494_v41  ;;  %v4952_v23 = vsub.f32 %v2785_v26, %v3494_v41  ;;  %v4955_v49 = vld [vmem:[#allocation65_spill] sm:$0xff] }
 0x170   : > { %2007 = vst [vmem:[%s3761_s16 + $0x30] sm:$0xff] %v1911_v0  ;;  %v4953_v27 = vsub.f32 %v2793_v20, %v3494_v41  ;;  %v4954_v38 = vsub.f32 %v2795_v34, %v3494_v41  ;;  %v1916_v42 = vadd.f32 %v3633_v9, %v1807_v2  ;;  %v1796_v11 = vmul.f32 %v3602_v61, %v1687_v16 }
 0x171   : > { %v1689_v54 = vmul.f32 %v4951_v48, %v1438_v6  ;;  %v1690_v18 = vmul.f32 %v4952_v23, %v1438_v6  ;;  %2008 = vst [vmem:[%s3761_s16 + $0x38] sm:$0xff] %v1912_v15  ;;  %v1797_v25 = vmul.f32 %v3607_v33, %v1688_v14  ;;  %v1470_v26 = vmul.f32 %v3743_v51, %v3699_v52  ;;  %v4956_v14 = vld [vmem:[#allocation66_spill] sm:$0xff] }
 0x172   : > { %v1691_v24 = vmul.f32 %v4953_v27, %v1438_v6  ;;  %v1692_v17 = vmul.f32 %v4954_v38, %v1438_v6  ;;  %2009 = vst [vmem:[%s3761_s16 + $0x40] sm:$0xff] %v1913_v1  ;;  %v1905_v2 = vadd.f32 %v3619_v62, %v1796_v11  ;;  %v1460_v1 = vmul.f32 %v3750_v10, %v3706_v40 }
 0x173   : > { %v1798_v20 = vmul.f32 %v3609_v55, %v1689_v54  ;;  %v1799_v0 = vmul.f32 %v3611_v28, %v1690_v18  ;;  %2010 = vst [vmem:[%s3761_s16 + $0x48] sm:$0xff] %v1914_v12  ;;  %v1906_v6 = vadd.f32 %v3621_v53, %v1797_v25  ;;  %v1471_v15 = vmul.f32 %v3743_v51, %v1470_v26  ;;  %v5006_v12 = vld [vmem:[#allocation46_spill] sm:$0xff] }
 0x174   : > { %v1800_v34 = vmul.f32 %v3615_v46, %v1691_v24  ;;  %v1801_v41 = vmul.f32 %v3617_v47, %v1692_v17  ;;  %2011 = vst [vmem:[%s3761_s16 + $0x50] sm:$0xff] %v1915_v8  ;;  %vm1476_vm6 = vweird.f32 %v3743_v51  ;;  %v1461_v18 = vmul.f32 %v3750_v10, %v1460_v1  ;;  %v1297_v17 = vpop.xlane.xlu2 %1296 }
 0x175   : > { %v1907_v16 = vadd.f32 %v3623_v3, %v1798_v20  ;;  %2012 = vst [vmem:[%s3761_s16 + $0x58] sm:$0xff] %v1916_v42  ;;  %v1908_v54 = vadd.f32 %v3625_v35, %v1799_v0  ;;  %v1472_v23 = vmul.f32 0.5, %v1471_v15  ;;  %2309 = vrsqrt.f32 %v3748_v59  ;;  %v1290_v20 = vpop.xlane.xlu1 %1289 }
 0x176   : > { %v1909_v8 = vadd.f32 %v3627_v7, %v1800_v34  ;;  %2001 = vst [vmem:[%s3761_s16] sm:$0xff] %v1905_v2  ;;  %v1388_v27 = vsub.f32 %v1356_v63, %v3637_v39  ;;  %v1355_v24 = vmul.f32 0.0013020834, %v1269_v31  ;;  %v1354_v38 = vmul.f32 0.0013020834, %v1262_v5 }
 0x177   : > { %v1910_v11 = vadd.f32 %v3633_v9, %v1801_v41  ;;  %2002 = vst [vmem:[%s3761_s16 + $0x8] sm:$0xff] %v1906_v6  ;;  %v1473_v42 = vsub.f32 1.5, %v1472_v23  ;;  %v1462_v25 = vmul.f32 0.5, %v1461_v18  ;;  %v1359_v26 = vmul.f32 0.0013020834, %v1297_v17 }
 0x178   : > { %2003 = vst [vmem:[%s3761_s16 + $0x10] sm:$0xff] %v1907_v16  ;;  %v1404_v0 = vmax.f32 %v1388_v27, 0.0  ;;  %v1387_v34 = vsub.f32 %v1355_v24, %v3655_v19  ;;  %v1386_v2 = vsub.f32 %v1354_v38, %v3672_v43  ;;  %v3814_v39 = vmul.f32 %v3631_v22, %v3631_v22  ;;  %v4961_v27 = vld [vmem:[#allocation13_spill] sm:$0xff]  ;;  %v4963_v38 = vld [vmem:[#allocation14_spill] sm:$0xff] }
 0x179   : > { %2004 = vst [vmem:[%s3761_s16 + $0x18] sm:$0xff] %v1908_v54  ;;  %v1474_v63 = vmul.f32 %v3743_v51, %v1473_v42  ;;  %vm1475_vm7 = vweird.f32 %v3699_v52  ;;  %v1463_v31 = vsub.f32 1.5, %v1462_v25  ;;  %vm1466_vm8 = vweird.f32 %v3750_v10 }
 0x17a   : > { %2005 = vst [vmem:[%s3761_s16 + $0x20] sm:$0xff] %v1909_v8  ;;  %vm1477_vm9 = vmor %vm1475_vm7, %vm1476_vm6  ;;  %vm1465_vm10 = vweird.f32 %v3706_v40  ;;  %v3824_v19 = vadd.f32 1e-05, %v1404_v0  ;;  %v1391_v43 = vsub.f32 %v1359_v26, %v3697_v44  ;;  %v3827_v41 = vmul.f32 0.0013020834, %v1290_v20 }
 0x17b   : > { %v3829_v6 = vpop.eup %2309  ;;  %2006 = vst [vmem:[%s3761_s16 + $0x28] sm:$0xff] %v1910_v11  ;;  %v1478_v52 = vsel %vm1477_vm9, %v3743_v51, %v1474_v63  ;;  %v1464_v15 = vmul.f32 %v3750_v10, %v1463_v31  ;;  %v1403_v1 = vmax.f32 %v1387_v34, 0.0  ;;  %v1402_v5 = vmax.f32 %v1386_v2, 0.0  ;;  %vm1467_vm11 = vmor %vm1465_vm10, %vm1466_vm8  ;;  %v4966_v34 = vld [vmem:[#allocation98_spill] sm:$0xff]  ;;  %v4968_v63 = vld [vmem:[#allocation28_spill] sm:$0xff] }
 0x17c   : > { %v4957_v16 = vsub.f32 %v2700_v56, %v3498_v36  ;;  %v4958_v40 = vsub.f32 %v2702_v57, %v3498_v36  ;;  %v4959_v44 = vsub.f32 %v2704_v58, %v3498_v36  ;;  %v4960_v8 = vsub.f32 %v2707_v60, %v3498_v36 }
 0x17d   : > { %v4962_v24 = vsub.f32 %v4961_v27, %v3498_v36  ;;  %v4964_v17 = vsub.f32 %v4963_v38, %v3498_v36  ;;  %v1468_v11 = vsel %vm1467_vm11, %v3750_v10, %v1464_v15  ;;  %v1450_v58 = vmul.f32 %v3829_v6, %v3748_v59  ;;  %v4965_v36 = vld [vmem:[#allocation27_spill] sm:$0xff]  ;;  %v4972_v27 = vld [vmem:[#allocation30_spill] sm:$0xff] }
 0x17e   : > { %v1711_v54 = vmul.f32 %v4957_v16, %v1478_v52  ;;  %v1712_v23 = vmul.f32 %v4958_v40, %v1478_v52  ;;  %v1713_v18 = vmul.f32 %v4959_v44, %v1478_v52  ;;  %v1714_v51 = vmul.f32 %v4960_v8, %v1478_v52  ;;  %v4974_v38 = vld [vmem:[#allocation31_spill] sm:$0xff] }
 0x17f   : > { %v1715_v56 = vmul.f32 %v4962_v24, %v1478_v52  ;;  %v1716_v57 = vmul.f32 %v4964_v17, %v1478_v52  ;;  %v4967_v2 = vsub.f32 %v4965_v36, %v4966_v34  ;;  %v4969_v31 = vsub.f32 %v4968_v63, %v4966_v34 }
 0x180   : > { %v1820_v42 = vmul.f32 %v3602_v61, %v1711_v54  ;;  %v1821_v60 = vmul.f32 %v3607_v33, %v1712_v23  ;;  %v1822_v25 = vmul.f32 %v3609_v55, %v1713_v18  ;;  %v1823_v26 = vmul.f32 %v3611_v28, %v1714_v51  ;;  %v4970_v18 = vld [vmem:[#allocation29_spill] sm:$0xff] }
 0x181   : > { %v1824_v20 = vmul.f32 %v3615_v46, %v1715_v56  ;;  %v1825_v0 = vmul.f32 %v3617_v47, %v1716_v57  ;;  %v1705_v10 = vmul.f32 %v4967_v2, %v1468_v11  ;;  %v1706_v52 = vmul.f32 %v4969_v31, %v1468_v11 }
 0x182   : > { %v1929_v15 = vadd.f32 %v3619_v62, %v1820_v42  ;;  %v1930_v16 = vadd.f32 %v3621_v53, %v1821_v60  ;;  %v1931_v54 = vadd.f32 %v3623_v3, %v1822_v25  ;;  %v1407_v40 = vmax.f32 %v1391_v43, 0.0  ;;  %v4976_v42 = vld [vmem:[#allocation32_spill] sm:$0xff] }
 0x183   : > { %v1932_v23 = vadd.f32 %v3625_v35, %v1823_v26  ;;  %v1933_v44 = vadd.f32 %v3627_v7, %v1824_v20  ;;  %v4971_v8 = vsub.f32 %v4970_v18, %v4966_v34  ;;  %v4973_v24 = vsub.f32 %v4972_v27, %v4966_v34 }
 0x184   : > { %2025 = vst [vmem:[%s3761_s16 + $0xc0] sm:$0xff] %v1929_v15  ;;  %v4975_v17 = vsub.f32 %v4974_v38, %v4966_v34  ;;  %v4977_v43 = vsub.f32 %v4976_v42, %v4966_v34  ;;  %v1814_v25 = vmul.f32 %v3602_v61, %v1705_v10  ;;  %v1815_v26 = vmul.f32 %v3607_v33, %v1706_v52  ;;  %v4978_v34 = vld [vmem:[#allocation67_spill] sm:$0xff]  ;;  %v4979_v52 = vld [vmem:[#allocation68_spill] sm:$0xff] }
 0x185   : > { %v1707_v51 = vmul.f32 %v4971_v8, %v1468_v11  ;;  %v1708_v56 = vmul.f32 %v4973_v24, %v1468_v11  ;;  %v1934_v20 = vadd.f32 %v3633_v9, %v1825_v0  ;;  %2026 = vst [vmem:[%s3761_s16 + $0xc8] sm:$0xff] %v1930_v16  ;;  %v1451_v63 = vmul.f32 %v3829_v6, %v1450_v58  ;;  %v5002_v10 = vld [vmem:[#allocation44_spill] sm:$0xff] }
 0x186   : > { %v1709_v57 = vmul.f32 %v4975_v17, %v1468_v11  ;;  %v1710_v60 = vmul.f32 %v4977_v43, %v1468_v11  ;;  %2027 = vst [vmem:[%s3761_s16 + $0xd0] sm:$0xff] %v1931_v54  ;;  %v1923_v11 = vadd.f32 %v3619_v62, %v1814_v25  ;;  %v1924_v16 = vadd.f32 %v3621_v53, %v1815_v26  ;;  %v4984_v43 = vld [vmem:[#allocation99_spill] sm:$0xff] }
 0x187   : > { %v1816_v36 = vmul.f32 %v3609_v55, %v1707_v51  ;;  %v1817_v2 = vmul.f32 %v3611_v28, %v1708_v56  ;;  %2028 = vst [vmem:[%s3761_s16 + $0xd8] sm:$0xff] %v1932_v23  ;;  %v1452_v18 = vmul.f32 0.5, %v1451_v63  ;;  %2311 = vrsqrt.f32 %v3824_v19  ;;  %v4995_v17 = vld [vmem:[#allocation19_spill] sm:$0xff]  ;;  %v4997_v56 = vld [vmem:[#allocation20_spill] sm:$0xff] }
 0x188   : > { %v1818_v31 = vmul.f32 %v3615_v46, %v1709_v57  ;;  %v1819_v0 = vmul.f32 %v3617_v47, %v1710_v60  ;;  %2029 = vst [vmem:[%s3761_s16 + $0xe0] sm:$0xff] %v1933_v44  ;;  %vm1456_vm12 = vweird.f32 %v3829_v6  ;;  %v3908_v54 = vadd.f32 1e-05, %v1403_v1  ;;  %v4980_v1 = vld [vmem:[#allocation69_spill] sm:$0xff] }
 0x189   : > { %v1925_v58 = vadd.f32 %v3623_v3, %v1816_v36  ;;  %v1390_v8 = vsub.f32 %v3827_v41, %v3814_v39  ;;  %2030 = vst [vmem:[%s3761_s16 + $0xe8] sm:$0xff] %v1934_v20  ;;  %v1926_v23 = vadd.f32 %v3625_v35, %v1817_v2  ;;  %v1453_v51 = vsub.f32 1.5, %v1452_v18  ;;  %v4989_v18 = vld [vmem:[#allocation16_spill] sm:$0xff]  ;;  %v5012_v36 = vld [vmem:[#allocation49_spill] sm:$0xff] }
 0x18a   : > { %v3914_v27 = vadd.f32 1e-05, %v1402_v5  ;;  %v3916_v24 = vadd.f32 1e-05, %v1407_v40  ;;  %v1927_v44 = vadd.f32 %v3627_v7, %v1818_v31  ;;  %2019 = vst [vmem:[%s3761_s16 + $0x90] sm:$0xff] %v1923_v11  ;;  %2313 = vrsqrt.f32 %v3908_v54  ;;  %v4986_v31 = vld [vmem:[#allocation15_spill] sm:$0xff] }
 0x18b   : > { %v1928_v38 = vadd.f32 %v3633_v9, %v1819_v0  ;;  %2020 = vst [vmem:[%s3761_s16 + $0x98] sm:$0xff] %v1924_v16  ;;  %v1454_v5 = vmul.f32 %v3829_v6, %v1453_v51  ;;  %vm1455_vm13 = vweird.f32 %v3748_v59  ;;  %v3940_v60 = vmul.f32 %v4984_v43, %v4984_v43  ;;  %v1283_v59 = vpop.xlane.xlu0 %1282  ;;  %v4987_v11 = vld [vmem:[#allocation97_spill] sm:$0xff]  ;;  %v5023_v40 = vld [vmem:[#allocation54_spill] sm:$0xff] }
 0x18c   : > { %2315 = vrsqrt.f32 %v3914_v27  ;;  %2021 = vst [vmem:[%s3761_s16 + $0xa0] sm:$0xff] %v1925_v58  ;;  %vm1457_vm14 = vmor %vm1455_vm13, %vm1456_vm12  ;;  %v1406_v20 = vmax.f32 %v1390_v8, 0.0  ;;  %v3950_v63 = vmul.f32 %v3690_v37, %v3690_v37  ;;  %v4988_v0 = vsub.f32 %v4986_v31, %v4987_v11 }
 0x18d   : > { %2317 = vrsqrt.f32 %v3916_v24  ;;  %v3942_v25 = vpop.eup %2311  ;;  %2022 = vst [vmem:[%s3761_s16 + $0xa8] sm:$0xff] %v1926_v23  ;;  %v1458_v26 = vsel %vm1457_vm14, %v3829_v6, %v1454_v5  ;;  %v4990_v58 = vsub.f32 %v4989_v18, %v4987_v11  ;;  %v4991_v23 = vld [vmem:[#allocation17_spill] sm:$0xff]  ;;  %v4993_v5 = vld [vmem:[#allocation18_spill] sm:$0xff]  ;;  %v4998_v31 = vsub.f32 %v4997_v56, %v4987_v11 }
 0x18e   : > { %2023 = vst [vmem:[%s3761_s16 + $0xb0] sm:$0xff] %v1927_v44  ;;  %v1699_v16 = vmul.f32 %v4988_v0, %v1458_v26  ;;  %v4992_v6 = vsub.f32 %v4991_v23, %v4987_v11  ;;  %v4994_v2 = vsub.f32 %v4993_v5, %v4987_v11  ;;  %v4996_v44 = vsub.f32 %v4995_v17, %v4987_v11 }
 0x18f   : > { %v1700_v51 = vmul.f32 %v4990_v58, %v1458_v26  ;;  %2024 = vst [vmem:[%s3761_s16 + $0xb8] sm:$0xff] %v1928_v38  ;;  %v1704_v0 = vmul.f32 %v4998_v31, %v1458_v26  ;;  %v1500_v18 = vmul.f32 %v3942_v25, %v3824_v19  ;;  %v1357_v58 = vmul.f32 0.0013020834, %v1283_v59 }
 0x190   : > { %v1701_v8 = vmul.f32 %v4992_v6, %v1458_v26  ;;  %v1702_v42 = vmul.f32 %v4994_v2, %v1458_v26  ;;  %v1703_v41 = vmul.f32 %v4996_v44, %v1458_v26  ;;  %v2314_v15 = vpop.eup %2313  ;;  %v1808_v23 = vmul.f32 %v3602_v61, %v1699_v16 }
 0x191   : > { %v1809_v6 = vmul.f32 %v3607_v33, %v1700_v51  ;;  %v1813_v56 = vmul.f32 %v3617_v47, %v1704_v0  ;;  %v1501_v26 = vmul.f32 %v3942_v25, %v1500_v18  ;;  %v1490_v59 = vmul.f32 %v2314_v15, %v3908_v54 }
 0x192   : > { %v1810_v2 = vmul.f32 %v3609_v55, %v1701_v8  ;;  %v1811_v38 = vmul.f32 %v3611_v28, %v1702_v42  ;;  %v3978_v17 = vpop.eup %2315  ;;  %v1812_v5 = vmul.f32 %v3615_v46, %v1703_v41  ;;  %v1917_v16 = vadd.f32 %v3619_v62, %v1808_v23 }
 0x193   : > { %v3984_v11 = vpop.eup %2317  ;;  %v1918_v51 = vadd.f32 %v3621_v53, %v1809_v6  ;;  %vm1505_vm15 = vweird.f32 %v3824_v19  ;;  %v1502_v8 = vmul.f32 0.5, %v1501_v26  ;;  %v1491_v44 = vmul.f32 %v2314_v15, %v1490_v59  ;;  %v1318_v26 = vpop.xlane.xlu2 %1317 }
 0x194   : > { %v1919_v42 = vadd.f32 %v3623_v3, %v1810_v2  ;;  %v1920_v41 = vadd.f32 %v3625_v35, %v1811_v38  ;;  %v3991_v31 = vadd.f32 1e-05, %v1406_v20  ;;  %v1921_v0 = vadd.f32 %v3627_v7, %v1812_v5  ;;  %2013 = vst [vmem:[%s3761_s16 + $0x60] sm:$0xff] %v1917_v16  ;;  %v1311_v16 = vpop.xlane.xlu1 %1310 }
 0x195   : > { %v1480_v18 = vmul.f32 %v3978_v17, %v3914_v27  ;;  %v1530_v23 = vmul.f32 %v3984_v11, %v3916_v24  ;;  %v1389_v6 = vsub.f32 %v1357_v58, %v3940_v60  ;;  %v1922_v2 = vadd.f32 %v3633_v9, %v1813_v56  ;;  %2014 = vst [vmem:[%s3761_s16 + $0x68] sm:$0xff] %v1918_v51 }
 0x196   : > { %v1503_v38 = vsub.f32 1.5, %v1502_v8  ;;  %vm1506_vm0 = vweird.f32 %v3942_v25  ;;  %v1492_v20 = vmul.f32 0.5, %v1491_v44  ;;  %2015 = vst [vmem:[%s3761_s16 + $0x70] sm:$0xff] %v1919_v42  ;;  %vm1495_vm1 = vweird.f32 %v3908_v54 }
 0x197   : > { %v1481_v5 = vmul.f32 %v3978_v17, %v1480_v18  ;;  %v1531_v59 = vmul.f32 %v3984_v11, %v1530_v23  ;;  %v4009_v60 = vmul.f32 %v3693_v32, %v3693_v32  ;;  %2016 = vst [vmem:[%s3761_s16 + $0x78] sm:$0xff] %v1920_v41  ;;  %vm1496_vm2 = vweird.f32 %v2314_v15  ;;  %vm1507_vm4 = vmor %vm1505_vm15, %vm1506_vm0 }
 0x198   : > { %v1504_v58 = vmul.f32 %v3942_v25, %v1503_v38  ;;  %v1493_v56 = vsub.f32 1.5, %v1492_v20  ;;  %vm1486_vm3 = vweird.f32 %v3978_v17  ;;  %2017 = vst [vmem:[%s3761_s16 + $0x80] sm:$0xff] %v1921_v0  ;;  %2319 = vrsqrt.f32 %v3991_v31  ;;  %v4999_v0 = vld [vmem:[#allocation43_spill] sm:$0xff]  ;;  %v5000_v38 = vld [vmem:[#allocation100_spill] sm:$0xff]  ;;  %vm1497_vm6 = vmor %vm1495_vm1, %vm1496_vm2 }
 0x199   : > { %v1482_v51 = vmul.f32 0.5, %v1481_v5  ;;  %v1405_v42 = vmax.f32 %v1389_v6, 0.0  ;;  %v4020_v8 = vmul.f32 0.0013020834, %v1318_v26  ;;  %2018 = vst [vmem:[%s3761_s16 + $0x88] sm:$0xff] %v1922_v2  ;;  %vm1485_vm5 = vweird.f32 %v3914_v27  ;;  %v5004_v6 = vld [vmem:[#allocation45_spill] sm:$0xff] }
 0x19a   : > { %v1508_v41 = vsel %vm1507_vm4, %v3942_v25, %v1504_v58  ;;  %v1494_v44 = vmul.f32 %v2314_v15, %v1493_v56  ;;  %v1532_v18 = vmul.f32 0.5, %v1531_v59  ;;  %v4025_v23 = vmul.f32 0.0013020834, %v1311_v16  ;;  %v5008_v59 = vld [vmem:[#allocation47_spill] sm:$0xff]  ;;  %vm1487_vm9 = vmor %vm1485_vm5, %vm1486_vm3 }
 0x19b   : > { %v5001_v20 = vsub.f32 %v4999_v0, %v5000_v38  ;;  %v5003_v5 = vsub.f32 %v5002_v10, %v5000_v38  ;;  %v5005_v26 = vsub.f32 %v5004_v6, %v5000_v38  ;;  %v5007_v25 = vsub.f32 %v5006_v12, %v5000_v38  ;;  %v5010_v10 = vld [vmem:[#allocation48_spill] sm:$0xff] }
 0x19c   : > { %vm1536_vm7 = vweird.f32 %v3984_v11  ;;  %v5009_v16 = vsub.f32 %v5008_v59, %v5000_v38  ;;  %v5011_v0 = vsub.f32 %v5010_v10, %v5000_v38  ;;  %v1483_v6 = vsub.f32 1.5, %v1482_v51  ;;  %v5013_v38 = vld [vmem:[#allocation101_spill] sm:$0xff]  ;;  %v5015_v51 = vld [vmem:[#allocation50_spill] sm:$0xff] }
 0x19d   : > { %v1729_v19 = vmul.f32 %v5001_v20, %v1508_v41  ;;  %v1730_v48 = vmul.f32 %v5003_v5, %v1508_v41  ;;  %v1731_v2 = vmul.f32 %v5005_v26, %v1508_v41  ;;  %v1732_v58 = vmul.f32 %v5007_v25, %v1508_v41 }
 0x19e   : > { %v1733_v56 = vmul.f32 %v5009_v16, %v1508_v41  ;;  %v1734_v20 = vmul.f32 %v5011_v0, %v1508_v41  ;;  %v1498_v5 = vsel %vm1497_vm6, %v2314_v15, %v1494_v44  ;;  %vm1535_vm8 = vweird.f32 %v3916_v24 }
 0x19f   : > { %v1838_v26 = vmul.f32 %v3602_v61, %v1729_v19  ;;  %v1839_v12 = vmul.f32 %v3607_v33, %v1730_v48  ;;  %v1840_v25 = vmul.f32 %v3609_v55, %v1731_v2  ;;  %v1841_v54 = vmul.f32 %v3611_v28, %v1732_v58  ;;  %v4062_v19 = vpop.eup %2319  ;;  %vm1537_vm10 = vmor %vm1535_vm8, %vm1536_vm7 }
 0x1a0   : > { %v1842_v59 = vmul.f32 %v3615_v46, %v1733_v56  ;;  %v1843_v16 = vmul.f32 %v3617_v47, %v1734_v20  ;;  %v5014_v41 = vsub.f32 %v5012_v36, %v5013_v38  ;;  %v5016_v44 = vsub.f32 %v5015_v51, %v5013_v38  ;;  %v5017_v20 = vld [vmem:[#allocation51_spill] sm:$0xff] }
 0x1a1   : > { %v1947_v2 = vadd.f32 %v3619_v62, %v1838_v26  ;;  %v1948_v58 = vadd.f32 %v3621_v53, %v1839_v12  ;;  %v1949_v10 = vadd.f32 %v3623_v3, %v1840_v25  ;;  %v1950_v56 = vadd.f32 %v3625_v35, %v1841_v54  ;;  %v5021_v26 = vld [vmem:[#allocation53_spill] sm:$0xff] }
 0x1a2   : > { %v1723_v15 = vmul.f32 %v5014_v41, %v1498_v5  ;;  %v1724_v48 = vmul.f32 %v5016_v44, %v1498_v5  ;;  %v1951_v0 = vadd.f32 %v3627_v7, %v1842_v59  ;;  %v1952_v36 = vadd.f32 %v3633_v9, %v1843_v16  ;;  %v5019_v44 = vld [vmem:[#allocation52_spill] sm:$0xff] }
 0x1a3   : > { %v5018_v41 = vsub.f32 %v5017_v20, %v5013_v38  ;;  %v5020_v32 = vsub.f32 %v5019_v44, %v5013_v38  ;;  %2043 = vst [vmem:[%s3761_s16 + $0x150] sm:$0xff] %v1947_v2  ;;  %v5022_v12 = vsub.f32 %v5021_v26, %v5013_v38  ;;  %v5024_v54 = vsub.f32 %v5023_v40, %v5013_v38 }
 0x1a4   : > { %v1832_v16 = vmul.f32 %v3602_v61, %v1723_v15  ;;  %v1833_v39 = vmul.f32 %v3607_v33, %v1724_v48  ;;  %2044 = vst [vmem:[%s3761_s16 + $0x158] sm:$0xff] %v1948_v58  ;;  %v1484_v2 = vmul.f32 %v3978_v17, %v1483_v6  ;;  %v1394_v38 = vsub.f32 %v4020_v8, %v3950_v63 }
 0x1a5   : > { %v1725_v51 = vmul.f32 %v5018_v41, %v1498_v5  ;;  %v1726_v57 = vmul.f32 %v5020_v32, %v1498_v5  ;;  %v1727_v25 = vmul.f32 %v5022_v12, %v1498_v5  ;;  %v1728_v59 = vmul.f32 %v5024_v54, %v1498_v5  ;;  %2045 = vst [vmem:[%s3761_s16 + $0x160] sm:$0xff] %v1949_v10  ;;  %v5032_v54 = vld [vmem:[#allocation25_spill] sm:$0xff] }
 0x1a6   : > { %v1533_v41 = vsub.f32 1.5, %v1532_v18  ;;  %v1941_v40 = vadd.f32 %v3619_v62, %v1832_v16  ;;  %v4096_v5 = vadd.f32 1e-05, %v1405_v42  ;;  %2046 = vst [vmem:[%s3761_s16 + $0x168] sm:$0xff] %v1950_v56  ;;  %v1942_v18 = vadd.f32 %v3621_v53, %v1833_v39  ;;  %v5025_v42 = vld [vmem:[#allocation21_spill] sm:$0xff]  ;;  %v5028_v39 = vld [vmem:[#allocation23_spill] sm:$0xff] }
 0x1a7   : > { %v1834_v20 = vmul.f32 %v3609_v55, %v1725_v51  ;;  %v1835_v32 = vmul.f32 %v3611_v28, %v1726_v57  ;;  %v1836_v44 = vmul.f32 %v3615_v46, %v1727_v25  ;;  %v1837_v57 = vmul.f32 %v3617_v47, %v1728_v59  ;;  %2047 = vst [vmem:[%s3761_s16 + $0x170] sm:$0xff] %v1951_v0  ;;  %v5030_v0 = vld [vmem:[#allocation24_spill] sm:$0xff] }
 0x1a8   : > { %v1488_v6 = vsel %vm1487_vm9, %v3978_v17, %v1484_v2  ;;  %v1534_v15 = vmul.f32 %v3984_v11, %v1533_v41  ;;  %v5026_v58 = vsub.f32 %v5025_v42, %v3502_v29  ;;  %v5027_v56 = vsub.f32 %v4934_v21, %v3502_v29  ;;  %2048 = vst [vmem:[%s3761_s16 + $0x178] sm:$0xff] %v1952_v36 }
 0x1a9   : > { %v1943_v48 = vadd.f32 %v3623_v3, %v1834_v20  ;;  %v1944_v27 = vadd.f32 %v3625_v35, %v1835_v32  ;;  %v5029_v17 = vsub.f32 %v5028_v39, %v3502_v29  ;;  %v5031_v12 = vsub.f32 %v5030_v0, %v3502_v29  ;;  %v5034_v20 = vld [vmem:[#allocation26_spill] sm:$0xff]  ;;  %2037 = vst [vmem:[%s3761_s16 + $0x120] sm:$0xff] %v1941_v40 }
 0x1aa   : > { %v1717_v10 = vmul.f32 %v5026_v58, %v1488_v6  ;;  %v1718_v51 = vmul.f32 %v5027_v56, %v1488_v6  ;;  %v5033_v59 = vsub.f32 %v5032_v54, %v3502_v29  ;;  %v5035_v32 = vsub.f32 %v5034_v20, %v3502_v29  ;;  %2038 = vst [vmem:[%s3761_s16 + $0x128] sm:$0xff] %v1942_v18  ;;  %v5042_v54 = vld [vmem:[#allocation38_spill] sm:$0xff] }
 0x1ab   : > { %v1719_v26 = vmul.f32 %v5029_v17, %v1488_v6  ;;  %v1720_v25 = vmul.f32 %v5031_v12, %v1488_v6  ;;  %v1945_v21 = vadd.f32 %v3627_v7, %v1836_v44  ;;  %v1538_v42 = vsel %vm1537_vm10, %v3984_v11, %v1534_v15  ;;  %2039 = vst [vmem:[%s3761_s16 + $0x130] sm:$0xff] %v1943_v48 }
 0x1ac   : > { %v1721_v16 = vmul.f32 %v5033_v59, %v1488_v6  ;;  %v1722_v2 = vmul.f32 %v5035_v32, %v1488_v6  ;;  %v1826_v36 = vmul.f32 %v3602_v61, %v1717_v10  ;;  %v1827_v41 = vmul.f32 %v3607_v33, %v1718_v51  ;;  %2040 = vst [vmem:[%s3761_s16 + $0x138] sm:$0xff] %v1944_v27 }
 0x1ad   : > { %v1946_v58 = vadd.f32 %v3633_v9, %v1837_v57  ;;  %v1828_v29 = vmul.f32 %v3609_v55, %v1719_v26  ;;  %v1829_v6 = vmul.f32 %v3611_v28, %v1720_v25  ;;  %v1520_v24 = vmul.f32 %v4062_v19, %v3991_v31  ;;  %2041 = vst [vmem:[%s3761_s16 + $0x140] sm:$0xff] %v1945_v21 }
 0x1ae   : > { %v1830_v44 = vmul.f32 %v3615_v46, %v1721_v16  ;;  %v1935_v40 = vadd.f32 %v3619_v62, %v1826_v36  ;;  %v5036_v11 = vsub.f32 %v4940_v30, %v3600_v4  ;;  %v5037_v57 = vsub.f32 %v4941_v45, %v3600_v4 }
 0x1af   : > { %v1831_v10 = vmul.f32 %v3617_v47, %v1722_v2  ;;  %v1936_v56 = vadd.f32 %v3621_v53, %v1827_v41  ;;  %v1937_v48 = vadd.f32 %v3623_v3, %v1828_v29  ;;  %v1393_v51 = vsub.f32 %v4025_v23, %v4009_v60  ;;  %2042 = vst [vmem:[%s3761_s16 + $0x148] sm:$0xff] %v1946_v58 }
 0x1b0   : > { %v1747_v15 = vmul.f32 %v5036_v11, %v1538_v42  ;;  %v1748_v18 = vmul.f32 %v5037_v57, %v1538_v42  ;;  %v5038_v30 = vsub.f32 %v4942_v13, %v3600_v4  ;;  %v5039_v45 = vsub.f32 %v4874_v50, %v3600_v4  ;;  %2031 = vst [vmem:[%s3761_s16 + $0xf0] sm:$0xff] %v1935_v40  ;;  %v5045_v40 = vld [vmem:[#allocation41_spill] sm:$0xff] }
 0x1b1   : > { %v5040_v17 = vsub.f32 %v4955_v49, %v3600_v4  ;;  %v5041_v0 = vsub.f32 %v4956_v14, %v3600_v4  ;;  %v1938_v60 = vadd.f32 %v3625_v35, %v1829_v6  ;;  %v1521_v25 = vmul.f32 %v4062_v19, %v1520_v24  ;;  %v5043_v14 = vld [vmem:[#allocation39_spill] sm:$0xff]  ;;  %2032 = vst [vmem:[%s3761_s16 + $0xf8] sm:$0xff] %v1936_v56  ;;  %v5044_v24 = vld [vmem:[#allocation40_spill] sm:$0xff] }
 0x1b2   : > { %v1749_v39 = vmul.f32 %v5038_v30, %v1538_v42  ;;  %v1750_v27 = vmul.f32 %v5039_v45, %v1538_v42  ;;  %v1856_v13 = vmul.f32 %v3602_v61, %v1747_v15  ;;  %v1857_v23 = vmul.f32 %v3607_v33, %v1748_v18  ;;  %2033 = vst [vmem:[%s3761_s16 + $0x100] sm:$0xff] %v1937_v48  ;;  %v5046_v15 = vld [vmem:[#allocation42_spill] sm:$0xff]  ;;  %v5048_v48 = vld [vmem:[#allocation79_spill] sm:$0xff]  ;;  %v5049_v30 = vld [vmem:[#allocation80_spill] sm:$0xff] }
 0x1b3   : > { %v1751_v26 = vmul.f32 %v5040_v17, %v1538_v42  ;;  %v1752_v12 = vmul.f32 %v5041_v0, %v1538_v42  ;;  %v1939_v50 = vadd.f32 %v3627_v7, %v1830_v44  ;;  %v1640_v4 = vsub.f32 %v5042_v54, %v4984_v43  ;;  %2034 = vst [vmem:[%s3761_s16 + $0x108] sm:$0xff] %v1938_v60 }
 0x1b4   : > { %v1858_v49 = vmul.f32 %v3609_v55, %v1749_v39  ;;  %v1641_v59 = vsub.f32 %v5043_v14, %v4984_v43  ;;  %v1940_v16 = vadd.f32 %v3633_v9, %v1831_v10  ;;  %v1859_v20 = vmul.f32 %v3611_v28, %v1750_v27 }
 0x1b5   : > { %v1522_v32 = vmul.f32 0.5, %v1521_v25  ;;  %2321 = vrsqrt.f32 %v4096_v5  ;;  %v1860_v2 = vmul.f32 %v3615_v46, %v1751_v26  ;;  %v1861_v21 = vmul.f32 %v3617_v47, %v1752_v12  ;;  %2035 = vst [vmem:[%s3761_s16 + $0x110] sm:$0xff] %v1939_v50  ;;  %v5053_v25 = vld [vmem:[#allocation70_spill] sm:$0xff] }
 0x1b6   : > { %v1965_v36 = vadd.f32 %v3619_v62, %v1856_v13  ;;  %vm1526_vm11 = vweird.f32 %v4062_v19  ;;  %v1966_v41 = vadd.f32 %v3621_v53, %v1857_v23  ;;  %v1410_v58 = vmax.f32 %v1394_v38, 0.0  ;;  %2036 = vst [vmem:[%s3761_s16 + $0x118] sm:$0xff] %v1940_v16  ;;  %v5047_v38 = vld [vmem:[#allocation34_spill] sm:$0xff] }
 0x1b7   : > { %v1523_v42 = vsub.f32 1.5, %v1522_v32  ;;  %v1409_v29 = vmax.f32 %v1393_v51, 0.0  ;;  %v1967_v6 = vadd.f32 %v3623_v3, %v1858_v49  ;;  %v1642_v44 = vsub.f32 %v5044_v24, %v4984_v43  ;;  %v5055_v49 = vld [vmem:[#allocation71_spill] sm:$0xff]  ;;  %v5057_v32 = vld [vmem:[#allocation72_spill] sm:$0xff] }
 0x1b8   : > { %v1643_v11 = vsub.f32 %v5045_v40, %v4984_v43  ;;  %v1644_v57 = vsub.f32 %v5046_v15, %v4984_v43  ;;  %v1968_v18 = vadd.f32 %v3625_v35, %v1859_v20  ;;  %vm1525_vm12 = vweird.f32 %v3991_v31  ;;  %2061 = vst [vmem:[%s3761_s16 + $0x1e0] sm:$0xff] %v1965_v36 }
 0x1b9   : > { %v1524_v63 = vmul.f32 %v4062_v19, %v1523_v42  ;;  %v4208_v8 = vadd.f32 1e-05, %v1410_v58  ;;  %v4211_v10 = vmul.f32 0.0013020834, %v5047_v38  ;;  %v1969_v56 = vadd.f32 %v3627_v7, %v1860_v2  ;;  %vm1527_vm13 = vmor %vm1525_vm12, %vm1526_vm11  ;;  %2062 = vst [vmem:[%s3761_s16 + $0x1e8] sm:$0xff] %v1966_v41 }
 0x1ba   : > { %v1669_v51 = vsub.f32 %v5048_v48, %v3690_v37  ;;  %v1670_v39 = vsub.f32 %v5049_v30, %v3690_v37  ;;  %v1970_v31 = vadd.f32 %v3633_v9, %v1861_v21  ;;  %v4227_v17 = vadd.f32 1e-05, %v1409_v29  ;;  %2063 = vst [vmem:[%s3761_s16 + $0x1f0] sm:$0xff] %v1967_v6  ;;  %v5059_v21 = vld [vmem:[#allocation81_spill] sm:$0xff] }
 0x1bb   : > { %v4221_v45 = vpop.eup %2321  ;;  %v1528_v27 = vsel %vm1527_vm13, %v4062_v19, %v1524_v63  ;;  %2323 = vrsqrt.f32 %v4208_v8  ;;  %v5050_v26 = vsub.f32 %v4978_v34, %v3631_v22  ;;  %v5051_v12 = vsub.f32 %v4979_v52, %v3631_v22  ;;  %2064 = vst [vmem:[%s3761_s16 + $0x1f8] sm:$0xff] %v1968_v18 }
 0x1bc   : > { %v5052_v13 = vsub.f32 %v4980_v1, %v3631_v22  ;;  %v5054_v19 = vsub.f32 %v5053_v25, %v3631_v22  ;;  %v5056_v16 = vsub.f32 %v5055_v49, %v3631_v22  ;;  %v5058_v34 = vsub.f32 %v5057_v32, %v3631_v22  ;;  %2065 = vst [vmem:[%s3761_s16 + $0x200] sm:$0xff] %v1969_v56  ;;  %v5060_v56 = vld [vmem:[#allocation82_spill] sm:$0xff]  ;;  %v5063_v49 = vld [vmem:[#allocation35_spill] sm:$0xff]  ;;  %v5065_v32 = vld [vmem:[#allocation33_spill] sm:$0xff] }
 0x1bd   : > { %v1741_v0 = vmul.f32 %v5050_v26, %v1528_v27  ;;  %v1742_v60 = vmul.f32 %v5051_v12, %v1528_v27  ;;  %v1510_v52 = vmul.f32 %v4221_v45, %v4096_v5  ;;  %v1671_v1 = vsub.f32 %v5059_v21, %v3690_v37  ;;  %2066 = vst [vmem:[%s3761_s16 + $0x208] sm:$0xff] %v1970_v31  ;;  %v1304_v31 = vpop.xlane.xlu0 %1303 }
 0x1be   : > { %v1743_v23 = vmul.f32 %v5052_v13, %v1528_v27  ;;  %v1744_v50 = vmul.f32 %v5054_v19, %v1528_v27  ;;  %v1745_v20 = vmul.f32 %v5056_v16, %v1528_v27  ;;  %v1746_v2 = vmul.f32 %v5058_v34, %v1528_v27  ;;  %v5064_v16 = vld [vmem:[#allocation85_spill] sm:$0xff] }
 0x1bf   : > { %v1850_v36 = vmul.f32 %v3602_v61, %v1741_v0  ;;  %v1851_v41 = vmul.f32 %v3607_v33, %v1742_v60  ;;  %v1511_v6 = vmul.f32 %v4221_v45, %v1510_v52  ;;  %2325 = vrsqrt.f32 %v4227_v17  ;;  %v5061_v60 = vld [vmem:[#allocation83_spill] sm:$0xff] }
 0x1c0   : > { %v1852_v42 = vmul.f32 %v3609_v55, %v1743_v23  ;;  %v1853_v58 = vmul.f32 %v3611_v28, %v1744_v50  ;;  %v1854_v22 = vmul.f32 %v3615_v46, %v1745_v20  ;;  %v1855_v29 = vmul.f32 %v3617_v47, %v1746_v2  ;;  %v5062_v23 = vld [vmem:[#allocation84_spill] sm:$0xff] }
 0x1c1   : > { %v1959_v18 = vadd.f32 %v3619_v62, %v1850_v36  ;;  %v1960_v63 = vadd.f32 %v3621_v53, %v1851_v41  ;;  %v1672_v27 = vsub.f32 %v5060_v56, %v3690_v37  ;;  %v2324_v26 = vpop.eup %2323  ;;  %v1512_v12 = vmul.f32 0.5, %v1511_v6 }
 0x1c2   : > { %v1961_v38 = vadd.f32 %v3623_v3, %v1852_v42  ;;  %v1962_v0 = vadd.f32 %v3625_v35, %v1853_v58  ;;  %v1673_v13 = vsub.f32 %v5061_v60, %v3690_v37  ;;  %v1674_v25 = vsub.f32 %v5062_v23, %v3690_v37  ;;  %v5066_v42 = vld [vmem:[#allocation86_spill] sm:$0xff] }
 0x1c3   : > { %v1963_v19 = vadd.f32 %v3627_v7, %v1854_v22  ;;  %2055 = vst [vmem:[%s3761_s16 + $0x1b0] sm:$0xff] %v1959_v18  ;;  %v1560_v50 = vmul.f32 %v2324_v26, %v4208_v8  ;;  %v1663_v20 = vsub.f32 %v5064_v16, %v5063_v49  ;;  %v1376_v34 = vmul.f32 %v5065_v32, %v5065_v32  ;;  %v5067_v22 = vld [vmem:[#allocation87_spill] sm:$0xff]  ;;  %v5070_v58 = vld [vmem:[#allocation90_spill] sm:$0xff] }
 0x1c4   : > { %v1964_v2 = vadd.f32 %v3633_v9, %v1855_v29  ;;  %2056 = vst [vmem:[%s3761_s16 + $0x1b8] sm:$0xff] %v1960_v63  ;;  %v1513_v52 = vsub.f32 1.5, %v1512_v12  ;;  %vm1516_vm14 = vweird.f32 %v4221_v45  ;;  %v1360_v36 = vmul.f32 0.0013020834, %v1304_v31  ;;  %v5068_v63 = vld [vmem:[#allocation88_spill] sm:$0xff] }
 0x1c5   : > { %2057 = vst [vmem:[%s3761_s16 + $0x1c0] sm:$0xff] %v1961_v38  ;;  %vm1515_vm15 = vweird.f32 %v4096_v5  ;;  %v1561_v41 = vmul.f32 %v2324_v26, %v1560_v50  ;;  %v4289_v18 = vpop.eup %2325  ;;  %v1666_v12 = vsub.f32 %v5068_v63, %v5063_v49  ;;  %v5069_v38 = vld [vmem:[#allocation89_spill] sm:$0xff]  ;;  %vm1565_vm1 = vweird.f32 %v4208_v8 }
 0x1c6   : > { %2058 = vst [vmem:[%s3761_s16 + $0x1c8] sm:$0xff] %v1962_v0  ;;  %v1514_v29 = vmul.f32 %v4221_v45, %v1513_v52  ;;  %v1392_v5 = vsub.f32 %v1360_v36, %v1376_v34  ;;  %vm1517_vm0 = vmor %vm1515_vm15, %vm1516_vm14  ;;  %v1550_v6 = vmul.f32 %v4289_v18, %v4227_v17  ;;  %v1668_v0 = vsub.f32 %v5070_v58, %v5063_v49 }
 0x1c7   : > { %2059 = vst [vmem:[%s3761_s16 + $0x1d0] sm:$0xff] %v1963_v19  ;;  %v1562_v50 = vmul.f32 0.5, %v1561_v41  ;;  %vm1566_vm2 = vweird.f32 %v2324_v26  ;;  %vm1555_vm3 = vweird.f32 %v4227_v17  ;;  %vm1556_vm4 = vweird.f32 %v4289_v18  ;;  %v5071_v19 = vld [vmem:[#allocation37_spill] sm:$0xff]  ;;  %v1332_v17 = vpop.xlane.xlu1 %1331 }
 0x1c8   : > { %2060 = vst [vmem:[%s3761_s16 + $0x1d8] sm:$0xff] %v1964_v2  ;;  %v1518_v52 = vsel %vm1517_vm0, %v4221_v45, %v1514_v29  ;;  %v1408_v34 = vmax.f32 %v1392_v5, 0.0  ;;  %v5072_v36 = vsub.f32 %v5071_v19, %v4984_v43  ;;  %v1551_v54 = vmul.f32 %v4289_v18, %v1550_v6  ;;  %vm1567_vm5 = vmor %vm1565_vm1, %vm1566_vm2 }
 0x1c9   : > { %v1736_v31 = vmul.f32 %v1640_v4, %v1518_v52  ;;  %v1737_v2 = vmul.f32 %v1641_v59, %v1518_v52  ;;  %v1738_v45 = vmul.f32 %v1642_v44, %v1518_v52  ;;  %v1739_v29 = vmul.f32 %v1643_v11, %v1518_v52  ;;  %vm1557_vm6 = vmor %vm1555_vm3, %vm1556_vm4 }
 0x1ca   : > { %v1735_v41 = vmul.f32 %v5072_v36, %v1518_v52  ;;  %v1740_v5 = vmul.f32 %v1644_v57, %v1518_v52  ;;  %v1563_v19 = vsub.f32 1.5, %v1562_v50  ;;  %v1552_v43 = vmul.f32 0.5, %v1551_v54 }
 0x1cb   : > { %v1845_v14 = vmul.f32 %v3607_v33, %v1736_v31  ;;  %v1846_v59 = vmul.f32 %v3609_v55, %v1737_v2  ;;  %v1847_v24 = vmul.f32 %v3611_v28, %v1738_v45  ;;  %v1848_v44 = vmul.f32 %v3615_v46, %v1739_v29 }
 0x1cc   : > { %v1844_v4 = vmul.f32 %v3602_v61, %v1735_v41  ;;  %v1849_v40 = vmul.f32 %v3617_v47, %v1740_v5  ;;  %v1564_v11 = vmul.f32 %v2324_v26, %v1563_v19  ;;  %v1553_v41 = vsub.f32 1.5, %v1552_v43 }
 0x1cd   : > { %v1954_v57 = vadd.f32 %v3621_v53, %v1845_v14  ;;  %v1955_v6 = vadd.f32 %v3623_v3, %v1846_v59  ;;  %v1956_v31 = vadd.f32 %v3625_v35, %v1847_v24  ;;  %v1957_v50 = vadd.f32 %v3627_v7, %v1848_v44 }
 0x1ce   : > { %v1953_v15 = vadd.f32 %v3619_v62, %v1844_v4  ;;  %v1958_v52 = vadd.f32 %v3633_v9, %v1849_v40  ;;  %v1568_v36 = vsel %vm1567_vm5, %v2324_v26, %v1564_v11  ;;  %v1554_v30 = vmul.f32 %v4289_v18, %v1553_v41 }
 0x1cf   : > { %v1765_v2 = vmul.f32 %v1669_v51, %v1568_v36  ;;  %v1766_v45 = vmul.f32 %v1670_v39, %v1568_v36  ;;  %v1767_v8 = vmul.f32 %v1671_v1, %v1568_v36  ;;  %v1768_v29 = vmul.f32 %v1672_v27, %v1568_v36  ;;  %2050 = vst [vmem:[%s3761_s16 + $0x188] sm:$0xff] %v1954_v57  ;;  %v5076_v57 = vld [vmem:[#allocation64_spill] sm:$0xff] }
 0x1d0   : > { %2049 = vst [vmem:[%s3761_s16 + $0x180] sm:$0xff] %v1953_v15  ;;  %v1769_v48 = vmul.f32 %v1673_v13, %v1568_v36  ;;  %v1770_v51 = vmul.f32 %v1674_v25, %v1568_v36  ;;  %v4362_v39 = vadd.f32 1e-05, %v1408_v34  ;;  %v1558_v60 = vsel %vm1557_vm6, %v4289_v18, %v1554_v30 }
 0x1d1   : > { %2051 = vst [vmem:[%s3761_s16 + $0x190] sm:$0xff] %v1955_v6  ;;  %v1874_v21 = vmul.f32 %v3602_v61, %v1765_v2  ;;  %v1875_v1 = vmul.f32 %v3607_v33, %v1766_v45  ;;  %v1876_v56 = vmul.f32 %v3609_v55, %v1767_v8  ;;  %v1877_v27 = vmul.f32 %v3611_v28, %v1768_v29  ;;  %v1325_v29 = vpop.xlane.xlu0 %1324 }
 0x1d2   : > { %2052 = vst [vmem:[%s3761_s16 + $0x198] sm:$0xff] %v1956_v31  ;;  %v1878_v37 = vmul.f32 %v3615_v46, %v1769_v48  ;;  %v1879_v26 = vmul.f32 %v3617_v47, %v1770_v51  ;;  %2327 = vrsqrt.f32 %v4362_v39  ;;  %v1380_v34 = vmul.f32 %v4211_v10, %v4211_v10 }
 0x1d3   : > { %2053 = vst [vmem:[%s3761_s16 + $0x1a0] sm:$0xff] %v1957_v50  ;;  %v1983_v13 = vadd.f32 %v3619_v62, %v1874_v21  ;;  %v1984_v23 = vadd.f32 %v3621_v53, %v1875_v1  ;;  %v1985_v25 = vadd.f32 %v3623_v3, %v1876_v56  ;;  %v1986_v5 = vadd.f32 %v3625_v35, %v1877_v27 }
 0x1d4   : > { %2054 = vst [vmem:[%s3761_s16 + $0x1a8] sm:$0xff] %v1958_v52  ;;  %v1987_v18 = vadd.f32 %v3627_v7, %v1878_v37  ;;  %v1759_v19 = vmul.f32 %v1663_v20, %v1558_v60  ;;  %v5073_v54 = vsub.f32 %v5066_v42, %v5063_v49  ;;  %v5074_v14 = vsub.f32 %v5067_v22, %v5063_v49  ;;  %v5077_v37 = vld [vmem:[#allocation55_spill] sm:$0xff] }
 0x1d5   : > { %2079 = vst [vmem:[%s3761_s16 + $0x270] sm:$0xff] %v1983_v13  ;;  %v1762_v24 = vmul.f32 %v1666_v12, %v1558_v60  ;;  %v5075_v44 = vsub.f32 %v5069_v38, %v5063_v49  ;;  %v1764_v16 = vmul.f32 %v1668_v0, %v1558_v60  ;;  %v1988_v20 = vadd.f32 %v3633_v9, %v1879_v26 }
 0x1d6   : > { %v1760_v4 = vmul.f32 %v5073_v54, %v1558_v60  ;;  %v1761_v59 = vmul.f32 %v5074_v14, %v1558_v60  ;;  %2080 = vst [vmem:[%s3761_s16 + $0x278] sm:$0xff] %v1984_v23  ;;  %v1868_v42 = vmul.f32 %v3602_v61, %v1759_v19  ;;  %v1364_v11 = vmul.f32 0.0013020834, %v1332_v17  ;;  %v5079_v23 = vld [vmem:[#allocation57_spill] sm:$0xff]  ;;  %v5080_v17 = vld [vmem:[#allocation58_spill] sm:$0xff]  ;;  %v5082_v54 = vld [vmem:[#allocation60_spill] sm:$0xff] }
 0x1d7   : > { %v1763_v40 = vmul.f32 %v5075_v44, %v1558_v60  ;;  %2081 = vst [vmem:[%s3761_s16 + $0x280] sm:$0xff] %v1985_v25  ;;  %v1871_v12 = vmul.f32 %v3611_v28, %v1762_v24  ;;  %v1873_v58 = vmul.f32 %v3617_v47, %v1764_v16  ;;  %v4419_v6 = vmul.f32 0.0013020834, %v5076_v57  ;;  %v5078_v60 = vld [vmem:[#allocation56_spill] sm:$0xff] }
 0x1d8   : > { %v1869_v22 = vmul.f32 %v3607_v33, %v1760_v4  ;;  %v1870_v63 = vmul.f32 %v3609_v55, %v1761_v59  ;;  %v2328_v49 = vpop.eup %2327  ;;  %2082 = vst [vmem:[%s3761_s16 + $0x288] sm:$0xff] %v1986_v5  ;;  %v1977_v0 = vadd.f32 %v3619_v62, %v1868_v42  ;;  %v1396_v15 = vsub.f32 %v1364_v11, %v1380_v34 }
 0x1d9   : > { %v1872_v38 = vmul.f32 %v3615_v46, %v1763_v40  ;;  %2083 = vst [vmem:[%s3761_s16 + $0x290] sm:$0xff] %v1987_v18  ;;  %v1980_v50 = vadd.f32 %v3625_v35, %v1871_v12  ;;  %v1540_v52 = vmul.f32 %v2328_v49, %v4362_v39  ;;  %v1982_v2 = vadd.f32 %v3633_v9, %v1873_v58  ;;  %v5081_v18 = vld [vmem:[#allocation59_spill] sm:$0xff] }
 0x1da   : > { %v1978_v43 = vadd.f32 %v3621_v53, %v1869_v22  ;;  %v1979_v31 = vadd.f32 %v3623_v3, %v1870_v63  ;;  %2084 = vst [vmem:[%s3761_s16 + $0x298] sm:$0xff] %v1988_v20  ;;  %v1412_v36 = vmax.f32 %v1396_v15, 0.0  ;;  %v1379_v48 = vmul.f32 %v4419_v6, %v4419_v6 }
 0x1db   : > { %v1981_v41 = vadd.f32 %v3627_v7, %v1872_v38  ;;  %2073 = vst [vmem:[%s3761_s16 + $0x240] sm:$0xff] %v1977_v0  ;;  %v1541_v45 = vmul.f32 %v2328_v49, %v1540_v52  ;;  %v1363_v51 = vmul.f32 0.0013020834, %v1325_v29  ;;  %vm1546_vm7 = vweird.f32 %v2328_v49  ;;  %v5084_v29 = vld [vmem:[#allocation92_spill] sm:$0xff] }
 0x1dc   : > { %2074 = vst [vmem:[%s3761_s16 + $0x248] sm:$0xff] %v1978_v43  ;;  %v1428_v8 = vadd.f32 1e-05, %v1412_v36  ;;  %vm1545_vm8 = vweird.f32 %v4362_v39  ;;  %v1657_v26 = vsub.f32 %v5077_v37, %v5065_v32  ;;  %v1658_v13 = vsub.f32 %v5078_v60, %v5065_v32 }
 0x1dd   : > { %2075 = vst [vmem:[%s3761_s16 + $0x250] sm:$0xff] %v1979_v31  ;;  %v1542_v30 = vmul.f32 0.5, %v1541_v45  ;;  %v1395_v21 = vsub.f32 %v1363_v51, %v1379_v48  ;;  %v1659_v25 = vsub.f32 %v5079_v23, %v5065_v32  ;;  %v1660_v34 = vsub.f32 %v5080_v17, %v5065_v32  ;;  %vm1547_vm9 = vmor %vm1545_vm8, %vm1546_vm7  ;;  %v5085_v51 = vld [vmem:[#allocation93_spill] sm:$0xff] }
 0x1de   : > { %2076 = vst [vmem:[%s3761_s16 + $0x258] sm:$0xff] %v1980_v50  ;;  %2329 = vrsqrt.f32 %v1428_v8  ;;  %v1661_v19 = vsub.f32 %v5081_v18, %v5065_v32  ;;  %v1662_v39 = vsub.f32 %v5082_v54, %v5065_v32  ;;  %vm1585_vm11 = vweird.f32 %v1428_v8 }
 0x1df   : > { %2077 = vst [vmem:[%s3761_s16 + $0x260] sm:$0xff] %v1981_v41  ;;  %v1543_v1 = vsub.f32 1.5, %v1542_v30  ;;  %v1411_v56 = vmax.f32 %v1395_v21, 0.0  ;;  %v1682_v48 = vsub.f32 %v5084_v29, %v4211_v10  ;;  %v1683_v30 = vsub.f32 %v5085_v51, %v4211_v10  ;;  %v5086_v21 = vld [vmem:[#allocation94_spill] sm:$0xff] }
 0x1e0   : > { %2078 = vst [vmem:[%s3761_s16 + $0x268] sm:$0xff] %v1982_v2  ;;  %v5083_v2 = vld [vmem:[#allocation91_spill] sm:$0xff] }
 0x1e1   : > { %v1544_v27 = vmul.f32 %v2328_v49, %v1543_v1  ;;  %v4449_v14 = vadd.f32 1e-05, %v1411_v56  ;;  %v1681_v45 = vsub.f32 %v5083_v2, %v4211_v10  ;;  %v1684_v1 = vsub.f32 %v5086_v21, %v4211_v10 }
 0x1e3   : > { %v1548_v4 = vsel %vm1547_vm9, %v2328_v49, %v1544_v27  ;;  %2331 = vrsqrt.f32 %v4449_v14  ;;  %vm1575_vm14 = vweird.f32 %v4449_v14 }
 0x1e4   : > { %v2330_v5 = vpop.eup %2329  ;;  %v1753_v59 = vmul.f32 %v1657_v26, %v1548_v4  ;;  %v1754_v24 = vmul.f32 %v1658_v13, %v1548_v4  ;;  %v1755_v44 = vmul.f32 %v1659_v25, %v1548_v4  ;;  %v1756_v40 = vmul.f32 %v1660_v34, %v1548_v4  ;;  %v5088_v26 = vld [vmem:[#allocation96_spill] sm:$0xff] }
 0x1e5   : > { %v1757_v16 = vmul.f32 %v1661_v19, %v1548_v4  ;;  %v1758_v20 = vmul.f32 %v1662_v39, %v1548_v4  ;;  %v1580_v42 = vmul.f32 %v2330_v5, %v1428_v8  ;;  %vm1586_vm10 = vweird.f32 %v2330_v5  ;;  %v5087_v8 = vld [vmem:[#allocation95_spill] sm:$0xff] }
 0x1e6   : > { %v1862_v22 = vmul.f32 %v3602_v61, %v1753_v59  ;;  %v1863_v11 = vmul.f32 %v3607_v33, %v1754_v24  ;;  %v1864_v63 = vmul.f32 %v3609_v55, %v1755_v44  ;;  %v1865_v32 = vmul.f32 %v3611_v28, %v1756_v40  ;;  %vm1587_vm12 = vmor %vm1585_vm11, %vm1586_vm10 }
 0x1e7   : > { %v1866_v12 = vmul.f32 %v3615_v46, %v1757_v16  ;;  %v1867_v38 = vmul.f32 %v3617_v47, %v1758_v20  ;;  %v1581_v49 = vmul.f32 %v2330_v5, %v1580_v42  ;;  %v1685_v37 = vsub.f32 %v5087_v8, %v4211_v10 }
 0x1e8   : > { %v1971_v58 = vadd.f32 %v3619_v62, %v1862_v22  ;;  %v1972_v0 = vadd.f32 %v3621_v53, %v1863_v11  ;;  %v1973_v43 = vadd.f32 %v3623_v3, %v1864_v63  ;;  %v1974_v15 = vadd.f32 %v3625_v35, %v1865_v32  ;;  %v5089_v32 = vld [vmem:[#allocation73_spill] sm:$0xff] }
 0x1e9   : > { %v1582_v57 = vmul.f32 0.5, %v1581_v49  ;;  %v1975_v31 = vadd.f32 %v3627_v7, %v1866_v12  ;;  %v1976_v50 = vadd.f32 %v3633_v9, %v1867_v38  ;;  %v2332_v36 = vpop.eup %2331  ;;  %v1686_v60 = vsub.f32 %v5088_v26, %v4211_v10  ;;  %v5090_v38 = vld [vmem:[#allocation74_spill] sm:$0xff] }
 0x1ea   : > { %2067 = vst [vmem:[%s3761_s16 + $0x210] sm:$0xff] %v1971_v58  ;;  %v1570_v56 = vmul.f32 %v2332_v36, %v4449_v14  ;;  %vm1576_vm13 = vweird.f32 %v2332_v36  ;;  %v1675_v12 = vsub.f32 %v5089_v32, %v4419_v6  ;;  %v1676_v49 = vsub.f32 %v5090_v38, %v4419_v6  ;;  %v5091_v58 = vld [vmem:[#allocation75_spill] sm:$0xff]  ;;  %v5094_v14 = vld [vmem:[#allocation78_spill] sm:$0xff] }
 0x1eb   : > { %2068 = vst [vmem:[%s3761_s16 + $0x218] sm:$0xff] %v1972_v0  ;;  %v1583_v52 = vsub.f32 1.5, %v1582_v57  ;;  %v1677_v0 = vsub.f32 %v5091_v58, %v4419_v6  ;;  %vm1577_vm15 = vmor %vm1575_vm14, %vm1576_vm13  ;;  %v5093_v57 = vld [vmem:[#allocation77_spill] sm:$0xff] }
 0x1ec   : > { %2069 = vst [vmem:[%s3761_s16 + $0x220] sm:$0xff] %v1973_v43  ;;  %v1571_v19 = vmul.f32 %v2332_v36, %v1570_v56  ;;  %v5092_v43 = vld [vmem:[#allocation76_spill] sm:$0xff] }
 0x1ed   : > { %2070 = vst [vmem:[%s3761_s16 + $0x228] sm:$0xff] %v1974_v15  ;;  %v1584_v41 = vmul.f32 %v2330_v5, %v1583_v52  ;;  %v1678_v15 = vsub.f32 %v5092_v43, %v4419_v6 }
 0x1ee   : > { %2071 = vst [vmem:[%s3761_s16 + $0x230] sm:$0xff] %v1975_v31  ;;  %v1572_v24 = vmul.f32 0.5, %v1571_v19  ;;  %v1679_v31 = vsub.f32 %v5093_v57, %v4419_v6 }
 0x1ef   : > { %2072 = vst [vmem:[%s3761_s16 + $0x238] sm:$0xff] %v1976_v50  ;;  %v1588_v27 = vsel %vm1587_vm12, %v2330_v5, %v1584_v41  ;;  %v1680_v50 = vsub.f32 %v5094_v14, %v4419_v6 }
 0x1f0   : > { %v1777_v13 = vmul.f32 %v1681_v45, %v1588_v27  ;;  %v1778_v23 = vmul.f32 %v1682_v48, %v1588_v27  ;;  %v1779_v25 = vmul.f32 %v1683_v30, %v1588_v27  ;;  %v1780_v17 = vmul.f32 %v1684_v1, %v1588_v27 }
 0x1f1   : > { %v1781_v34 = vmul.f32 %v1685_v37, %v1588_v27  ;;  %v1782_v18 = vmul.f32 %v1686_v60, %v1588_v27  ;;  %v1573_v42 = vsub.f32 1.5, %v1572_v24 }
 0x1f2   : > { %v1886_v54 = vmul.f32 %v3602_v61, %v1777_v13  ;;  %v1887_v39 = vmul.f32 %v3607_v33, %v1778_v23  ;;  %v1888_v5 = vmul.f32 %v3609_v55, %v1779_v25  ;;  %v1889_v4 = vmul.f32 %v3611_v28, %v1780_v17 }
 0x1f3   : > { %v1890_v10 = vmul.f32 %v3615_v46, %v1781_v34  ;;  %v1891_v59 = vmul.f32 %v3617_v47, %v1782_v18  ;;  %v1574_v63 = vmul.f32 %v2332_v36, %v1573_v42 }
 0x1f4   : > { %v1995_v44 = vadd.f32 %v3619_v62, %v1886_v54  ;;  %v1996_v40 = vadd.f32 %v3621_v53, %v1887_v39  ;;  %v1997_v16 = vadd.f32 %v3623_v3, %v1888_v5  ;;  %v1998_v20 = vadd.f32 %v3625_v35, %v1889_v4 }
 0x1f5   : > { %v1999_v22 = vadd.f32 %v3627_v7, %v1890_v10  ;;  %v2000_v11 = vadd.f32 %v3633_v9, %v1891_v59  ;;  %v1578_v52 = vsel %vm1577_vm15, %v2332_v36, %v1574_v63 }
 0x1f6   : > { %2091 = vst [vmem:[%s3761_s16 + $0x2d0] sm:$0xff] %v1995_v44  ;;  %v1771_v41 = vmul.f32 %v1675_v12, %v1578_v52  ;;  %v1772_v2 = vmul.f32 %v1676_v49, %v1578_v52  ;;  %v1773_v45 = vmul.f32 %v1677_v0, %v1578_v52  ;;  %v1774_v29 = vmul.f32 %v1678_v15, %v1578_v52 }
 0x1f7   : > { %2092 = vst [vmem:[%s3761_s16 + $0x2d8] sm:$0xff] %v1996_v40  ;;  %v1775_v48 = vmul.f32 %v1679_v31, %v1578_v52  ;;  %v1776_v51 = vmul.f32 %v1680_v50, %v1578_v52 }
 0x1f8   : > { %2093 = vst [vmem:[%s3761_s16 + $0x2e0] sm:$0xff] %v1997_v16  ;;  %v1880_v30 = vmul.f32 %v3602_v61, %v1771_v41  ;;  %v1881_v21 = vmul.f32 %v3607_v33, %v1772_v2  ;;  %v1882_v6 = vmul.f32 %v3609_v55, %v1773_v45  ;;  %v1883_v36 = vmul.f32 %v3611_v28, %v1774_v29 }
 0x1f9   : > { %2094 = vst [vmem:[%s3761_s16 + $0x2e8] sm:$0xff] %v1998_v20  ;;  %v1884_v1 = vmul.f32 %v3615_v46, %v1775_v48  ;;  %v1885_v56 = vmul.f32 %v3617_v47, %v1776_v51 }
 0x1fa   : > { %2095 = vst [vmem:[%s3761_s16 + $0x2f0] sm:$0xff] %v1999_v22  ;;  %v1989_v61 = vadd.f32 %v3619_v62, %v1880_v30  ;;  %v1990_v33 = vadd.f32 %v3621_v53, %v1881_v21  ;;  %v1991_v55 = vadd.f32 %v3623_v3, %v1882_v6  ;;  %v1992_v28 = vadd.f32 %v3625_v35, %v1883_v36 }
 0x1fb   : > { %2096 = vst [vmem:[%s3761_s16 + $0x2f8] sm:$0xff] %v2000_v11  ;;  %v1993_v46 = vadd.f32 %v3627_v7, %v1884_v1  ;;  %v1994_v47 = vadd.f32 %v3633_v9, %v1885_v56 }
 0x1fc   : > { %2085 = vst [vmem:[%s3761_s16 + $0x2a0] sm:$0xff] %v1989_v61 }
 0x1fd   : > { %2086 = vst [vmem:[%s3761_s16 + $0x2a8] sm:$0xff] %v1990_v33 }
 0x1fe   : > { %2087 = vst [vmem:[%s3761_s16 + $0x2b0] sm:$0xff] %v1991_v55 }
 0x1ff   : > { %2088 = vst [vmem:[%s3761_s16 + $0x2b8] sm:$0xff] %v1992_v28 }
 0x200   : > { %2089 = vst [vmem:[%s3761_s16 + $0x2c0] sm:$0xff] %v1993_v46 }
 0x201   : > { %2090 = vst [vmem:[%s3761_s16 + $0x2c8] sm:$0xff] %v1994_v47 }
 0x202   : > { %2420 = shalt.err (!%p2417_p3)
}
 0x203   : > { %s2467_s6 = smov 768   ;;  %s2468_s28 = smov 48  }
 0x204   : > { %2250 = dma.vmem_to_hbm [thread:$0]  (%p2544_p10), %s2112_s26, 12288, %s2114_s20, %s2098_s10, %s2467_s6, %s2467_s6, %s2468_s28  }
 0x205 PF: > { %p2264_p4 = scmp.ge.s32.totalorder %s2463_s21, 2  ;;  %s2128_s11 = sand.u32 1, %s2451_s18  }
 0x206   : > { %s2129_s13 = scalar_lea.sflag [#allocation4], %s2128_s11 }
 0x207   : > { %p2260_p5 = pnand %p2264_p4, %p2548_p11 }
 0x209   : > { %p2261_p7 = pneg %p2260_p5 }
 0x20b   : > { %2446 = dma.done.wait (%p2261_p7), %s2129_s13, 12288  }
 0x20c   : > { %2448 = vsyncadd (%p2261_p7), %s2129_s13, 4294955008  ;;  %s5095_s15 = sld [smem:[#allocation11_spill]]  ;;  %p21_p8 = scmp.ge.s32.totalorder %s2524_s24, 5  }
 0x20d   : > { %s5096_s20 = sld [smem:[#allocation12_spill]]  ;;  %s5097_s18 = smov %s2455_s19 }
 0x20e   : > { %s5099_s21 = smov %s2524_s24  ;;  %23 = sbr.rel (!%p21_p8) target bundleno = 9 (0x9), region = 101 }
 0x212   : > { %s5098_s19 = smov %s5095_s15 }
 0x213   :  { %2135 = vsyncpa [#allocation3], 1 }
 0x214   :  { %2137 = vsyncpa [#allocation3 + $0x1], 1 }
 0x215   :  { %2138 = vsyncpa [#allocation6], 1 }
 0x216   :  { %2140 = vsyncpa [#allocation6 + $0x1], 1 }
 0x217   :  { %2141 = vsyncpa [#allocation4], 1 }
 0x218   :  { %2143 = vsyncpa [#allocation4 + $0x1], 1 }

</bundles_post_ra>
